<compile_context>
chip_gen: v6e
topology: v6e:2x2x1
jax: 0.10.0
libtpu: 0.0.40
codegen_flags: <defaults>
</compile_context>

<pallas_src>
import functools

import jax
import jax.numpy as jnp
from jax import lax
from jax.experimental import pallas as pl
from jax.experimental.pallas import tpu as pltpu


# ----------------------------------------------------------------------------
# Kernel 1: per-object bilinear crop (grid_sample semantics) as two MXU matmuls
# ----------------------------------------------------------------------------
def _crop_kernel(o2i_ref, img_ref, wyp_ref, wxi_ref, out_ref):
    """Padded bilinear crop of one object.

    img_ref : (1, H, W*C)      source image, (w, c)-interleaved columns
    wxi_ref : (1, W*C, WWp*C)  kron(column-interp, I_C); conv pad cols folded in
    wyp_ref : (1, HHp, H)      row-interp matrix; conv pad rows folded in
    out_ref : (1, HHp, WWp*C)  zero-padded crop, channel-last interleaved
    """
    del o2i_ref  # consumed by the image-selecting index_map only
    s1 = jnp.dot(img_ref[0], wxi_ref[0], preferred_element_type=jnp.float32)
    crop = jnp.dot(wyp_ref[0], s1.astype(jnp.bfloat16),
                   preferred_element_type=jnp.float32)
    out_ref[0] = crop.astype(out_ref.dtype)


def _axis_interp(lo, hi, in_size, out_size):
    """Per-object 1-D bilinear interpolation matrices (O, in_size, out_size).

    Matches tensor_linspace + F.grid_sample(zero padding, align_corners=False):
    weight of source index s for output sample j.
    """
    t = jnp.linspace(0.0, 1.0, out_size)
    coord = lo[:, None] + (hi - lo)[:, None] * t[None, :]          # (O, out)
    src = ((coord + 1.0) * in_size - 1.0) / 2.0
    s0 = jnp.floor(src)
    w1 = src - s0
    w0 = 1.0 - w1
    s1 = s0 + 1.0
    v0 = ((s0 >= 0) & (s0 <= in_size - 1)).astype(jnp.float32)
    v1 = ((s1 >= 0) & (s1 <= in_size - 1)).astype(jnp.float32)
    idx = jnp.arange(in_size, dtype=jnp.float32).reshape(1, in_size, 1)
    m = ((w0 * v0)[:, None, :] * (idx == s0[:, None, :]).astype(jnp.float32)
         + (w1 * v1)[:, None, :] * (idx == s1[:, None, :]).astype(jnp.float32))
    return m.astype(jnp.float32)                                   # (O, in, out)


# ----------------------------------------------------------------------------
# Kernel 2: conv1 -> conv2 (lane-packed taps) -> GAP -> FC -> heads -> CE
# ----------------------------------------------------------------------------
def _tail_kernel(p1_ref, oh_ref, w1_ref, b1_ref, w2p_ref, b2_ref,
                 fcw_ref, fcb_ref, hw_ref, hb_ref, out_ref, *,
                 k, h2, w2, num_objects, ce_col):
    """Fused discriminator tail for one block of OB objects.

    p1_ref  : (OB, 4*H2*W2, K*K*C) conv1 im2col rows, ordered
              (row-parity, col-parity, i2, j2) so the conv2 taps become
              dense zero-filled shifts of the conv1 activations.
    out_ref : (OB, 128) packed scores; column `ce_col` carries the per-object
              cross-entropy term.
    """
    ob = p1_ref.shape[0]
    kkc = p1_ref.shape[2]
    c1 = w1_ref.shape[1]
    s = h2 * w2

    # --- conv1: a single GEMM over all OB objects (computed exactly once) ---
    p1 = p1_ref[...].reshape(ob * 4 * s, kkc)
    a1 = jnp.dot(p1, w1_ref[...], preferred_element_type=jnp.float32)
    a1 = jnp.maximum(a1 + b1_ref[...], 0.0)
    a1 = a1.reshape(ob, 4, s, c1)                       # (OB, phase, S, C1)

    # --- conv2: pack the K*K taps along lanes -> one 128-deep GEMM ----------
    jj = lax.broadcasted_iota(jnp.int32, (s, 1), 0) % w2
    mask_m = (jj >= 1).astype(jnp.float32)              # j-shift of -1 valid
    mask_p = (jj <= w2 - 2).astype(jnp.float32)         # j-shift of +1 valid

    def shift_rows(x, amt):                             # zero-filled row shift
        if amt == 0:
            return x
        pad = jnp.zeros((ob, abs(amt), c1), x.dtype)
        if amt > 0:
            return jnp.concatenate([x[:, amt:, :], pad], axis=1)
        return jnp.concatenate([pad, x[:, :amt, :]], axis=1)

    pieces = []
    for ki in range(k):                                 # static layout loop
        pr, di = (ki + 1) % 2, (ki - 1) // 2
        for kj in range(k):
            pc, dj = (kj + 1) % 2, (kj - 1) // 2
            piece = shift_rows(a1[:, pr * 2 + pc, :, :], di * w2 + dj)
            if dj == -1:
                piece = piece * mask_m
            elif dj == 1:
                piece = piece * mask_p
            pieces.append(piece.reshape(ob * s, c1))
    p2 = jnp.concatenate(pieces, axis=-1).astype(jnp.bfloat16)   # (OB*S, K*K*C1)

    a2 = jnp.dot(p2, w2p_ref[...], preferred_element_type=jnp.float32)
    a2 = jnp.maximum(a2 + b2_ref[...], 0.0)             # (OB*S, C2)

    # --- GlobalAvgPool (in-kernel mean, no dense pooling matrix) ------------
    vec = jnp.mean(a2.reshape(ob, s, a2.shape[-1]), axis=1)      # (OB, C2)

    # --- Linear(D, 1024) + fused real/obj heads (lane-dense 128-col GEMM) ---
    h = jnp.dot(vec.astype(jnp.bfloat16), fcw_ref[...],
                preferred_element_type=jnp.float32) + fcb_ref[...]
    scores = jnp.dot(h.astype(jnp.bfloat16), hw_ref[...],
                     preferred_element_type=jnp.float32) + hb_ref[...]

    # --- per-object cross entropy over the object-class columns -------------
    col = lax.broadcasted_iota(jnp.int32, (1, scores.shape[-1]), 1)
    logits = scores + jnp.where(col < num_objects, 0.0, -1e9)
    m = jnp.max(logits, axis=-1, keepdims=True)
    lse = m + jnp.log(jnp.sum(jnp.exp(logits - m), axis=-1, keepdims=True))
    picked = jnp.sum(scores * oh_ref[...], axis=-1, keepdims=True)
    ce = lse - picked                                   # (OB, 1)

    out_ref[...] = jnp.where(col == ce_col, ce, scores)


# ----------------------------------------------------------------------------
# Parameter preparation (done once, outside the forward hot path)
# ----------------------------------------------------------------------------
def prepare_params(params, num_objects, head_cols=128):
    c1, cin, k, _ = params["conv1_w"].shape
    c2 = params["conv2_w"].shape[0]
    hidden = params["fc_w"].shape[0]
    assert num_objects + 1 < head_cols - 1

    # conv1 weight as an im2col GEMM matrix: row = (ki*K + kj)*C + c
    w1 = jnp.transpose(params["conv1_w"], (2, 3, 1, 0)).reshape(k * k * cin, c1)
    # conv2 weight packed for the lane-packed taps: row = (ki*K + kj)*C1 + c1
    w2 = jnp.transpose(params["conv2_w"], (2, 3, 1, 0)).reshape(k * k * c1, c2)

    # obj head (cols 0..V-1) + real head (col V) in one lane-dense GEMM
    hw = jnp.zeros((hidden, head_cols), jnp.float32)
    hw = hw.at[:, :num_objects].set(params["obj_w"].T)
    hw = hw.at[:, num_objects].set(params["real_w"][0])
    hb = jnp.zeros((head_cols,), jnp.float32)
    hb = hb.at[:num_objects].set(params["obj_b"])
    hb = hb.at[num_objects].set(params["real_b"][0])

    return {
        "w1": w1.astype(jnp.bfloat16),
        "b1": params["conv1_b"].reshape(1, c1).astype(jnp.float32),
        "w2": w2.astype(jnp.bfloat16),
        "b2": params["conv2_b"].reshape(1, c2).astype(jnp.float32),
        "fcw": params["fc_w"].T.astype(jnp.bfloat16),          # (D, 1024)
        "fcb": params["fc_b"].reshape(1, hidden).astype(jnp.float32),
        "hw": hw.astype(jnp.bfloat16),                          # (1024, 128)
        "hb": hb.reshape(1, head_cols).astype(jnp.float32),
    }


# ----------------------------------------------------------------------------
# AcCropDiscriminator forward
# ----------------------------------------------------------------------------
def ac_crop_discriminator_forward(prepped, imgs, objs, boxes, obj_to_img, *,
                                  object_size, kernel_size, stride,
                                  num_objects):
    N, C, H, W = imgs.shape
    O = boxes.shape[0]
    K = kernel_size
    HH = WW = object_size
    # TODO(synk): only the sg2im default discriminator conv shape (K=4, s=2,
    # 'same' padding) is supported by the phase-packed conv2 path.
    assert K == 4 and stride == 2 and HH % 4 == 0
    H1, W1 = HH // 2, WW // 2
    H2, W2 = H1 // 2, W1 // 2
    S = H2 * W2
    HHp, WWp = HH + 2, WW + 2

    KKC = prepped["w1"].shape[0]
    C1 = prepped["w1"].shape[1]
    C2 = prepped["w2"].shape[1]
    HID = prepped["fcw"].shape[1]
    head_cols = prepped["hw"].shape[1]
    ce_col = head_cols - 1
    assert KKC == K * K * C

    OB = 8                                  # objects per tail grid step
    O_pad = ((O + OB - 1) // OB) * OB

    # ---- per-object separable interpolation matrices (grid_sample semantics,
    # align_corners=False, zero padding); conv1 zero border folded in ---------
    b = 2.0 * boxes.astype(jnp.float32) - 1.0
    wx = _axis_interp(b[:, 0], b[:, 2], W, WW)                      # (O, W, WW)
    wy = jnp.transpose(_axis_interp(b[:, 1], b[:, 3], H, HH), (0, 2, 1))
    wyp = jnp.pad(wy, ((0, 0), (1, 1), (0, 0))).astype(jnp.bfloat16)  # (O,HHp,H)
    wxp = jnp.pad(wx, ((0, 0), (0, 0), (1, 1)))                       # (O,W,WWp)
    eye_c = jnp.eye(C, dtype=jnp.float32)
    wxi = (wxp[:, :, None, :, None] * eye_c[None, None, :, None, :]
           ).reshape(O, W * C, WWp * C).astype(jnp.bfloat16)
    imgs_hwc = jnp.transpose(imgs, (0, 2, 3, 1)).reshape(N, H, W * C)
    imgs_hwc = imgs_hwc.astype(jnp.bfloat16)

    # ---- kernel 1: crop (grid over objects; image picked via scalar prefetch)
    crop_pad = pl.pallas_call(
        _crop_kernel,
        out_shape=jax.ShapeDtypeStruct((O, HHp, WWp * C), jnp.bfloat16),
        grid_spec=pltpu.PrefetchScalarGridSpec(
            num_scalar_prefetch=1,
            grid=(O,),
            in_specs=[
                pl.BlockSpec((1, H, W * C), lambda o, o2i: (o2i[o], 0, 0)),
                pl.BlockSpec((1, HHp, H), lambda o, o2i: (o, 0, 0)),
                pl.BlockSpec((1, W * C, WWp * C), lambda o, o2i: (o, 0, 0)),
            ],
            out_specs=pl.BlockSpec((1, HHp, WWp * C), lambda o, o2i: (o, 0, 0)),
        ),
        compiler_params=pltpu.CompilerParams(
            dimension_semantics=("parallel",)),
    )(obj_to_img.astype(jnp.int32), imgs_hwc, wyp, wxi)

    # ---- conv1 im2col (layout-only XLA), rows ordered (row-parity, col-parity,
    # i2, j2) so the tail kernel's conv2 taps become dense shifted views ------
    cp = crop_pad.reshape(O, HHp, WWp, C)
    taps = []
    for ki in range(K):
        for kj in range(K):
            taps.append(cp[:, ki:ki + 2 * H1 - 1:2, kj:kj + 2 * W1 - 1:2, :])
    patches = jnp.stack(taps, axis=3).reshape(O, H1, W1, KKC)
    patches = patches.reshape(O, H2, 2, W2, 2, KKC)
    patches = jnp.transpose(patches, (0, 2, 4, 1, 3, 5)).reshape(O, 4 * S, KKC)
    patches = jnp.pad(patches, ((0, O_pad - O), (0, 0), (0, 0)))

    oh = jax.nn.one_hot(objs, num_objects, dtype=jnp.float32)
    onehot = jnp.zeros((O_pad, head_cols), jnp.float32)
    onehot = onehot.at[:O, :num_objects].set(oh)

    # ---- kernel 2: fused conv1+conv2+GAP+FC+heads+CE (8 objects / grid step)
    kernel = functools.partial(_tail_kernel, k=K, h2=H2, w2=W2,
                               num_objects=num_objects, ce_col=ce_col)
    out = pl.pallas_call(
        kernel,
        out_shape=jax.ShapeDtypeStruct((O_pad, head_cols), jnp.float32),
        grid=(O_pad // OB,),
        in_specs=[
            pl.BlockSpec((OB, 4 * S, KKC), lambda g: (g, 0, 0)),
            pl.BlockSpec((OB, head_cols), lambda g: (g, 0)),
            pl.BlockSpec((KKC, C1), lambda g: (0, 0)),
            pl.BlockSpec((1, C1), lambda g: (0, 0)),
            pl.BlockSpec((K * K * C1, C2), lambda g: (0, 0)),
            pl.BlockSpec((1, C2), lambda g: (0, 0)),
            pl.BlockSpec((C2, HID), lambda g: (0, 0)),
            pl.BlockSpec((1, HID), lambda g: (0, 0)),
            pl.BlockSpec((HID, head_cols), lambda g: (0, 0)),
            pl.BlockSpec((1, head_cols), lambda g: (0, 0)),
        ],
        out_specs=pl.BlockSpec((OB, head_cols), lambda g: (g, 0)),
        compiler_params=pltpu.CompilerParams(
            dimension_semantics=("parallel",),
            vmem_limit_bytes=32 * 1024 * 1024),
    )(patches, onehot, prepped["w1"], prepped["b1"], prepped["w2"],
      prepped["b2"], prepped["fcw"], prepped["fcb"], prepped["hw"],
      prepped["hb"])

    real_scores = out[:O, num_objects:num_objects + 1]            # (O, 1)
    ac_loss = jnp.sum(out[:O, ce_col]) / O
    return real_scores, ac_loss


# ----------------------------------------------------------------------------
# Main
# ----------------------------------------------------------------------------
if __name__ == "__main__":
    key = jax.random.PRNGKey(0)
    keys = jax.random.split(key, 16)

    N, C, H, W = 2, 3, 16, 16        # images
    O = 5                            # number of objects (crops)
    V = 10                           # len(vocab['object_idx_to_name'])
    object_size = 16
    C1, C2, K, STRIDE = 8, 16, 4, 2  # arch = 'C4-8-2,C4-16-2' -> D = 16

    imgs = jax.random.normal(keys[0], (N, C, H, W), jnp.float32)
    objs = jax.random.randint(keys[1], (O,), 0, V)
    obj_to_img = jax.random.randint(keys[2], (O,), 0, N)
    lo = jax.random.uniform(keys[3], (O, 2), minval=0.0, maxval=0.5)
    sz = jax.random.uniform(keys[4], (O, 2), minval=0.2, maxval=0.5)
    boxes = jnp.concatenate([lo, lo + sz], axis=1)        # (x0, y0, x1, y1)

    scale = 0.05
    params = {
        "conv1_w": scale * jax.random.normal(keys[5], (C1, C, K, K), jnp.float32),
        "conv1_b": scale * jax.random.normal(keys[6], (C1,), jnp.float32),
        "conv2_w": scale * jax.random.normal(keys[7], (C2, C1, K, K), jnp.float32),
        "conv2_b": scale * jax.random.normal(keys[8], (C2,), jnp.float32),
        "fc_w":   scale * jax.random.normal(keys[9], (1024, C2), jnp.float32),
        "fc_b":   scale * jax.random.normal(keys[10], (1024,), jnp.float32),
        "real_w": scale * jax.random.normal(keys[11], (1, 1024), jnp.float32),
        "real_b": scale * jax.random.normal(keys[12], (1,), jnp.float32),
        "obj_w":  scale * jax.random.normal(keys[13], (V, 1024), jnp.float32),
        "obj_b":  scale * jax.random.normal(keys[14], (V,), jnp.float32),
    }

    prepped = prepare_params(params, num_objects=V)
    fwd = jax.jit(functools.partial(
        ac_crop_discriminator_forward,
        object_size=object_size, kernel_size=K, stride=STRIDE,
        num_objects=V))

    real_scores, ac_loss = fwd(prepped, imgs, objs, boxes, obj_to_img)
    jax.block_until_ready((real_scores, ac_loss))

    assert real_scores.shape == (O, 1)
    assert ac_loss.shape == ()
    assert bool(jnp.all(jnp.isfinite(real_scores)))
    assert bool(jnp.isfinite(ac_loss))
    print("KERNEL_OK")
</pallas_src>

<mosaic_0001>
module attributes {stable_mosaic.version = 11 : i64} {
  func.func @_crop_kernel(%arg0: i32, %arg1: memref<5xi32, #tpu.memory_space<smem>>, %arg2: memref<1x16x48xbf16, #tpu.memory_space<vmem>>, %arg3: memref<1x18x16xbf16, #tpu.memory_space<vmem>>, %arg4: memref<1x48x54xbf16, #tpu.memory_space<vmem>>, %arg5: memref<1x18x54xbf16, #tpu.memory_space<vmem>>) attributes {dimension_semantics = [#tpu.dimension_semantics<parallel>], iteration_bounds = array<i64: 5>, scalar_prefetch = 1 : i64, scratch_operands = 0 : i64, tpu.core_type = #tpu.core_type<tc>, window_params = [{transform_indices = @transform_0, window_bounds = array<i64: 1, 16, 48>}, {transform_indices = @transform_1, window_bounds = array<i64: 1, 18, 16>}, {transform_indices = @transform_2, window_bounds = array<i64: 1, 48, 54>}, {transform_indices = @transform_3, window_bounds = array<i64: 1, 18, 54>}]} {
    %c0 = arith.constant 0 : index
    %c0_0 = arith.constant 0 : index
    %c0_1 = arith.constant 0 : index
    %0 = vector.load %arg2[%c0, %c0_0, %c0_1] : memref<1x16x48xbf16, #tpu.memory_space<vmem>>, vector<1x16x48xbf16>
    %1 = vector.shape_cast %0 : vector<1x16x48xbf16> to vector<16x48xbf16>
    %c0_2 = arith.constant 0 : index
    %c0_3 = arith.constant 0 : index
    %c0_4 = arith.constant 0 : index
    %2 = vector.load %arg4[%c0_2, %c0_3, %c0_4] : memref<1x48x54xbf16, #tpu.memory_space<vmem>>, vector<1x48x54xbf16>
    %3 = vector.shape_cast %2 : vector<1x48x54xbf16> to vector<48x54xbf16>
    %cst = arith.constant dense<0.000000e+00> : vector<16x54xf32>
    %4 = tpu.matmul %1, %3, %cst {dimension_numbers = #tpu.dot_dimension_numbers<[1], [0], [0], [1], [0, 0, 1, 1], [], []>} : vector<16x48xbf16>, vector<48x54xbf16>, vector<16x54xf32> -> vector<16x54xf32>
    %c0_5 = arith.constant 0 : index
    %c0_6 = arith.constant 0 : index
    %c0_7 = arith.constant 0 : index
    %5 = vector.load %arg3[%c0_5, %c0_6, %c0_7] : memref<1x18x16xbf16, #tpu.memory_space<vmem>>, vector<1x18x16xbf16>
    %6 = vector.shape_cast %5 : vector<1x18x16xbf16> to vector<18x16xbf16>
    %7 = arith.truncf %4 : vector<16x54xf32> to vector<16x54xbf16>
    %cst_8 = arith.constant dense<0.000000e+00> : vector<18x54xf32>
    %8 = tpu.matmul %6, %7, %cst_8 {dimension_numbers = #tpu.dot_dimension_numbers<[1], [0], [0], [1], [0, 0, 1, 1], [], []>} : vector<18x16xbf16>, vector<16x54xbf16>, vector<18x54xf32> -> vector<18x54xf32>
    %9 = arith.truncf %8 : vector<18x54xf32> to vector<18x54xbf16>
    %c0_9 = arith.constant 0 : index
    %c0_10 = arith.constant 0 : index
    %c0_11 = arith.constant 0 : index
    %10 = vector.load %arg5[%c0_9, %c0_10, %c0_11] : memref<1x18x54xbf16, #tpu.memory_space<vmem>>, vector<1x18x54xbf16>
    %11 = vector.shape_cast %10 : vector<1x18x54xbf16> to vector<18x54xbf16>
    %12 = vector.shape_cast %9 : vector<18x54xbf16> to vector<1x18x54xbf16>
    tpu.vector_store %arg5[%c0_9, %c0_10, %c0_11], %12 {strides = array<i32>} : memref<1x18x54xbf16, #tpu.memory_space<vmem>>, vector<1x18x54xbf16>,
    return
  }
  func.func @transform_0(%arg0: i32, %arg1: memref<5xi32, #tpu.memory_space<smem>>) -> (i32, i32, i32) {
    %0 = arith.index_cast %arg0 : i32 to index
    %1 = memref.load %arg1[%0] : memref<5xi32, #tpu.memory_space<smem>>
    %c0_i32 = arith.constant 0 : i32
    %c0_i32_0 = arith.constant 0 : i32
    %c0_i32_1 = arith.constant 0 : i32
    return %1, %c0_i32, %c0_i32_0 : i32, i32, i32
  }
  func.func @transform_1(%arg0: i32, %arg1: memref<5xi32, #tpu.memory_space<smem>>) -> (i32, i32, i32) {
    %c0_i32 = arith.constant 0 : i32
    %c0_i32_0 = arith.constant 0 : i32
    %c0_i32_1 = arith.constant 0 : i32
    return %arg0, %c0_i32, %c0_i32_0 : i32, i32, i32
  }
  func.func @transform_2(%arg0: i32, %arg1: memref<5xi32, #tpu.memory_space<smem>>) -> (i32, i32, i32) {
    %c0_i32 = arith.constant 0 : i32
    %c0_i32_0 = arith.constant 0 : i32
    %c0_i32_1 = arith.constant 0 : i32
    return %arg0, %c0_i32, %c0_i32_0 : i32, i32, i32
  }
  func.func @transform_3(%arg0: i32, %arg1: memref<5xi32, #tpu.memory_space<smem>>) -> (i32, i32, i32) {
    %c0_i32 = arith.constant 0 : i32
    %c0_i32_0 = arith.constant 0 : i32
    %c0_i32_1 = arith.constant 0 : i32
    return %arg0, %c0_i32, %c0_i32_0 : i32, i32, i32
  }
}

module attributes {stable_mosaic.version = 11 : i64} {
  func.func @_tail_kernel(%arg0: i32, %arg1: memref<8x64x48xbf16, #tpu.memory_space<vmem>>, %arg2: memref<8x128xf32, #tpu.memory_space<vmem>>, %arg3: memref<48x8xbf16, #tpu.memory_space<vmem>>, %arg4: memref<1x8xf32, #tpu.memory_space<vmem>>, %arg5: memref<128x16xbf16, #tpu.memory_space<vmem>>, %arg6: memref<1x16xf32, #tpu.memory_space<vmem>>, %arg7: memref<16x1024xbf16, #tpu.memory_space<vmem>>, %arg8: memref<1x1024xf32, #tpu.memory_space<vmem>>, %arg9: memref<1024x128xbf16, #tpu.memory_space<vmem>>, %arg10: memref<1x128xf32, #tpu.memory_space<vmem>>, %arg11: memref<8x128xf32, #tpu.memory_space<vmem>>) attributes {dimension_semantics = [#tpu.dimension_semantics<parallel>], iteration_bounds = array<i64: 1>, scalar_prefetch = 0 : i64, scratch_operands = 0 : i64, tpu.core_type = #tpu.core_type<tc>, window_params = [{transform_indices = @transform_0, window_bounds = array<i64: 8, 64, 48>}, {transform_indices = @transform_1, window_bounds = array<i64: 8, 128>}, {pipeline_mode = #tpu.pipeline_mode<synchronous>, transform_indices = @transform_2, window_bounds = array<i64: 48, 8>}, {pipeline_mode = #tpu.pipeline_mode<synchronous>, transform_indices = @transform_3, window_bounds = array<i64: 1, 8>}, {pipeline_mode = #tpu.pipeline_mode<synchronous>, transform_indices = @transform_4, window_bounds = array<i64: 128, 16>}, {pipeline_mode = #tpu.pipeline_mode<synchronous>, transform_indices = @transform_5, window_bounds = array<i64: 1, 16>}, {pipeline_mode = #tpu.pipeline_mode<synchronous>, transform_indices = @transform_6, window_bounds = array<i64: 16, 1024>}, {pipeline_mode = #tpu.pipeline_mode<synchronous>, transform_indices = @transform_7, window_bounds = array<i64: 1, 1024>}, {pipeline_mode = #tpu.pipeline_mode<synchronous>, transform_indices = @transform_8, window_bounds = array<i64: 1024, 128>}, {pipeline_mode = #tpu.pipeline_mode<synchronous>, transform_indices = @transform_9, window_bounds = array<i64: 1, 128>}, {transform_indices = @transform_10, window_bounds = array<i64: 8, 128>}]} {
    %c0 = arith.constant 0 : index
    %c0_0 = arith.constant 0 : index
    %c0_1 = arith.constant 0 : index
    %0 = vector.load %arg1[%c0, %c0_0, %c0_1] : memref<8x64x48xbf16, #tpu.memory_space<vmem>>, vector<8x64x48xbf16>
    %1 = vector.shape_cast %0 : vector<8x64x48xbf16> to vector<512x48xbf16>
    %c0_2 = arith.constant 0 : index
    %c0_3 = arith.constant 0 : index
    %2 = vector.load %arg3[%c0_2, %c0_3] : memref<48x8xbf16, #tpu.memory_space<vmem>>, vector<48x8xbf16>
    %cst = arith.constant dense<0.000000e+00> : vector<512x8xf32>
    %3 = tpu.matmul %1, %2, %cst {dimension_numbers = #tpu.dot_dimension_numbers<[1], [0], [0], [1], [0, 0, 1, 1], [], []>} : vector<512x48xbf16>, vector<48x8xbf16>, vector<512x8xf32> -> vector<512x8xf32>
    %c0_4 = arith.constant 0 : index
    %c0_5 = arith.constant 0 : index
    %4 = vector.load %arg4[%c0_4, %c0_5] : memref<1x8xf32, #tpu.memory_space<vmem>>, vector<1x8xf32>
    %5 = vector.broadcast %4 : vector<1x8xf32> to vector<512x8xf32>
    %6 = arith.addf %3, %5 : vector<512x8xf32>
    %cst_6 = arith.constant 0.000000e+00 : f32
    %7 = vector.broadcast %cst_6 : f32 to vector<512x8xf32>
    %8 = arith.maximumf %6, %7 : vector<512x8xf32>
    %9 = vector.shape_cast %8 : vector<512x8xf32> to vector<8x4x16x8xf32>
    %10 = tpu.iota {dimensions = array<i32: 0>} : vector<16x1xi32>
    %c4_i32 = arith.constant 4 : i32
    %c0_i32 = arith.constant 0 : i32
    %11 = arith.cmpi eq, %c4_i32, %c0_i32 : i32
    %c1_i32 = arith.constant 1 : i32
    %12 = arith.select %11, %c1_i32, %c4_i32 : i32
    %13 = vector.broadcast %12 : i32 to vector<16x1xi32>
    %14 = arith.remsi %10, %13 : vector<16x1xi32>
    %c0_i32_7 = arith.constant 0 : i32
    %15 = vector.broadcast %c0_i32_7 : i32 to vector<16x1xi32>
    %16 = arith.cmpi ne, %14, %15 : vector<16x1xi32>
    %c0_i32_8 = arith.constant 0 : i32
    %17 = vector.broadcast %c0_i32_8 : i32 to vector<16x1xi32>
    %18 = arith.cmpi slt, %14, %17 : vector<16x1xi32>
    %c0_i32_9 = arith.constant 0 : i32
    %19 = arith.cmpi slt, %12, %c0_i32_9 : i32
    %20 = vector.broadcast %19 : i1 to vector<16x1xi1>
    %21 = vector.broadcast %20 : vector<16x1xi1> to vector<16x1xi1>
    %22 = arith.xori %18, %21 : vector<16x1xi1>
    %23 = arith.andi %22, %16 : vector<16x1xi1>
    %24 = vector.broadcast %12 : i32 to vector<16x1xi32>
    %25 = arith.addi %14, %24 : vector<16x1xi32>
    %26 = arith.select %23, %25, %14 : vector<16x1xi1>, vector<16x1xi32>
    %c1_i32_10 = arith.constant 1 : i32
    %27 = vector.broadcast %c1_i32_10 : i32 to vector<16x1xi32>
    %28 = arith.cmpi sge, %26, %27 : vector<16x1xi32>
    %29 = arith.extui %28 : vector<16x1xi1> to vector<16x1xi32>
    %30 = arith.sitofp %29 : vector<16x1xi32> to vector<16x1xf32>
    %c2_i32 = arith.constant 2 : i32
    %31 = vector.broadcast %c2_i32 : i32 to vector<16x1xi32>
    %32 = arith.cmpi sle, %26, %31 : vector<16x1xi32>
    %33 = arith.extui %32 : vector<16x1xi1> to vector<16x1xi32>
    %34 = arith.sitofp %33 : vector<16x1xi32> to vector<16x1xf32>
    %35 = vector.extract_strided_slice %9 {offsets = [0, 3, 0, 0], sizes = [8, 1, 16, 8], strides = [1, 1, 1, 1]} : vector<8x4x16x8xf32> to vector<8x1x16x8xf32>
    %36 = vector.shape_cast %35 : vector<8x1x16x8xf32> to vector<8x16x8xf32>
    %cst_11 = arith.constant 0.000000e+00 : f32
    %37 = vector.broadcast %cst_11 : f32 to vector<8x5x8xf32>
    %38 = vector.extract_strided_slice %36 {offsets = [0, 0, 0], sizes = [8, 11, 8], strides = [1, 1, 1]} : vector<8x16x8xf32> to vector<8x11x8xf32>
    %39 = tpu.concatenate %37, %38 in 1 : vector<8x5x8xf32>, vector<8x11x8xf32> -> vector<8x16x8xf32>
    %40 = vector.shape_cast %30 : vector<16x1xf32> to vector<1x16x1xf32>
    %41 = vector.broadcast %40 : vector<1x16x1xf32> to vector<8x16x8xf32>
    %42 = arith.mulf %39, %41 : vector<8x16x8xf32>
    %43 = vector.shape_cast %42 : vector<8x16x8xf32> to vector<128x8xf32>
    %44 = vector.extract_strided_slice %9 {offsets = [0, 2, 0, 0], sizes = [8, 1, 16, 8], strides = [1, 1, 1, 1]} : vector<8x4x16x8xf32> to vector<8x1x16x8xf32>
    %45 = vector.shape_cast %44 : vector<8x1x16x8xf32> to vector<8x16x8xf32>
    %cst_12 = arith.constant 0.000000e+00 : f32
    %46 = vector.broadcast %cst_12 : f32 to vector<8x4x8xf32>
    %47 = vector.extract_strided_slice %45 {offsets = [0, 0, 0], sizes = [8, 12, 8], strides = [1, 1, 1]} : vector<8x16x8xf32> to vector<8x12x8xf32>
    %48 = tpu.concatenate %46, %47 in 1 : vector<8x4x8xf32>, vector<8x12x8xf32> -> vector<8x16x8xf32>
    %49 = vector.shape_cast %48 : vector<8x16x8xf32> to vector<128x8xf32>
    %50 = vector.extract_strided_slice %9 {offsets = [0, 3, 0, 0], sizes = [8, 1, 16, 8], strides = [1, 1, 1, 1]} : vector<8x4x16x8xf32> to vector<8x1x16x8xf32>
    %51 = vector.shape_cast %50 : vector<8x1x16x8xf32> to vector<8x16x8xf32>
    %cst_13 = arith.constant 0.000000e+00 : f32
    %52 = vector.broadcast %cst_13 : f32 to vector<8x4x8xf32>
    %53 = vector.extract_strided_slice %51 {offsets = [0, 0, 0], sizes = [8, 12, 8], strides = [1, 1, 1]} : vector<8x16x8xf32> to vector<8x12x8xf32>
    %54 = tpu.concatenate %52, %53 in 1 : vector<8x4x8xf32>, vector<8x12x8xf32> -> vector<8x16x8xf32>
    %55 = vector.shape_cast %54 : vector<8x16x8xf32> to vector<128x8xf32>
    %56 = vector.extract_strided_slice %9 {offsets = [0, 2, 0, 0], sizes = [8, 1, 16, 8], strides = [1, 1, 1, 1]} : vector<8x4x16x8xf32> to vector<8x1x16x8xf32>
    %57 = vector.shape_cast %56 : vector<8x1x16x8xf32> to vector<8x16x8xf32>
    %cst_14 = arith.constant 0.000000e+00 : f32
    %58 = vector.broadcast %cst_14 : f32 to vector<8x3x8xf32>
    %59 = vector.extract_strided_slice %57 {offsets = [0, 0, 0], sizes = [8, 13, 8], strides = [1, 1, 1]} : vector<8x16x8xf32> to vector<8x13x8xf32>
    %60 = tpu.concatenate %58, %59 in 1 : vector<8x3x8xf32>, vector<8x13x8xf32> -> vector<8x16x8xf32>
    %61 = vector.shape_cast %34 : vector<16x1xf32> to vector<1x16x1xf32>
    %62 = vector.broadcast %61 : vector<1x16x1xf32> to vector<8x16x8xf32>
    %63 = arith.mulf %60, %62 : vector<8x16x8xf32>
    %64 = vector.shape_cast %63 : vector<8x16x8xf32> to vector<128x8xf32>
    %65 = vector.extract_strided_slice %9 {offsets = [0, 1, 0, 0], sizes = [8, 1, 16, 8], strides = [1, 1, 1, 1]} : vector<8x4x16x8xf32> to vector<8x1x16x8xf32>
    %66 = vector.shape_cast %65 : vector<8x1x16x8xf32> to vector<8x16x8xf32>
    %cst_15 = arith.constant 0.000000e+00 : f32
    %67 = vector.broadcast %cst_15 : f32 to vector<8x1x8xf32>
    %68 = vector.extract_strided_slice %66 {offsets = [0, 0, 0], sizes = [8, 15, 8], strides = [1, 1, 1]} : vector<8x16x8xf32> to vector<8x15x8xf32>
    %69 = tpu.concatenate %67, %68 in 1 : vector<8x1x8xf32>, vector<8x15x8xf32> -> vector<8x16x8xf32>
    %70 = vector.shape_cast %30 : vector<16x1xf32> to vector<1x16x1xf32>
    %71 = vector.broadcast %70 : vector<1x16x1xf32> to vector<8x16x8xf32>
    %72 = arith.mulf %69, %71 : vector<8x16x8xf32>
    %73 = vector.shape_cast %72 : vector<8x16x8xf32> to vector<128x8xf32>
    %74 = vector.extract_strided_slice %9 {offsets = [0, 0, 0, 0], sizes = [8, 1, 16, 8], strides = [1, 1, 1, 1]} : vector<8x4x16x8xf32> to vector<8x1x16x8xf32>
    %75 = vector.shape_cast %74 : vector<8x1x16x8xf32> to vector<8x16x8xf32>
    %76 = vector.shape_cast %75 : vector<8x16x8xf32> to vector<128x8xf32>
    %77 = vector.extract_strided_slice %9 {offsets = [0, 1, 0, 0], sizes = [8, 1, 16, 8], strides = [1, 1, 1, 1]} : vector<8x4x16x8xf32> to vector<8x1x16x8xf32>
    %78 = vector.shape_cast %77 : vector<8x1x16x8xf32> to vector<8x16x8xf32>
    %79 = vector.shape_cast %78 : vector<8x16x8xf32> to vector<128x8xf32>
    %80 = vector.extract_strided_slice %9 {offsets = [0, 0, 0, 0], sizes = [8, 1, 16, 8], strides = [1, 1, 1, 1]} : vector<8x4x16x8xf32> to vector<8x1x16x8xf32>
    %81 = vector.shape_cast %80 : vector<8x1x16x8xf32> to vector<8x16x8xf32>
    %cst_16 = arith.constant 0.000000e+00 : f32
    %82 = vector.broadcast %cst_16 : f32 to vector<8x1x8xf32>
    %83 = vector.extract_strided_slice %81 {offsets = [0, 1, 0], sizes = [8, 15, 8], strides = [1, 1, 1]} : vector<8x16x8xf32> to vector<8x15x8xf32>
    %84 = tpu.concatenate %83, %82 in 1 : vector<8x15x8xf32>, vector<8x1x8xf32> -> vector<8x16x8xf32>
    %85 = vector.shape_cast %34 : vector<16x1xf32> to vector<1x16x1xf32>
    %86 = vector.broadcast %85 : vector<1x16x1xf32> to vector<8x16x8xf32>
    %87 = arith.mulf %84, %86 : vector<8x16x8xf32>
    %88 = vector.shape_cast %87 : vector<8x16x8xf32> to vector<128x8xf32>
    %89 = vector.extract_strided_slice %9 {offsets = [0, 3, 0, 0], sizes = [8, 1, 16, 8], strides = [1, 1, 1, 1]} : vector<8x4x16x8xf32> to vector<8x1x16x8xf32>
    %90 = vector.shape_cast %89 : vector<8x1x16x8xf32> to vector<8x16x8xf32>
    %cst_17 = arith.constant 0.000000e+00 : f32
    %91 = vector.broadcast %cst_17 : f32 to vector<8x1x8xf32>
    %92 = vector.extract_strided_slice %90 {offsets = [0, 0, 0], sizes = [8, 15, 8], strides = [1, 1, 1]} : vector<8x16x8xf32> to vector<8x15x8xf32>
    %93 = tpu.concatenate %91, %92 in 1 : vector<8x1x8xf32>, vector<8x15x8xf32> -> vector<8x16x8xf32>
    %94 = vector.shape_cast %30 : vector<16x1xf32> to vector<1x16x1xf32>
    %95 = vector.broadcast %94 : vector<1x16x1xf32> to vector<8x16x8xf32>
    %96 = arith.mulf %93, %95 : vector<8x16x8xf32>
    %97 = vector.shape_cast %96 : vector<8x16x8xf32> to vector<128x8xf32>
    %98 = vector.extract_strided_slice %9 {offsets = [0, 2, 0, 0], sizes = [8, 1, 16, 8], strides = [1, 1, 1, 1]} : vector<8x4x16x8xf32> to vector<8x1x16x8xf32>
    %99 = vector.shape_cast %98 : vector<8x1x16x8xf32> to vector<8x16x8xf32>
    %100 = vector.shape_cast %99 : vector<8x16x8xf32> to vector<128x8xf32>
    %101 = vector.extract_strided_slice %9 {offsets = [0, 3, 0, 0], sizes = [8, 1, 16, 8], strides = [1, 1, 1, 1]} : vector<8x4x16x8xf32> to vector<8x1x16x8xf32>
    %102 = vector.shape_cast %101 : vector<8x1x16x8xf32> to vector<8x16x8xf32>
    %103 = vector.shape_cast %102 : vector<8x16x8xf32> to vector<128x8xf32>
    %104 = vector.extract_strided_slice %9 {offsets = [0, 2, 0, 0], sizes = [8, 1, 16, 8], strides = [1, 1, 1, 1]} : vector<8x4x16x8xf32> to vector<8x1x16x8xf32>
    %105 = vector.shape_cast %104 : vector<8x1x16x8xf32> to vector<8x16x8xf32>
    %cst_18 = arith.constant 0.000000e+00 : f32
    %106 = vector.broadcast %cst_18 : f32 to vector<8x1x8xf32>
    %107 = vector.extract_strided_slice %105 {offsets = [0, 1, 0], sizes = [8, 15, 8], strides = [1, 1, 1]} : vector<8x16x8xf32> to vector<8x15x8xf32>
    %108 = tpu.concatenate %107, %106 in 1 : vector<8x15x8xf32>, vector<8x1x8xf32> -> vector<8x16x8xf32>
    %109 = vector.shape_cast %34 : vector<16x1xf32> to vector<1x16x1xf32>
    %110 = vector.broadcast %109 : vector<1x16x1xf32> to vector<8x16x8xf32>
    %111 = arith.mulf %108, %110 : vector<8x16x8xf32>
    %112 = vector.shape_cast %111 : vector<8x16x8xf32> to vector<128x8xf32>
    %113 = vector.extract_strided_slice %9 {offsets = [0, 1, 0, 0], sizes = [8, 1, 16, 8], strides = [1, 1, 1, 1]} : vector<8x4x16x8xf32> to vector<8x1x16x8xf32>
    %114 = vector.shape_cast %113 : vector<8x1x16x8xf32> to vector<8x16x8xf32>
    %cst_19 = arith.constant 0.000000e+00 : f32
    %115 = vector.broadcast %cst_19 : f32 to vector<8x3x8xf32>
    %116 = vector.extract_strided_slice %114 {offsets = [0, 3, 0], sizes = [8, 13, 8], strides = [1, 1, 1]} : vector<8x16x8xf32> to vector<8x13x8xf32>
    %117 = tpu.concatenate %116, %115 in 1 : vector<8x13x8xf32>, vector<8x3x8xf32> -> vector<8x16x8xf32>
    %118 = vector.shape_cast %30 : vector<16x1xf32> to vector<1x16x1xf32>
    %119 = vector.broadcast %118 : vector<1x16x1xf32> to vector<8x16x8xf32>
    %120 = arith.mulf %117, %119 : vector<8x16x8xf32>
    %121 = vector.shape_cast %120 : vector<8x16x8xf32> to vector<128x8xf32>
    %122 = vector.extract_strided_slice %9 {offsets = [0, 0, 0, 0], sizes = [8, 1, 16, 8], strides = [1, 1, 1, 1]} : vector<8x4x16x8xf32> to vector<8x1x16x8xf32>
    %123 = vector.shape_cast %122 : vector<8x1x16x8xf32> to vector<8x16x8xf32>
    %cst_20 = arith.constant 0.000000e+00 : f32
    %124 = vector.broadcast %cst_20 : f32 to vector<8x4x8xf32>
    %125 = vector.extract_strided_slice %123 {offsets = [0, 4, 0], sizes = [8, 12, 8], strides = [1, 1, 1]} : vector<8x16x8xf32> to vector<8x12x8xf32>
    %126 = tpu.concatenate %125, %124 in 1 : vector<8x12x8xf32>, vector<8x4x8xf32> -> vector<8x16x8xf32>
    %127 = vector.shape_cast %126 : vector<8x16x8xf32> to vector<128x8xf32>
    %128 = vector.extract_strided_slice %9 {offsets = [0, 1, 0, 0], sizes = [8, 1, 16, 8], strides = [1, 1, 1, 1]} : vector<8x4x16x8xf32> to vector<8x1x16x8xf32>
    %129 = vector.shape_cast %128 : vector<8x1x16x8xf32> to vector<8x16x8xf32>
    %cst_21 = arith.constant 0.000000e+00 : f32
    %130 = vector.broadcast %cst_21 : f32 to vector<8x4x8xf32>
    %131 = vector.extract_strided_slice %129 {offsets = [0, 4, 0], sizes = [8, 12, 8], strides = [1, 1, 1]} : vector<8x16x8xf32> to vector<8x12x8xf32>
    %132 = tpu.concatenate %131, %130 in 1 : vector<8x12x8xf32>, vector<8x4x8xf32> -> vector<8x16x8xf32>
    %133 = vector.shape_cast %132 : vector<8x16x8xf32> to vector<128x8xf32>
    %134 = vector.extract_strided_slice %9 {offsets = [0, 0, 0, 0], sizes = [8, 1, 16, 8], strides = [1, 1, 1, 1]} : vector<8x4x16x8xf32> to vector<8x1x16x8xf32>
    %135 = vector.shape_cast %134 : vector<8x1x16x8xf32> to vector<8x16x8xf32>
    %cst_22 = arith.constant 0.000000e+00 : f32
    %136 = vector.broadcast %cst_22 : f32 to vector<8x5x8xf32>
    %137 = vector.extract_strided_slice %135 {offsets = [0, 5, 0], sizes = [8, 11, 8], strides = [1, 1, 1]} : vector<8x16x8xf32> to vector<8x11x8xf32>
    %138 = tpu.concatenate %137, %136 in 1 : vector<8x11x8xf32>, vector<8x5x8xf32> -> vector<8x16x8xf32>
    %139 = vector.shape_cast %34 : vector<16x1xf32> to vector<1x16x1xf32>
    %140 = vector.broadcast %139 : vector<1x16x1xf32> to vector<8x16x8xf32>
    %141 = arith.mulf %138, %140 : vector<8x16x8xf32>
    %142 = vector.shape_cast %141 : vector<8x16x8xf32> to vector<128x8xf32>
    %143 = tpu.concatenate %43, %49, %55, %64, %73, %76, %79, %88, %97, %100, %103, %112, %121, %127, %133, %142 in 1 : vector<128x8xf32>, vector<128x8xf32>, vector<128x8xf32>, vector<128x8xf32>, vector<128x8xf32>, vector<128x8xf32>, vector<128x8xf32>, vector<128x8xf32>, vector<128x8xf32>, vector<128x8xf32>, vector<128x8xf32>, vector<128x8xf32>, vector<128x8xf32>, vector<128x8xf32>, vector<128x8xf32>, vector<128x8xf32> -> vector<128x128xf32>
    %144 = arith.truncf %143 : vector<128x128xf32> to vector<128x128xbf16>
    %c0_23 = arith.constant 0 : index
    %c0_24 = arith.constant 0 : index
    %145 = vector.load %arg5[%c0_23, %c0_24] : memref<128x16xbf16, #tpu.memory_space<vmem>>, vector<128x16xbf16>
    %cst_25 = arith.constant dense<0.000000e+00> : vector<128x16xf32>
    %146 = tpu.matmul %144, %145, %cst_25 {dimension_numbers = #tpu.dot_dimension_numbers<[1], [0], [0], [1], [0, 0, 1, 1], [], []>} : vector<128x128xbf16>, vector<128x16xbf16>, vector<128x16xf32> -> vector<128x16xf32>
    %c0_26 = arith.constant 0 : index
    %c0_27 = arith.constant 0 : index
    %147 = vector.load %arg6[%c0_26, %c0_27] : memref<1x16xf32, #tpu.memory_space<vmem>>, vector<1x16xf32>
    %148 = vector.broadcast %147 : vector<1x16xf32> to vector<128x16xf32>
    %149 = arith.addf %146, %148 : vector<128x16xf32>
    %cst_28 = arith.constant 0.000000e+00 : f32
    %150 = vector.broadcast %cst_28 : f32 to vector<128x16xf32>
    %151 = arith.maximumf %149, %150 : vector<128x16xf32>
    %152 = vector.shape_cast %151 : vector<128x16xf32> to vector<8x16x16xf32>
    %cst_29 = arith.constant dense<0.000000e+00> : vector<8x16xf32>
    %153 = vector.multi_reduction <add>, %152, %cst_29 [1] : vector<8x16x16xf32> to vector<8x16xf32>
    %cst_30 = arith.constant 1.600000e+01 : f32
    %154 = vector.broadcast %cst_30 : f32 to vector<8x16xf32>
    %155 = arith.divf %153, %154 : vector<8x16xf32>
    %156 = arith.truncf %155 : vector<8x16xf32> to vector<8x16xbf16>
    %c0_31 = arith.constant 0 : index
    %c0_32 = arith.constant 0 : index
    %157 = vector.load %arg7[%c0_31, %c0_32] : memref<16x1024xbf16, #tpu.memory_space<vmem>>, vector<16x1024xbf16>
    %cst_33 = arith.constant dense<0.000000e+00> : vector<8x1024xf32>
    %158 = tpu.matmul %156, %157, %cst_33 {dimension_numbers = #tpu.dot_dimension_numbers<[1], [0], [0], [1], [0, 0, 1, 1], [], []>} : vector<8x16xbf16>, vector<16x1024xbf16>, vector<8x1024xf32> -> vector<8x1024xf32>
    %c0_34 = arith.constant 0 : index
    %c0_35 = arith.constant 0 : index
    %159 = vector.load %arg8[%c0_34, %c0_35] : memref<1x1024xf32, #tpu.memory_space<vmem>>, vector<1x1024xf32>
    %160 = vector.broadcast %159 : vector<1x1024xf32> to vector<8x1024xf32>
    %161 = arith.addf %158, %160 : vector<8x1024xf32>
    %162 = arith.truncf %161 : vector<8x1024xf32> to vector<8x1024xbf16>
    %c0_36 = arith.constant 0 : index
    %c0_37 = arith.constant 0 : index
    %163 = vector.load %arg9[%c0_36, %c0_37] : memref<1024x128xbf16, #tpu.memory_space<vmem>>, vector<1024x128xbf16>
    %cst_38 = arith.constant dense<0.000000e+00> : vector<8x128xf32>
    %164 = tpu.matmul %162, %163, %cst_38 {dimension_numbers = #tpu.dot_dimension_numbers<[1], [0], [0], [1], [0, 0, 1, 1], [], []>} : vector<8x1024xbf16>, vector<1024x128xbf16>, vector<8x128xf32> -> vector<8x128xf32>
    %c0_39 = arith.constant 0 : index
    %c0_40 = arith.constant 0 : index
    %165 = vector.load %arg10[%c0_39, %c0_40] : memref<1x128xf32, #tpu.memory_space<vmem>>, vector<1x128xf32>
    %166 = vector.broadcast %165 : vector<1x128xf32> to vector<8x128xf32>
    %167 = arith.addf %164, %166 : vector<8x128xf32>
    %168 = tpu.iota {dimensions = array<i32: 1>} : vector<1x128xi32>
    %c10_i32 = arith.constant 10 : i32
    %169 = vector.broadcast %c10_i32 : i32 to vector<1x128xi32>
    %170 = arith.cmpi slt, %168, %169 : vector<1x128xi32>
    %cst_41 = arith.constant 0.000000e+00 : f32
    %cst_42 = arith.constant -1.000000e+09 : f32
    %171 = vector.broadcast %cst_41 : f32 to vector<1x128xf32>
    %172 = vector.broadcast %cst_42 : f32 to vector<1x128xf32>
    %173 = arith.select %170, %171, %172 : vector<1x128xi1>, vector<1x128xf32>
    %174 = vector.broadcast %173 : vector<1x128xf32> to vector<8x128xf32>
    %175 = arith.addf %167, %174 : vector<8x128xf32>
    %cst_43 = arith.constant dense<0xFF800000> : vector<8xf32>
    %176 = vector.multi_reduction <maximumf>, %175, %cst_43 [1] : vector<8x128xf32> to vector<8xf32>
    %177 = vector.shape_cast %176 : vector<8xf32> to vector<8x1xf32>
    %178 = vector.broadcast %177 : vector<8x1xf32> to vector<8x128xf32>
    %179 = arith.subf %175, %178 : vector<8x128xf32>
    %180 = math.exp %179 : vector<8x128xf32>
    %cst_44 = arith.constant dense<0.000000e+00> : vector<8xf32>
    %181 = vector.multi_reduction <add>, %180, %cst_44 [1] : vector<8x128xf32> to vector<8xf32>
    %182 = vector.shape_cast %181 : vector<8xf32> to vector<8x1xf32>
    %183 = math.log %182 : vector<8x1xf32>
    %184 = arith.addf %177, %183 : vector<8x1xf32>
    %c0_45 = arith.constant 0 : index
    %c0_46 = arith.constant 0 : index
    %185 = vector.load %arg2[%c0_45, %c0_46] : memref<8x128xf32, #tpu.memory_space<vmem>>, vector<8x128xf32>
    %186 = arith.mulf %167, %185 : vector<8x128xf32>
    %cst_47 = arith.constant dense<0.000000e+00> : vector<8xf32>
    %187 = vector.multi_reduction <add>, %186, %cst_47 [1] : vector<8x128xf32> to vector<8xf32>
    %188 = vector.shape_cast %187 : vector<8xf32> to vector<8x1xf32>
    %189 = arith.subf %184, %188 : vector<8x1xf32>
    %c127_i32 = arith.constant 127 : i32
    %190 = vector.broadcast %c127_i32 : i32 to vector<1x128xi32>
    %191 = arith.cmpi eq, %168, %190 : vector<1x128xi32>
    %192 = vector.shape_cast %191 : vector<1x128xi1> to vector<1x128xi1>
    %193 = vector.broadcast %192 : vector<1x128xi1> to vector<8x128xi1>
    %194 = vector.shape_cast %189 : vector<8x1xf32> to vector<8x1xf32>
    %195 = vector.broadcast %194 : vector<8x1xf32> to vector<8x128xf32>
    %196 = arith.select %193, %195, %167 : vector<8x128xi1>, vector<8x128xf32>
    %c0_48 = arith.constant 0 : index
    %c0_49 = arith.constant 0 : index
    %197 = vector.load %arg11[%c0_48, %c0_49] : memref<8x128xf32, #tpu.memory_space<vmem>>, vector<8x128xf32>
    tpu.vector_store %arg11[%c0_48, %c0_49], %196 {strides = array<i32>} : memref<8x128xf32, #tpu.memory_space<vmem>>, vector<8x128xf32>,
    return
  }
  func.func @transform_0(%arg0: i32) -> (i32, i32, i32) {
    %c0_i32 = arith.constant 0 : i32
    %c0_i32_0 = arith.constant 0 : i32
    %c0_i32_1 = arith.constant 0 : i32
    return %arg0, %c0_i32, %c0_i32_0 : i32, i32, i32
  }
  func.func @transform_1(%arg0: i32) -> (i32, i32) {
    %c0_i32 = arith.constant 0 : i32
    %c0_i32_0 = arith.constant 0 : i32
    return %arg0, %c0_i32 : i32, i32
  }
  func.func @transform_2(%arg0: i32) -> (i32, i32) {
    %c0_i32 = arith.constant 0 : i32
    %c0_i32_0 = arith.constant 0 : i32
    %c0_i32_1 = arith.constant 0 : i32
    return %c0_i32, %c0_i32_0 : i32, i32
  }
  func.func @transform_3(%arg0: i32) -> (i32, i32) {
    %c0_i32 = arith.constant 0 : i32
    %c0_i32_0 = arith.constant 0 : i32
    %c0_i32_1 = arith.constant 0 : i32
    return %c0_i32, %c0_i32_0 : i32, i32
  }
  func.func @transform_4(%arg0: i32) -> (i32, i32) {
    %c0_i32 = arith.constant 0 : i32
    %c0_i32_0 = arith.constant 0 : i32
    %c0_i32_1 = arith.constant 0 : i32
    return %c0_i32, %c0_i32_0 : i32, i32
  }
  func.func @transform_5(%arg0: i32) -> (i32, i32) {
    %c0_i32 = arith.constant 0 : i32
    %c0_i32_0 = arith.constant 0 : i32
    %c0_i32_1 = arith.constant 0 : i32
    return %c0_i32, %c0_i32_0 : i32, i32
  }
  func.func @transform_6(%arg0: i32) -> (i32, i32) {
    %c0_i32 = arith.constant 0 : i32
    %c0_i32_0 = arith.constant 0 : i32
    %c0_i32_1 = arith.constant 0 : i32
    return %c0_i32, %c0_i32_0 : i32, i32
  }
  func.func @transform_7(%arg0: i32) -> (i32, i32) {
    %c0_i32 = arith.constant 0 : i32
    %c0_i32_0 = arith.constant 0 : i32
    %c0_i32_1 = arith.constant 0 : i32
    return %c0_i32, %c0_i32_0 : i32, i32
  }
  func.func @transform_8(%arg0: i32) -> (i32, i32) {
    %c0_i32 = arith.constant 0 : i32
    %c0_i32_0 = arith.constant 0 : i32
    %c0_i32_1 = arith.constant 0 : i32
    return %c0_i32, %c0_i32_0 : i32, i32
  }
  func.func @transform_9(%arg0: i32) -> (i32, i32) {
    %c0_i32 = arith.constant 0 : i32
    %c0_i32_0 = arith.constant 0 : i32
    %c0_i32_1 = arith.constant 0 : i32
    return %c0_i32, %c0_i32_0 : i32, i32
  }
  func.func @transform_10(%arg0: i32) -> (i32, i32) {
    %c0_i32 = arith.constant 0 : i32
    %c0_i32_0 = arith.constant 0 : i32
    return %arg0, %c0_i32 : i32, i32
  }
}

</mosaic_0001>

<bundles_post_ra>
// kernel: ac_crop_discriminator_forward.2
= control target key start
LH: loop header
LB: loop body
LE: loop exit
PB: predicated region body
PF: predicated region fallthrough
CT: control target
= control target key end

     0   :  { %s616_s0 = inlined_call_operand.vmem [shape: s32[5], index: 0, kind: input, shape index: {}]   ;;  %s617_s1 = inlined_call_operand.vmem [shape: bf16[2,16,48], index: 1, kind: input, shape index: {}]   ;;  %s618_s2 = inlined_call_operand.vmem [shape: bf16[5,18,16], index: 2, kind: input, shape index: {}]   ;;  %s619_s3 = inlined_call_operand.vmem [shape: bf16[5,48,54], index: 3, kind: input, shape index: {}]   ;;  %s620_s4 = inlined_call_operand.vmem [shape: bf16[5,18,54], index: 4, kind: output, shape index: {}]  }
   0x1   :  { %s9_s17 = sshll.u32 %s616_s0, 4  ;;  %s10_s17 = int_to_ptr.vmem [resolvable:$true] %s9_s17 }
   0x2   :  { %s536_s18 = scalar_lea.vmem %s10_s17, 16  ;;  %p541_p1 = scmp.lt.s32.totalorder %s10_s17, %s10_s17 }
   0x3   :  { %p537_p0 = scmp.ne.s32.totalorder %s10_s17, %s536_s18  ;;  %p542_p2 = scmp.lt.s32.totalorder %s536_s18, %s536_s18 }
   0x5   :  { %p543_p3 = por %p542_p2, %p541_p1 }
   0x7   :  { %p544_p4 = pnand %p543_p3, %p537_p0 }
   0x9   :  { %547 = shalt.err (!%p544_p4)  }
   0xa   :  { %s558_s19 = smov [#allocation3]  }
   0xb   :  { %12 = dma.vmem_to_smem %s10_s17, 16, %s558_s19, [#allocation2] }
   0xc   :  { %552 = dma.done.wait [#allocation2], 16 }
   0xd   :  { %553 = vsyncadd [#allocation2], 4294967280 }
   0xe   :  { %14 = sfence }
   0xf   :  { %s589_s20 = smov 0  }
  0x10 LB: > { %s466_s0 = sadd.s32 4294967295, %s556_s20   ;;  %p470_p5 = scmp.ge.s32.totalorder %s556_s20, 1  ;;  %s556_s20 = sphi %s589_s20, %s20_s20  }
  0x11   : > { %p168_p6 = scmp.lt.s32.totalorder %s556_s20, 6 }
  0x13   : > { %p169_p7 = pnand %p470_p5, %p168_p6 }
  0x14   : > { %p210_p8 = scmp.lt.s32.totalorder (!%p169_p7), %s466_s0, 4  ;;  %s203_s21 = sld [smem:[#allocation3 + %s466_s0]] (!%p169_p7) }
  0x15   : > { %172 = sbr.rel (%p169_p7) target bundleno = 447 (0x1bf), region = 32 }
  0x1a   : > { %v559_v0 = vmov 0.0   ;;  %vm560_vm0 = vmmov 0   ;;  %s622_s0 = smov (!%p210_p8, %s466_s0), 4  ;;  %p204_p9 = scmp.lt.s32.totalorder %s203_s21, 1  ;;  %vm257_vm1 = vcmask 392192   ;;  %vm314_vm2 = vcmask 130048  }
  0x1b   : > { %501 = vmatprep.subr.bf16.mxu0 %v559_v0  ;;  %507 = vmatprep.mubr.msk.bf16.mxu0 %vm560_vm0, %v559_v0  ;;  %s518_s22 = smul.u32 24, %s622_s0  ;;  %vm385_vm3 = vcmask 434176   ;;  %vm382_vm4 = vcmask 437248  }
  0x1c   : > { %s624_s21 = smov (!%p204_p9, %s203_s21), 1  ;;  %s517_s30 = smul.u32 12, %s622_s0 }
  0x1d   : > { %s219_s25 = scalar_lea.vmem %s619_s3, %s518_s22  ;;  %s490_s26 = sshll.u32 %s624_s21, 3 }
  0x1e   : > { %v530_v1 = vld [vmem:[%s219_s25 + $0x10] sm:$0xff]   ;;  %v531_v2 = vld [vmem:[%s219_s25 + $0x8] sm:$0xff]   ;;  %s208_s29 = scalar_lea.vmem %s617_s1, %s490_s26  ;;  %v532_v3 = vld [vmem:[%s219_s25] sm:$0xff]   ;;  %s214_s7 = scalar_lea.vmem %s618_s2, %s517_s30 }
  0x1f   : > { %502 = vmatpush3.bf16.msra.mxu0 %v530_v1  ;;  %v533_v4 = vld [vmem:[%s208_s29] sm:$0xff]   ;;  %v535_v11 = vld [vmem:[%s214_s7 + $0x8] ss:$0 sps:$4 sm:$0x11]   ;;  %s224_s10 = scalar_lea.vmem %s620_s4, %s517_s30 }
  0x20   : > { %503 = vmatprep.subr.bf16.mxu0 %v559_v0  ;;  %v534_v5 = vld [vmem:[%s214_s7] sm:$0xff]  }
  0x21   : > { %513 = vmatprep.mubr.msk.bf16.mxu1 %vm314_vm2, %v534_v5 }
  0x23   : > { %504 = vmatpush3.bf16.msra.mxu0 %v531_v2 }
  0x24   : > { %505 = vmatprep.subr.bf16.mxu0 %v559_v0 }
  0x27   : > { %506 = vmatpush3.bf16.msra.mxu0 %v532_v3 }
  0x2a   : > { %508 = vmatmul.mubr.msk.bf16.vlgmr.msra.gmra.mxu0 %vm257_vm1, %v533_v4 }
  0xea   : > { %v295_v6 = vpop.f32.mrf.mxu0 }
  0xec   : > { %v509_v7 = vpop.f32.mrf.mxu0 }
  0xee   : > { %v298_v8 = vpop.f32.mrf.mxu0 }
  0xef   : > { %v305_v9 = vpack.c.bf16 %v298_v8, %v295_v6 }
  0xf0   : > { %v510_v10 = vpop.f32.mrf.mxu0 }
  0xf1   : > { %511 = vmatprep.subr.bf16.mxu1 %v305_v9 }
  0xf2   : > { %512 = vmatpush3.bf16.msra.mxu1 %v305_v9 }
  0xf5   : > { %514 = vmatmul.mubr.msk.bf16.vlgmr.msra.gmra.mxu1 %vm314_vm2, %v535_v11 }
 0x1b5   : > { %v515_v12 = vpop.f32.mrf.mxu1 }
 0x1b6   : > { %v493_v13 = vpack.c.bf16 %v515_v12, %v515_v12 }
 0x1b7   : > { %v355_v14 = vpop.f32.mrf.mxu1 }
 0x1b8   : > { %386 = vst.msk [vmem:[%s224_s10 + $0x8] sm:$0x1] %vm385_vm3, %v493_v13  ;;  %v491_v15 = vpack.c.bf16 %v355_v14, %v355_v14 }
 0x1b9   : > { %v516_v16 = vpop.f32.mrf.mxu1 }
 0x1ba   : > { %383 = vst.msk [vmem:[%s224_s10] sm:$0xf] %vm382_vm4, %v491_v15 }
 0x1bb   : > { %v358_v17 = vpop.f32.mrf.mxu1 }
 0x1bc   : > { %v492_v18 = vpack.c.bf16 %v358_v17, %v358_v17 }
 0x1be   : > { %384 = vst.msk [vmem:[%s224_s10 + $0x4] sm:$0xf] %vm382_vm4, %v492_v18 }
 0x1bf PF: > { %s20_s20 = sadd.s32 1, %s556_s20  }
 0x1c0   : > { %p17_p10 = scmp.ge.s32.totalorder %s20_s20, 7  }
 0x1c2   :  { %19 = sbr.rel (!%p17_p10) target bundleno = 16 (0x10), region = 68 }

// kernel: ac_crop_discriminator_forward.3
= control target key start
LH: loop header
LB: loop body
LE: loop exit
PB: predicated region body
PF: predicated region fallthrough
CT: control target
= control target key end

     0   :  { %vm291_vm0 = vcmask 392192   ;;  %v7841_v35 = vlaneseq  ;;  %v5054_v48 = vmov 0.0   ;;  %vm7856_vm3 = vcmask 1044480   ;;  %s5056_s22 = smov 112   ;;  %s5057_s23 = smov 40   ;;  %s7830_s2 = inlined_call_operand.vmem [shape: bf16[48,8], index: 2, kind: input, shape index: {}]   ;;  %s7831_s0 = inlined_call_operand.vmem [shape: bf16[8,64,48], index: 0, kind: input, shape index: {}]   ;;  %s7832_s3 = inlined_call_operand.vmem [shape: f32[1,8], index: 3, kind: input, shape index: {}]   ;;  %s7833_s4 = inlined_call_operand.vmem [shape: bf16[128,16], index: 4, kind: input, shape index: {}]   ;;  %s7834_s6 = inlined_call_operand.vmem [shape: bf16[16,1024], index: 6, kind: input, shape index: {}]   ;;  %s7835_s8 = inlined_call_operand.vmem [shape: bf16[1024,128], index: 8, kind: input, shape index: {}]   ;;  %s7836_s5 = inlined_call_operand.vmem [shape: f32[1,16], index: 5, kind: input, shape index: {}]   ;;  %s7837_s7 = inlined_call_operand.vmem [shape: f32[1,1024], index: 7, kind: input, shape index: {}]   ;;  %s7838_s9 = inlined_call_operand.vmem [shape: f32[1,128], index: 9, kind: input, shape index: {}]   ;;  %s7839_s1 = inlined_call_operand.vmem [shape: f32[8,128], index: 1, kind: input, shape index: {}]   ;;  %s7840_s10 = inlined_call_operand.vmem [shape: f32[8,128], index: 10, kind: output, shape index: {}]  }
   0x1   :  { %v4941_v0 = vld [vmem:[%s7830_s2 + $0x10] sm:$0xff]   ;;  %v4942_v1 = vld [vmem:[%s7830_s2 + $0x8] sm:$0xff]   ;;  %v4944_v2 = vld [vmem:[%s7831_s0] sm:$0xff]   ;;  %vm1039_vm4 = vcmask 1040384   ;;  %vm7861_vm5 = vcmask 1043456   ;;  %vm7860_vm8 = vcmask 1046528  }
   0x2   :  { %4221 = vmatprep.subr.bf16.mxu0 %v4941_v0  ;;  %v4943_v3 = vld [vmem:[%s7830_s2] sm:$0xff]   ;;  %4227 = vmatprep.mubr.msk.bf16.mxu0 %vm291_vm0, %v4944_v2  ;;  %v4945_v4 = vld [vmem:[%s7831_s0 + $0x8] sm:$0xff]   ;;  %v4946_v5 = vld [vmem:[%s7831_s0 + $0x10] sm:$0xff]   ;;  %v5265_v36 = vshrl.u32 %v7841_v35, 7  ;;  %s5058_s24 = smov 96   ;;  %vm7864_vm9 = vcmask 1042432  }
   0x3   :  { %4222 = vmatpush3.bf16.msra.mxu0 %v4941_v0  ;;  %v4947_v6 = vld [vmem:[%s7831_s0 + $0x18] sm:$0xff]   ;;  %v4948_v7 = vld [vmem:[%s7831_s0 + $0x20] sm:$0xff]   ;;  %v4949_v8 = vld [vmem:[%s7831_s0 + $0x28] sm:$0xff]   ;;  %s5059_s25 = smov 32   ;;  %s5060_s26 = smov 104   ;;  %vm7859_vm10 = vcmask 64512  }
   0x4   :  { %4223 = vmatprep.subr.bf16.mxu0 %v4942_v1  ;;  %v4950_v9 = vld [vmem:[%s7831_s0 + $0x30] sm:$0xff]   ;;  %v4951_v10 = vld [vmem:[%s7831_s0 + $0x38] sm:$0xff]   ;;  %v4952_v11 = vld [vmem:[%s7831_s0 + $0x40] sm:$0xff]   ;;  %7881 = vst [vmem:[#allocation2_spill] sm:$0xff] %v5265_v36  ;;  %v743_v37 = vadd.s32 8, %v5265_v36  ;;  %v748_v39 = vand.u32 3, %v5265_v36 }
   0x5   :  { %v4953_v12 = vld [vmem:[%s7831_s0 + $0x48] sm:$0xff]   ;;  %v4954_v13 = vld [vmem:[%s7831_s0 + $0x50] sm:$0xff]   ;;  %v4955_v14 = vld [vmem:[%s7831_s0 + $0x58] sm:$0xff]   ;;  %s5061_s2 = smov 56   ;;  %s5062_s27 = smov 120   ;;  %vm2402_vm11 = vcmask 130048  }
   0x6   :  { %v4956_v15 = vld [vmem:[%s7831_s0 + $0x60] sm:$0xff]   ;;  %v4957_v16 = vld [vmem:[%s7831_s0 + $0x68] sm:$0xff]   ;;  %v4958_v17 = vld [vmem:[%s7831_s0 + $0x70] sm:$0xff]   ;;  %v755_v42 = vand.u32 3, %v743_v37  ;;  %vm768_vm1 = vcmp.ge.s32.totalorder %v748_v39, 1  ;;  %vm5282_vm6 = vcmp.le.s32.totalorder %v748_v39, 2 }
   0x7   :  { %4224 = vmatpush3.bf16.msra.mxu0 %v4942_v1  ;;  %v4959_v18 = vld [vmem:[%s7831_s0 + $0x78] sm:$0xff]   ;;  %v4960_v19 = vld [vmem:[%s7831_s0 + $0x80] sm:$0xff]   ;;  %v4961_v20 = vld [vmem:[%s7831_s0 + $0x88] sm:$0xff]   ;;  %v5276_v49 = vsel %vm768_vm1, 1.0, %v5054_v48  ;;  %s5063_s28 = smov 8   ;;  %s5064_s29 = smov 80  }
   0x8   :  { %4225 = vmatprep.subr.bf16.mxu0 %v4943_v3  ;;  %v4962_v21 = vld [vmem:[%s7831_s0 + $0x90] sm:$0xff]   ;;  %v4963_v22 = vld [vmem:[%s7831_s0 + $0x98] sm:$0xff]   ;;  %v4964_v23 = vld [vmem:[%s7831_s0 + $0xa0] sm:$0xff]   ;;  %vm769_vm2 = vcmp.ge.s32.totalorder %v755_v42, 1  ;;  %7882 = vst [vmem:[#allocation3_spill] sm:$0xff] %v5276_v49  ;;  %vm5293_vm7 = vcmp.le.s32.totalorder %v755_v42, 2 }
   0x9   :  { %v4965_v24 = vld [vmem:[%s7831_s0 + $0xa8] sm:$0xff]   ;;  %v4966_v25 = vld [vmem:[%s7831_s0 + $0xb0] sm:$0xff]   ;;  %v4967_v26 = vld [vmem:[%s7831_s0 + $0xb8] sm:$0xff]   ;;  %v5280_v54 = vsel %vm769_vm2, 1.0, %v5054_v48  ;;  %s5065_s30 = smov 64   ;;  %s5066_s11 = smov 72  }
   0xa   :  { %v4968_v27 = vld [vmem:[%s7831_s0 + $0xc0] sm:$0xff]   ;;  %v4969_v28 = vld [vmem:[%s7831_s0 + $0xc8] sm:$0xff]   ;;  %v4970_v29 = vld [vmem:[%s7831_s0 + $0xd0] sm:$0xff]   ;;  %s5067_s12 = smov 24   ;;  %s5068_s13 = smov 16   ;;  %vm2419_vm12 = vcmask 195584  }
   0xb   :  { %4226 = vmatpush3.bf16.msra.mxu0 %v4943_v3  ;;  %v4971_v30 = vld [vmem:[%s7831_s0 + $0xd8] sm:$0xff]   ;;  %v4972_v31 = vld [vmem:[%s7831_s0 + $0xe0] sm:$0xff]   ;;  %v4973_v32 = vld [vmem:[%s7831_s0 + $0xe8] sm:$0xff]   ;;  %s5069_s16 = smov 88   ;;  %vm2436_vm13 = vcmask 261120   ;;  %vm2453_vm14 = vcmask 326656  }
   0xc   :  { %v4974_v33 = vld [vmem:[%s7831_s0 + $0xf0] sm:$0xff]   ;;  %v4975_v34 = vld [vmem:[%s7831_s0 + $0xf8] sm:$0xff]   ;;  %v5271_v38 = vld [vmem:[%s7832_s3] ss:$0 sm:$0xff]  ;;  %s5055_s0 = smov 48   ;;  %vm2486_vm15 = vcmask 457728  }
   0xd   :  { %vm2503_vm1 = vcmask 523264   ;;  %vm2520_vm2 = vcmask 588800  }
   0xe   :  { %4228 = vmatmul.mubr.msk.bf16.vlgmr.msra.gmra.mxu0 %vm291_vm0, %v4945_v4 }
   0xf   :  { %4231 = vmatprep.mubr.msk.bf16.mxu0 %vm291_vm0, %v4946_v5 }
  0x16   :  { %4232 = vmatmul.mubr.msk.bf16.gmra.mxu0 %vm291_vm0, %v4947_v6 }
  0x17   :  { %4235 = vmatprep.mubr.msk.bf16.mxu0 %vm291_vm0, %v4948_v7 }
  0x1e   :  { %4236 = vmatmul.mubr.msk.bf16.gmra.mxu0 %vm291_vm0, %v4949_v8 }
  0x1f   :  { %4239 = vmatprep.mubr.msk.bf16.mxu0 %vm291_vm0, %v4950_v9 }
  0x26   :  { %4240 = vmatmul.mubr.msk.bf16.gmra.mxu0 %vm291_vm0, %v4951_v10 }
  0x27   :  { %4243 = vmatprep.mubr.msk.bf16.mxu0 %vm291_vm0, %v4952_v11 }
  0x2e   :  { %4244 = vmatmul.mubr.msk.bf16.gmra.mxu0 %vm291_vm0, %v4953_v12 }
  0x2f   :  { %4247 = vmatprep.mubr.msk.bf16.mxu0 %vm291_vm0, %v4954_v13 }
  0x36   :  { %4248 = vmatmul.mubr.msk.bf16.gmra.mxu0 %vm291_vm0, %v4955_v14 }
  0x37   :  { %4251 = vmatprep.mubr.msk.bf16.mxu0 %vm291_vm0, %v4956_v15 }
  0x3e   :  { %4252 = vmatmul.mubr.msk.bf16.gmra.mxu0 %vm291_vm0, %v4957_v16 }
  0x3f   :  { %4255 = vmatprep.mubr.msk.bf16.mxu0 %vm291_vm0, %v4958_v17 }
  0x46   :  { %4256 = vmatmul.mubr.msk.bf16.gmra.mxu0 %vm291_vm0, %v4959_v18 }
  0x47   :  { %4259 = vmatprep.mubr.msk.bf16.mxu0 %vm291_vm0, %v4960_v19 }
  0x4e   :  { %4260 = vmatmul.mubr.msk.bf16.gmra.mxu0 %vm291_vm0, %v4961_v20 }
  0x4f   :  { %4263 = vmatprep.mubr.msk.bf16.mxu0 %vm291_vm0, %v4962_v21  ;;  %v5315_v21 = vsel %vm5282_vm6, 1.0, %v5054_v48  ;;  %vm2537_vm6 = vcmask 654336  }
  0x56   :  { %4264 = vmatmul.mubr.msk.bf16.gmra.mxu0 %vm291_vm0, %v4963_v22 }
  0x57   :  { %4267 = vmatprep.mubr.msk.bf16.mxu0 %vm291_vm0, %v4964_v23 }
  0x5e   :  { %4268 = vmatmul.mubr.msk.bf16.gmra.mxu0 %vm291_vm0, %v4965_v24 }
  0x5f   :  { %4271 = vmatprep.mubr.msk.bf16.mxu0 %vm291_vm0, %v4966_v25 }
  0x66   :  { %4272 = vmatmul.mubr.msk.bf16.gmra.mxu0 %vm291_vm0, %v4967_v26 }
  0x67   :  { %4275 = vmatprep.mubr.msk.bf16.mxu0 %vm291_vm0, %v4968_v27 }
  0x6e   :  { %4276 = vmatmul.mubr.msk.bf16.gmra.mxu0 %vm291_vm0, %v4969_v28 }
  0x6f   :  { %4279 = vmatprep.mubr.msk.bf16.mxu0 %vm291_vm0, %v4970_v29 }
  0x76   :  { %4280 = vmatmul.mubr.msk.bf16.gmra.mxu0 %vm291_vm0, %v4971_v30 }
  0x77   :  { %4283 = vmatprep.mubr.msk.bf16.mxu0 %vm291_vm0, %v4972_v31 }
  0x7e   :  { %4284 = vmatmul.mubr.msk.bf16.gmra.mxu0 %vm291_vm0, %v4973_v32 }
  0x7f   :  { %4287 = vmatprep.mubr.msk.bf16.mxu0 %vm291_vm0, %v4974_v33 }
  0x86   :  { %4288 = vmatmul.mubr.msk.bf16.gmra.mxu0 %vm291_vm0, %v4975_v34  ;;  %v5330_v34 = vsel %vm5293_vm7, 1.0, %v5054_v48  ;;  %vm2554_vm7 = vcmask 719872  }
  0xce   :  { %v4229_v40 = vpop.f32.mrf.mxu0 }
  0xcf   :  { %v431_v41 = vadd.f32 %v4229_v40, %v5271_v38 }
  0xd0   :  { %v422_v43 = vpop.f32.mrf.mxu0 }
  0xd1   :  { %v679_v45 = vmax.f32 %v431_v41, 0.0  ;;  %v423_v50 = vadd.f32 %v5271_v38, %v422_v43 }
  0xd2   :  { %v4230_v44 = vpop.f32.mrf.mxu0 }
  0xd3   :  { %v434_v46 = vadd.f32 %v4230_v44, %v5271_v38  ;;  %v1417_v57 = vrot.slane %v679_v45, 4  ;;  %v1040_v59 = vrot.slane %v679_v45, 7  ;;  %v1313_v60 = vrot.slane %v679_v45, 3 }
  0xd4   :  { %v425_v47 = vpop.f32.mrf.mxu0  ;;  %v5288_v1 = vmax.f32 %v423_v50, 0.0 }
  0xd5   :  { %v680_v51 = vmax.f32 %v434_v46, 0.0  ;;  %v426_v52 = vadd.f32 %v5271_v38, %v425_v47  ;;  %v1080_v12 = vsel %vm1039_vm4, 0.0, %v1040_v59 }
  0xd6   :  { %v4233_v53 = vpop.f32.mrf.mxu0  ;;  %v1377_v18 = vrot.slane %v5288_v1, 4  ;;  %v1121_v22 = vrot.slane %v5288_v1, 1  ;;  %v1088_v24 = vmul.f32 %v5276_v49, %v1080_v12  ;;  %v1457_v39 = vrot.slane %v5288_v1, 5 }
  0xd7   :  { %v4341_v56 = vpack.i.bf16 %v680_v51, %v679_v45  ;;  %v1418_v58 = vrot.slane %v680_v51, 4  ;;  %v1041_v61 = vrot.slane %v680_v51, 7  ;;  %v5286_v62 = vmax.f32 %v426_v52, 0.0 }
  0xd8   :  { %v438_v63 = vpop.f32.mrf.mxu0  ;;  %v1314_v0 = vrot.slane %v680_v51, 3  ;;  %v447_v27 = vadd.f32 %v4233_v53, %v5271_v38 }
  0xd9   :  { %4342 = vrot.lane.b32.xlu0 %v4341_v56, %s5055_s0  ;;  %v1419_v2 = vsel %vm7861_vm5, %v1417_v57, %v1418_v58  ;;  %v1449_v3 = vsel %vm7861_vm5, %v1418_v58, 0.0  ;;  %v439_v9 = vadd.f32 %v5271_v38, %v438_v63  ;;  %v4346_v10 = vpack.i.bf16 %v5286_v62, %v5288_v1 }
  0xda   :  { %v4234_v5 = vpop.f32.mrf.mxu0  ;;  %v4351_v6 = vpack.i.bf16 %v1449_v3, %v1419_v2  ;;  %v1315_v7 = vsel %vm7856_vm3, %v1313_v60, %v1314_v0  ;;  %v1353_v8 = vsel %vm7856_vm3, %v1314_v0, 0.0  ;;  %v1042_v15 = vsel %vm1039_vm4, %v1040_v59, %v1041_v61 }
  0xdb   :  { %v1361_v11 = vmul.f32 %v5276_v49, %v1315_v7  ;;  %v1362_v14 = vmul.f32 %v5280_v54, %v1353_v8  ;;  %v1378_v16 = vrot.slane %v5286_v62, 4  ;;  %v1122_v17 = vrot.slane %v5286_v62, 1 }
  0xdc   :  { %4352 = vrot.lane.b32.xlu1 %v4351_v6, %s5056_s22  ;;  %v441_v13 = vpop.f32.mrf.mxu0  ;;  %v450_v19 = vadd.f32 %v4234_v5, %v5271_v38  ;;  %v1089_v25 = vmul.f32 %v5280_v54, %v1042_v15  ;;  %v5321_v28 = vmax.f32 %v439_v9, 0.0  ;;  %v1458_v45 = vrot.slane %v5286_v62, 5 }
  0xdd   :  { %v442_v20 = vadd.f32 %v5271_v38, %v441_v13  ;;  %4347 = vrot.lane.b32.xlu0 %v4346_v10, %s5057_s23  ;;  %v4361_v23 = vpack.i.bf16 %v1362_v14, %v1361_v11  ;;  %v1379_v30 = vsel %vm7861_vm5, %v1377_v18, %v1378_v16  ;;  %v1409_v32 = vsel %vm7861_vm5, %v1378_v16, 0.0 }
  0xde   :  { %v4237_v26 = vpop.f32.mrf.mxu0  ;;  %v4356_v31 = vpack.i.bf16 %v1089_v25, %v1088_v24  ;;  %v1123_v37 = vsel %vm7860_vm8, %v1121_v22, %v1122_v17  ;;  %v5334_v40 = vmax.f32 %v450_v19, 0.0  ;;  %v4366_v41 = vpack.i.bf16 %v1409_v32, %v1379_v30 }
  0xdf   :  { %v5323_v29 = vmax.f32 %v442_v20, 0.0  ;;  %v1161_v42 = vsel %vm7860_vm8, %v1122_v17, 0.0  ;;  %v1169_v43 = vmul.f32 %v5315_v21, %v1123_v37  ;;  %v5340_v46 = vmax.f32 %v447_v27, 0.0 }
  0xe0   :  { %4362 = vrot.lane.b32.xlu1 %v4361_v23, %s5058_s24  ;;  %v454_v33 = vpop.f32.mrf.mxu0  ;;  %v1170_v48 = vmul.f32 %v5330_v34, %v1161_v42  ;;  %v878_v50 = vrot.slane %v5321_v28, 4  ;;  %v463_v51 = vadd.f32 %v4237_v26, %v5271_v38  ;;  %v1459_v53 = vsel %vm7864_vm9, %v1457_v39, %v1458_v45 }
  0xe1   :  { %4357 = vrot.lane.b32.xlu0 %v4356_v31, %s5059_s25  ;;  %v879_v47 = vrot.slane %v5323_v29, 4  ;;  %v1497_v55 = vsel %vm7864_vm9, %v1458_v45, 0.0  ;;  %v1186_v57 = vrot.slane %v5334_v40, 7  ;;  %v1505_v59 = vmul.f32 %v5315_v21, %v1459_v53 }
  0xe2   :  { %v4238_v44 = vpop.f32.mrf.mxu0  ;;  %v4371_v58 = vpack.i.bf16 %v1170_v48, %v1169_v43  ;;  %v1506_v60 = vmul.f32 %v5330_v34, %v1497_v55  ;;  %v960_v62 = vrot.slane %v5323_v29, 5  ;;  %v910_v0 = vsel %vm7861_vm5, 0.0, %v878_v50 }
  0xe3   :  { %v466_v52 = vadd.f32 %v4238_v44, %v5271_v38  ;;  %v880_v63 = vsel %vm7861_vm5, %v878_v50, %v879_v47  ;;  %v1185_v1 = vrot.slane %v5340_v46, 7  ;;  %v5358_v2 = vmax.f32 %v463_v51, 0.0 }
  0xe4   :  { %4367 = vrot.lane.b32.xlu1 %v4366_v41, %s5060_s26  ;;  %v457_v56 = vpop.f32.mrf.mxu0  ;;  %v4376_v4 = vpack.i.bf16 %v1506_v60, %v1505_v59  ;;  %v4396_v6 = vpack.i.bf16 %v880_v63, %v910_v0  ;;  %v959_v9 = vrot.slane %v5321_v28, 5  ;;  %v455_v13 = vadd.f32 %v5271_v38, %v454_v33 }
  0xe5   :  { %4372 = vrot.lane.b32.xlu0 %v4371_v58, %s5061_s2  ;;  %v5360_v3 = vmax.f32 %v466_v52, 0.0  ;;  %v1187_v7 = vsel %vm1039_vm4, %v1185_v1, %v1186_v57  ;;  %v1225_v8 = vsel %vm1039_vm4, 0.0, %v1185_v1  ;;  %v458_v14 = vadd.f32 %v5271_v38, %v457_v56 }
  0xe6   :  { %v4241_v61 = vpop.f32.mrf.mxu0  ;;  %v1233_v10 = vmul.f32 %v5276_v49, %v1225_v8  ;;  %v1234_v11 = vmul.f32 %v5280_v54, %v1187_v7  ;;  %v961_v15 = vsel %vm7864_vm9, %v959_v9, %v960_v62  ;;  %v999_v16 = vsel %vm7864_vm9, 0.0, %v959_v9 }
  0xe7   :  { %v919_v17 = vrot.slane %v5334_v40, 4  ;;  %v1420_v18 = vrot.slane %v5358_v2, 4  ;;  %v4381_v19 = vpack.i.bf16 %v5334_v40, %v5340_v46  ;;  %v918_v20 = vrot.slane %v5340_v46, 4 }
  0xe8   :  { %v470_v5 = vpop.f32.mrf.mxu0  ;;  %4377 = vrot.lane.b32.xlu1 %v4376_v4, %s5062_s27  ;;  %v4401_v23 = vpack.i.bf16 %v1234_v11, %v1233_v10  ;;  %v1007_v24 = vmul.f32 %v5315_v21, %v999_v16  ;;  %v1008_v25 = vmul.f32 %v5330_v34, %v961_v15  ;;  %v1421_v26 = vrot.slane %v5360_v3, 4  ;;  %v4976_v11 = vld [vmem:[%s7833_s4 + $0x38] sm:$0xff]  }
  0xe9   :  { %4397 = vrot.lane.b32.xlu0 %v4396_v6, %s5063_s28  ;;  %v1249_v27 = vrot.slane %v5321_v28, 1  ;;  %v1316_v30 = vrot.slane %v5358_v2, 3  ;;  %v7844_v32 = vrot.slane %v5340_v46, 3  ;;  %v5389_v33 = vmax.f32 %v455_v13, 0.0  ;;  %4291 = vmatprep.subr.bf16.mxu1 %v4976_v11 }
  0xea   :  { %v5368_v12 = vpop.f32.mrf.mxu0  ;;  %v5391_v37 = vmax.f32 %v458_v14, 0.0  ;;  %v4386_v39 = vpack.i.bf16 %v5323_v29, %v5321_v28  ;;  %v479_v41 = vadd.f32 %v4241_v61, %v5271_v38  ;;  %v920_v42 = vsel %vm7861_vm5, %v918_v20, %v919_v17  ;;  %4292 = vmatpush3.bf16.msra.mxu1 %v4976_v11 }
  0xeb   :  { %v1250_v43 = vrot.slane %v5323_v29, 1  ;;  %v1317_v44 = vrot.slane %v5360_v3, 3  ;;  %v4406_v47 = vpack.i.bf16 %v1008_v25, %v1007_v24  ;;  %v950_v48 = vsel %vm7861_vm5, 0.0, %v918_v20 }
  0xec   :  { %v473_v22 = vpop.f32.mrf.mxu0  ;;  %4382 = vrot.lane.b32.xlu1 %v4381_v19, %s5064_s29  ;;  %v1422_v50 = vsel %vm7861_vm5, %v1420_v18, %v1421_v26  ;;  %v1450_v51 = vsel %vm7861_vm5, %v1421_v26, 0.0  ;;  %v1380_v56 = vrot.slane %v5389_v33, 4  ;;  %v471_v57 = vadd.f32 %v5271_v38, %v470_v5 }
  0xed   :  { %4402 = vrot.lane.b32.xlu0 %v4401_v23, %s5065_s30  ;;  %v1251_v28 = vsel %vm7860_vm8, %v1249_v27, %v1250_v43  ;;  %v1289_v52 = vsel %vm7860_vm8, %v1250_v43, 0.0  ;;  %v1318_v53 = vsel %vm7856_vm3, %v1316_v30, %v1317_v44  ;;  %v1354_v29 = vsel %vm7856_vm3, %v1317_v44, 0.0 }
  0xee   :  { %v5386_v31 = vpop.f32.mrf.mxu0  ;;  %v5413_v58 = vmax.f32 %v479_v41, 0.0  ;;  %v4391_v59 = vpack.i.bf16 %v920_v42, %v950_v48  ;;  %v1297_v60 = vmul.f32 %v5315_v21, %v1251_v28  ;;  %v1298_v61 = vmul.f32 %v5330_v34, %v1289_v52  ;;  %v4978_v28 = vld [vmem:[%s7833_s4 + $0x28] sm:$0xff]  }
  0xef   :  { %v4426_v63 = vpack.i.bf16 %v1450_v51, %v1422_v50  ;;  %v1363_v0 = vmul.f32 %v5276_v49, %v1318_v53  ;;  %v1364_v1 = vmul.f32 %v5280_v54, %v1354_v29  ;;  %v1381_v4 = vrot.slane %v5391_v37, 4 }
  0xf0   :  { %v486_v45 = vpop.f32.mrf.mxu0  ;;  %4387 = vrot.lane.b32.xlu1 %v4386_v39, %s5066_s11  ;;  %v837_v5 = vsel %vm7856_vm3, 0.0, %v7844_v32  ;;  %v1460_v8 = vrot.slane %v5389_v33, 5  ;;  %v1044_v9 = vrot.slane %v5360_v3, 7  ;;  %v482_v10 = vadd.f32 %v5368_v12, %v5271_v38 }
  0xf1   :  { %4407 = vrot.lane.b32.xlu0 %v4406_v47, %s5067_s12  ;;  %v7843_v13 = vrot.slane %v5413_v58, 3  ;;  %v5438_v14 = vmax.f32 %v471_v57, 0.0  ;;  %v474_v15 = vadd.f32 %v5271_v38, %v473_v22  ;;  %v4411_v16 = vpack.i.bf16 %v1298_v61, %v1297_v60  ;;  %v4977_v22 = vld [vmem:[%s7833_s4 + $0x30] sm:$0xff]  }
  0xf2   :  { %v5408_v55 = vpop.f32.mrf.mxu0  ;;  %v4436_v18 = vpack.i.bf16 %v1364_v1, %v1363_v0  ;;  %v1382_v19 = vsel %vm7861_vm5, %v1380_v56, %v1381_v4  ;;  %v1410_v20 = vsel %vm7861_vm5, %v1381_v4, 0.0  ;;  %v1461_v12 = vrot.slane %v5391_v37, 5  ;;  %4293 = vmatprep.subr.bf16.mxu1 %v4977_v22 }
  0xf3   :  { %v1043_v23 = vrot.slane %v5358_v2, 7  ;;  %v5453_v25 = vmax.f32 %v482_v10, 0.0  ;;  %v495_v26 = vadd.f32 %v5386_v31, %v5271_v38  ;;  %v5460_v39 = vmax.f32 %v474_v15, 0.0  ;;  %4294 = vmatpush3.bf16.msra.mxu1 %v4977_v22 }
  0xf4   :  { %v5417_v62 = vpop.f32.mrf.mxu0  ;;  %4392 = vrot.lane.b32.xlu1 %v4391_v59, %s5068_s13  ;;  %v1462_v27 = vsel %vm7864_vm9, %v1460_v8, %v1461_v12  ;;  %v1498_v30 = vsel %vm7864_vm9, %v1461_v12, 0.0  ;;  %v487_v41 = vadd.f32 %v5271_v38, %v486_v45  ;;  %v4416_v42 = vpack.i.bf16 %v5360_v3, %v5358_v2  ;;  %4295 = vmatprep.subr.bf16.mxu1 %v4978_v28 }
  0xf5   :  { %4427 = vrot.lane.b32.xlu0 %v4426_v63, %s5056_s22  ;;  %v4441_v43 = vpack.i.bf16 %v1410_v20, %v1382_v19  ;;  %v1507_v47 = vmul.f32 %v5315_v21, %v1462_v27  ;;  %v1508_v48 = vmul.f32 %v5330_v34, %v1498_v30  ;;  %v1045_v31 = vsel %vm1039_vm4, %v1043_v23, %v1044_v9 }
  0xf6   :  { %v5426_v6 = vpop.f32.mrf.mxu0  ;;  %v1081_v50 = vsel %vm1039_vm4, 0.0, %v1043_v23  ;;  %v1124_v51 = vrot.slane %v5389_v33, 1  ;;  %v5475_v45 = vsel %vm7856_vm3, 0.0, %v7843_v13  ;;  %v1252_v2 = vrot.slane %v5438_v14, 1 }
  0xf7   :  { %v922_v53 = vrot.slane %v5453_v25, 4  ;;  %v1189_v29 = vrot.slane %v5453_v25, 7  ;;  %v5487_v56 = vmax.f32 %v495_v26, 0.0  ;;  %v4421_v57 = vpack.i.bf16 %v5391_v37, %v5389_v33  ;;  %4296 = vmatpush3.bf16.msra.mxu1 %v4978_v28 }
  0xf8   :  { %v5441_v17 = vpop.f32.mrf.mxu0  ;;  %4412 = vrot.lane.b32.xlu1 %v4411_v16, %s5069_s16  ;;  %v1090_v59 = vmul.f32 %v5276_v49, %v1081_v50  ;;  %v1091_v60 = vmul.f32 %v5280_v54, %v1045_v31  ;;  %v1125_v61 = vrot.slane %v5391_v37, 1  ;;  %v5496_v0 = vmul.f32 %v5276_v49, %v837_v5 }
  0xf9   :  { %4437 = vrot.lane.b32.xlu0 %v4436_v18, %s5058_s24  ;;  %v882_v1 = vrot.slane %v5460_v39, 4  ;;  %v5499_v4 = vmax.f32 %v487_v41, 0.0  ;;  %v4451_v8 = vpack.i.bf16 %v1508_v48, %v1507_v47  ;;  %v963_v9 = vrot.slane %v5460_v39, 5 }
  0xfa   :  { %v5448_v24 = vpop.f32.mrf.mxu0  ;;  %v498_v33 = vadd.f32 %v5408_v55, %v5271_v38  ;;  %v1126_v10 = vsel %vm7860_vm8, %v1124_v51, %v1125_v61  ;;  %v1162_v37 = vsel %vm7860_vm8, %v1125_v61, 0.0  ;;  %v1319_v5 = vrot.slane %v5487_v56, 3 }
  0xfb   :  { %v490_v15 = vadd.f32 %v5271_v38, %v5417_v62  ;;  %v511_v16 = vadd.f32 %v5426_v6, %v5271_v38  ;;  %v921_v55 = vrot.slane %v5413_v58, 4  ;;  %v4431_v18 = vpack.i.bf16 %v1091_v60, %v1090_v59  ;;  %v4979_v62 = vld [vmem:[%s7833_s4 + $0x20] sm:$0xff]  }
  0xfc   :  { %v5465_v44 = vpop.f32.mrf.mxu0  ;;  %4417 = vrot.lane.b32.xlu1 %v4416_v42, %s5055_s0  ;;  %v1171_v19 = vmul.f32 %v5315_v21, %v1126_v10  ;;  %v1172_v20 = vmul.f32 %v5330_v34, %v1162_v37  ;;  %v881_v12 = vrot.slane %v5438_v14, 4  ;;  %v1423_v22 = vrot.slane %v5487_v56, 4  ;;  %4297 = vmatprep.subr.bf16.mxu1 %v4979_v62 }
  0xfd   :  { %4442 = vrot.lane.b32.xlu0 %v4441_v43, %s5060_s26  ;;  %v1127_v26 = vrot.slane %v5499_v4, 1  ;;  %v1383_v6 = vrot.slane %v5499_v4, 4  ;;  %v4456_v27 = vpack.i.bf16 %v5453_v25, %v5413_v58  ;;  %v1463_v30 = vrot.slane %v5499_v4, 5  ;;  %4298 = vmatpush3.bf16.msra.mxu1 %v4979_v62 }
  0xfe   :  { %v5479_v3 = vpop.f32.mrf.mxu0  ;;  %v5528_v41 = vmax.f32 %v498_v33, 0.0  ;;  %v503_v42 = vadd.f32 %v5271_v38, %v5441_v17  ;;  %v514_v43 = vadd.f32 %v5448_v24, %v5271_v38  ;;  %v5537_v48 = vmax.f32 %v511_v16, 0.0 }
  0xff   :  { %v4461_v31 = vpack.i.bf16 %v5460_v39, %v5438_v14  ;;  %v923_v50 = vsel %vm7861_vm5, %v921_v55, %v922_v53  ;;  %v962_v51 = vrot.slane %v5438_v14, 5  ;;  %v4446_v17 = vpack.i.bf16 %v1172_v20, %v1171_v19 }
 0x100   :  { %v518_v63 = vpop.f32.mrf.mxu0  ;;  %4422 = vrot.lane.b32.xlu1 %v4421_v57, %s5057_s23  ;;  %7887 = vst [vmem:[#allocation4_spill] sm:$0xff] %v5537_v48  ;;  %v951_v28 = vsel %vm7861_vm5, 0.0, %v921_v55  ;;  %v883_v24 = vsel %vm7861_vm5, %v881_v12, %v882_v1  ;;  %v1188_v57 = vrot.slane %v5413_v58, 7  ;;  %v911_v60 = vsel %vm7861_vm5, 0.0, %v881_v12 }
 0x101   :  { %4452 = vrot.lane.b32.xlu0 %v4451_v8, %s5062_s27  ;;  %v964_v61 = vsel %vm7864_vm9, %v962_v51, %v963_v9  ;;  %v1000_v8 = vsel %vm7864_vm9, 0.0, %v962_v51  ;;  %v1253_v53 = vrot.slane %v5460_v39, 1  ;;  %v5553_v33 = vmax.f32 %v503_v42, 0.0 }
 0x102   :  { %v4254_v11 = vpop.f32.mrf.mxu0  ;;  %v506_v10 = vadd.f32 %v5271_v38, %v5465_v44  ;;  %v1190_v1 = vsel %vm1039_vm4, %v1188_v57, %v1189_v29  ;;  %v1226_v37 = vsel %vm1039_vm4, 0.0, %v1188_v57  ;;  %v5562_v55 = vmax.f32 %v514_v43, 0.0 }
 0x103   :  { %v527_v39 = vadd.f32 %v5479_v3, %v5271_v38  ;;  %v519_v9 = vadd.f32 %v5271_v38, %v518_v63  ;;  %v4466_v44 = vpack.i.bf16 %v923_v50, %v951_v28  ;;  %v4471_v19 = vpack.i.bf16 %v883_v24, %v911_v60 }
 0x104   :  { %v5517_v23 = vpop.f32.mrf.mxu0  ;;  %4432 = vrot.lane.b32.xlu1 %v4431_v18, %s5059_s25  ;;  %7888 = vst [vmem:[#allocation5_spill] sm:$0xff] %v5562_v55  ;;  %v530_v18 = vadd.f32 %v4254_v11, %v5271_v38  ;;  %v1009_v20 = vmul.f32 %v5315_v21, %v1000_v8  ;;  %v1010_v29 = vmul.f32 %v5330_v34, %v964_v61  ;;  %v1290_v63 = vsel %vm7860_vm8, %v1253_v53, 0.0  ;;  %v4980_v11 = vld [vmem:[%s7833_s4 + $0x18] sm:$0xff]   ;;  %v4981_v61 = vld [vmem:[%s7833_s4 + $0x10] sm:$0xff]  }
 0x105   :  { %4457 = vrot.lane.b32.xlu0 %v4456_v27, %s5064_s29  ;;  %v1235_v62 = vmul.f32 %v5276_v49, %v1226_v37  ;;  %v1236_v27 = vmul.f32 %v5280_v54, %v1190_v1  ;;  %v1254_v3 = vsel %vm7860_vm8, %v1252_v2, %v1253_v53  ;;  %v1047_v42 = vrot.slane %v5528_v41, 7  ;;  %4299 = vmatprep.subr.bf16.mxu1 %v4980_v11  ;;  %v4982_v37 = vld [vmem:[%s7833_s4 + $0x8] sm:$0xff]  }
 0x106   :  { %v5535_v47 = vpop.f32.mrf.mxu0  ;;  %v5583_v43 = vmax.f32 %v490_v15, 0.0  ;;  %v5586_v50 = vmax.f32 %v506_v10, 0.0  ;;  %v5595_v28 = vmax.f32 %v519_v9, 0.0  ;;  %v704_v15 = vmax.f32 %v530_v18, 0.0  ;;  %4300 = vmatpush3.bf16.msra.mxu1 %v4980_v11 }
 0x107   :  { %v4481_v24 = vpack.i.bf16 %v1010_v29, %v1009_v20  ;;  %v1299_v57 = vmul.f32 %v5315_v21, %v1254_v3  ;;  %v1300_v60 = vmul.f32 %v5330_v34, %v1290_v63  ;;  %v925_v8 = vrot.slane %v5562_v55, 4  ;;  %4301 = vmatprep.subr.bf16.mxu1 %v4981_v61 }
 0x108   :  { %v5547_v59 = vpop.f32.mrf.mxu0  ;;  %4447 = vrot.lane.b32.xlu1 %v4446_v17, %s5061_s2  ;;  %v5593_v17 = vmax.f32 %v527_v39, 0.0  ;;  %v1192_v53 = vrot.slane %v5562_v55, 7  ;;  %v4476_v10 = vpack.i.bf16 %v1236_v27, %v1235_v62  ;;  %v1046_v1 = vrot.slane %v5487_v56, 7 }
 0x109   :  { %4462 = vrot.lane.b32.xlu0 %v4461_v31, %s5066_s11  ;;  %v7842_v31 = vrot.slane %v5537_v48, 3  ;;  %v885_v9 = vrot.slane %v5586_v50, 4  ;;  %v966_v18 = vrot.slane %v5586_v50, 5  ;;  %v1130_v62 = vrot.slane %v5595_v28, 1 }
 0x10a   :  { %v5560_v16 = vpop.f32.mrf.mxu0  ;;  %v1322_v20 = vrot.slane %v5593_v17, 3  ;;  %v1426_v29 = vrot.slane %v5593_v17, 4  ;;  %v1424_v27 = vrot.slane %v5528_v41, 4  ;;  %v1050_v3 = vrot.slane %v704_v15, 7  ;;  %4302 = vmatpush3.bf16.msra.mxu1 %v4981_v61 }
 0x10b   :  { %v5612_v39 = vsel %vm7856_vm3, 0.0, %v7842_v31  ;;  %v4491_v63 = vpack.i.bf16 %v5528_v41, %v5487_v56  ;;  %v1427_v11 = vrot.slane %v704_v15, 4  ;;  %v1082_v35 = vsel %vm1039_vm4, 0.0, %v1046_v1  ;;  %4303 = vmatprep.subr.bf16.mxu1 %v4982_v37 }
 0x10c   :  { %v5571_v12 = vpop.f32.mrf.mxu0  ;;  %4467 = vrot.lane.b32.xlu1 %v4466_v44, %s5068_s13  ;;  %7889 = vst [vmem:[#allocation6_spill] sm:$0xff] %v5612_v39  ;;  %v522_v44 = vadd.f32 %v5271_v38, %v5517_v23  ;;  %v4486_v23 = vpack.i.bf16 %v1300_v60, %v1299_v57  ;;  %v1320_v31 = vrot.slane %v5528_v41, 3  ;;  %v1049_v2 = vrot.slane %v5593_v17, 7 }
 0x10d   :  { %4472 = vrot.lane.b32.xlu0 %v4471_v19, %s5063_s28  ;;  %v1386_v13 = vrot.slane %v5595_v28, 4  ;;  %v1466_v52 = vrot.slane %v5595_v28, 5  ;;  %v4496_v41 = vpack.i.bf16 %v5583_v43, %v5499_v4  ;;  %v4566_v61 = vpack.i.bf16 %v704_v15, %v5593_v17 }
 0x10e   :  { %v5589_v51 = vpop.f32.mrf.mxu0  ;;  %v5637_v57 = vmax.f32 %v522_v44, 0.0  ;;  %v1451_v32 = vsel %vm7861_vm5, %v1424_v27, 0.0  ;;  %v1092_v44 = vmul.f32 %v5276_v49, %v1082_v35  ;;  %v1428_v7 = vsel %vm7861_vm5, %v1426_v29, %v1427_v11  ;;  %4304 = vmatpush3.bf16.msra.mxu1 %v4982_v37 }
 0x10f   :  { %v1452_v14 = vsel %vm7861_vm5, %v1427_v11, 0.0  ;;  %v1355_v17 = vsel %vm7856_vm3, %v1320_v31, 0.0  ;;  %v1083_v35 = vsel %vm1039_vm4, 0.0, %v1049_v2  ;;  %v543_v56 = vadd.f32 %v5535_v47, %v5271_v38 }
 0x110   :  { %4482 = vrot.lane.b32.xlu1 %v4481_v24, %s5067_s12  ;;  %v5619_v19 = vpop.f32.mrf.mxu0  ;;  %v1048_v24 = vsel %vm1039_vm4, %v1046_v1, %v1047_v42  ;;  %v1323_v42 = vrot.slane %v704_v15, 3  ;;  %v1425_v1 = vsel %vm7861_vm5, %v1423_v22, %v1424_v27  ;;  %v1051_v15 = vsel %vm1039_vm4, %v1049_v2, %v1050_v3 }
 0x111   :  { %4477 = vrot.lane.b32.xlu0 %v4476_v10, %s5065_s30  ;;  %v4983_v10 = vld [vmem:[%s7833_s4] sm:$0xff]   ;;  %v1384_v22 = vrot.slane %v5583_v43, 4  ;;  %v4576_v3 = vpack.i.bf16 %v1452_v14, %v1428_v7  ;;  %v1128_v11 = vrot.slane %v5583_v43, 1  ;;  %v1094_v47 = vmul.f32 %v5276_v49, %v1083_v35 }
 0x112   :  { %v5640_v60 = vpop.f32.mrf.mxu0  ;;  %4305 = vmatprep.subr.bf16.mxu1 %v4983_v10  ;;  %v1324_v29 = vsel %vm7856_vm3, %v1322_v20, %v1323_v42  ;;  %v1356_v27 = vsel %vm7856_vm3, %v1323_v42, 0.0  ;;  %v1366_v20 = vmul.f32 %v5280_v54, %v1355_v17  ;;  %v535_v42 = vadd.f32 %v5271_v38, %v5547_v59 }
 0x113   :  { %4306 = vmatpush3.bf16.msra.mxu1 %v4983_v10  ;;  %v5682_v7 = vmul.f32 %v5280_v54, %v1356_v27  ;;  %v1385_v14 = vsel %vm7861_vm5, %v1383_v6, %v1384_v22  ;;  %v5689_v59 = vmax.f32 %v543_v56, 0.0  ;;  %v1464_v10 = vrot.slane %v5583_v43, 5 }
 0x114   :  { %4492 = vrot.lane.b32.xlu1 %v4491_v63, %s5055_s0  ;;  %v1093_v63 = vmul.f32 %v5280_v54, %v1048_v24  ;;  %v5666_v37 = vpop.f32.mrf.mxu0  ;;  %v1131_v6 = vrot.slane %v5637_v57, 1  ;;  %v538_v43 = vadd.f32 %v5271_v38, %v5571_v12  ;;  %v1467_v27 = vrot.slane %v5637_v57, 5 }
 0x115   :  { %4487 = vrot.lane.b32.xlu0 %v4486_v23, %s5069_s16  ;;  %v1321_v23 = vsel %vm7856_vm3, %v1319_v5, %v1320_v31  ;;  %v4501_v5 = vpack.i.bf16 %v1451_v32, %v1425_v1  ;;  %v4571_v31 = vpack.i.bf16 %v5637_v57, %v5595_v28  ;;  %v5679_v32 = vmul.f32 %v5276_v49, %v1324_v29 }
 0x116   :  { %v4506_v24 = vpack.i.bf16 %v1093_v63, %v1092_v44  ;;  %v1365_v2 = vmul.f32 %v5276_v49, %v1321_v23  ;;  %7890 = vst [vmem:[#allocation7_spill] sm:$0xff] %v5689_v59  ;;  %v4265_v1 = vpop.f32.mrf.mxu0  ;;  %v1129_v44 = vsel %vm7860_vm8, %v1127_v26, %v1128_v11  ;;  %v1163_v63 = vsel %vm7860_vm8, %v1128_v11, 0.0 }
 0x117   :  { %v546_v23 = vadd.f32 %v5560_v16, %v5271_v38  ;;  %v4586_v26 = vpack.i.bf16 %v5682_v7, %v5679_v32  ;;  %v7845_v16 = vrot.slane %v5689_v59, 3  ;;  %v1173_v56 = vmul.f32 %v5315_v21, %v1129_v44 }
 0x118   :  { %4497 = vrot.lane.b32.xlu1 %v4496_v41, %s5057_s23  ;;  %v1095_v41 = vmul.f32 %v5280_v54, %v1051_v15  ;;  %v4511_v17 = vpack.i.bf16 %v1366_v20, %v1365_v2  ;;  %v5700_v15 = vmax.f32 %v535_v42, 0.0  ;;  %v566_v12 = vpop.f32.mrf.mxu0  ;;  %v1499_v2 = vsel %vm7864_vm9, %v1464_v10, 0.0 }
 0x119   :  { %4567 = vrot.lane.b32.xlu0 %v4566_v61, %s5055_s0  ;;  %v1411_v61 = vsel %vm7861_vm5, %v1384_v22, 0.0  ;;  %v1387_v22 = vrot.slane %v5637_v57, 4  ;;  %v5716_v11 = vmax.f32 %v546_v23, 0.0  ;;  %v1132_v57 = vsel %vm7860_vm8, %v1130_v62, %v1131_v6 }
 0x11a   :  { %v4581_v35 = vpack.i.bf16 %v1095_v41, %v1094_v47  ;;  %v4516_v29 = vpack.i.bf16 %v1411_v61, %v1385_v14  ;;  %v1258_v20 = vrot.slane %v5700_v15, 1  ;;  %v5728_v42 = vmax.f32 %v538_v43, 0.0  ;;  %v4266_v61 = vpop.f32.mrf.mxu0 }
 0x11b   :  { %7891 = vst [vmem:[#allocation8_spill] sm:$0xff] %v5716_v11  ;;  %v1388_v4 = vsel %vm7861_vm5, %v1386_v13, %v1387_v22  ;;  %v1468_v47 = vsel %vm7864_vm9, %v1466_v52, %v1467_v27  ;;  %v1500_v62 = vsel %vm7864_vm9, %v1467_v27, 0.0  ;;  %v559_v41 = vadd.f32 %v5589_v51, %v5271_v38 }
 0x11c   :  { %4502 = vrot.lane.b32.xlu1 %v4501_v5, %s5056_s22  ;;  %v1174_v5 = vmul.f32 %v5330_v34, %v1163_v63  ;;  %v1510_v32 = vmul.f32 %v5330_v34, %v1499_v2  ;;  %v1175_v13 = vmul.f32 %v5315_v21, %v1132_v57  ;;  %v551_v14 = vadd.f32 %v5271_v38, %v5619_v19 }
 0x11d   :  { %4572 = vrot.lane.b32.xlu0 %v4571_v31, %s5057_s23  ;;  %v1465_v31 = vsel %vm7864_vm9, %v1463_v30, %v1464_v10  ;;  %v1412_v30 = vsel %vm7861_vm5, %v1387_v22, 0.0  ;;  %v5747_v52 = vsel %vm7856_vm3, 0.0, %v7845_v16  ;;  %v928_v44 = vrot.slane %v5716_v11, 4 }
 0x11e   :  { %7892 = vst [vmem:[#allocation9_spill] sm:$0xff] %v5747_v52  ;;  %v4521_v51 = vpack.i.bf16 %v1174_v5, %v1173_v56  ;;  %v4591_v28 = vpack.i.bf16 %v1412_v30, %v1388_v4  ;;  %v1195_v63 = vrot.slane %v5716_v11, 7  ;;  %v5753_v23 = vmul.f32 %v5315_v21, %v1468_v47 }
 0x11f   :  { %v5756_v19 = vmul.f32 %v5330_v34, %v1500_v62  ;;  %v4531_v22 = vpack.i.bf16 %v5562_v55, %v5537_v48  ;;  %v5762_v43 = vmax.f32 %v559_v41, 0.0  ;;  %v5765_v56 = vmax.f32 %v551_v14, 0.0 }
 0x120   :  { %4507 = vrot.lane.b32.xlu1 %v4506_v24, %s5059_s25  ;;  %v1164_v24 = vsel %vm7860_vm8, %v1131_v6, 0.0  ;;  %v888_v6 = vrot.slane %v5728_v42, 4  ;;  %v4536_v5 = vpack.i.bf16 %v5586_v50, %v5553_v33  ;;  %v4606_v2 = vpack.i.bf16 %v5716_v11, %v5689_v59 }
 0x121   :  { %4577 = vrot.lane.b32.xlu0 %v4576_v3, %s5056_s22  ;;  %v1509_v3 = vmul.f32 %v5315_v21, %v1465_v31  ;;  %v1176_v7 = vmul.f32 %v5330_v34, %v1164_v24  ;;  %v569_v31 = vpop.f32.mrf.mxu0  ;;  %v562_v57 = vadd.f32 %v5640_v60, %v5271_v38  ;;  %v554_v24 = vadd.f32 %v5271_v38, %v5666_v37 }
 0x122   :  { %v4601_v4 = vpack.i.bf16 %v5756_v19, %v5753_v23  ;;  %v924_v30 = vrot.slane %v5537_v48, 4  ;;  %v1429_v62 = vrot.slane %v5762_v43, 4  ;;  %v884_v60 = vrot.slane %v5553_v33, 4 }
 0x123   :  { %v4596_v27 = vpack.i.bf16 %v1176_v7, %v1175_v13  ;;  %v927_v37 = vrot.slane %v5689_v59, 4  ;;  %v1191_v13 = vrot.slane %v5537_v48, 7  ;;  %v4269_v7 = vpop.f32.mrf.mxu0  ;;  %v5795_v14 = vmax.f32 %v554_v24, 0.0 }
 0x124   :  { %4512 = vrot.lane.b32.xlu1 %v4511_v17, %s5058_s24  ;;  %v969_v17 = vrot.slane %v5728_v42, 5  ;;  %v578_v19 = vadd.f32 %v4266_v61, %v5271_v38  ;;  %v5806_v16 = vsel %vm7861_vm5, 0.0, %v924_v30  ;;  %v5817_v24 = vsel %vm7861_vm5, 0.0, %v884_v60 }
 0x125   :  { %4582 = vrot.lane.b32.xlu0 %v4581_v35, %s5059_s25  ;;  %v4526_v35 = vpack.i.bf16 %v1510_v32, %v1509_v3  ;;  %v4611_v3 = vpack.i.bf16 %v5728_v42, %v5700_v15  ;;  %v5820_v61 = vsel %vm7861_vm5, %v927_v37, %v928_v44  ;;  %v1256_v41 = vrot.slane %v5586_v50, 1 }
 0x126   :  { %v968_v47 = vrot.slane %v5700_v15, 5  ;;  %v7907_v39 = vpack.i.bf16 %v5795_v14, %v5765_v56 }
 0x128   :  { %4517 = vrot.lane.b32.xlu1 %v4516_v29, %s5060_s26  ;;  %v575_v29 = vadd.f32 %v4265_v1, %v5271_v38 }
 0x129   :  { %4587 = vrot.lane.b32.xlu0 %v4586_v26, %s5058_s24  ;;  %v567_v26 = vadd.f32 %v5271_v38, %v566_v12  ;;  %v5793_v12 = vmax.f32 %v562_v57, 0.0  ;;  %v5814_v57 = vsel %vm7861_vm5, %v884_v60, %v885_v9  ;;  %v887_v9 = vrot.slane %v5700_v15, 4 }
 0x12a   :  { %v5797_v23 = vmax.f32 %v575_v29, 0.0  ;;  %v1227_v29 = vsel %vm1039_vm4, 0.0, %v1191_v13 }
 0x12b   :  { %v5808_v10 = vmax.f32 %v567_v26, 0.0  ;;  %v582_v26 = vpop.f32.mrf.mxu0  ;;  %v1053_v44 = vrot.slane %v5793_v12, 7 }
 0x12c   :  { %4522 = vrot.lane.b32.xlu1 %v4521_v51, %s5061_s2  ;;  %v5803_v51 = vsel %vm7861_vm5, %v924_v30, %v925_v8  ;;  %v5823_v8 = vsel %vm7861_vm5, 0.0, %v927_v37  ;;  %v591_v30 = vadd.f32 %v4269_v7, %v5271_v38  ;;  %v5837_v37 = vmax.f32 %v578_v19, 0.0  ;;  %v5856_v19 = vld [vmem:[%s7832_s3] ss:$0 sm:$0xff] }
 0x12d   :  { %4592 = vrot.lane.b32.xlu0 %v4591_v28, %s5060_s26  ;;  %v570_v28 = vadd.f32 %v5271_v38, %v569_v31  ;;  %v1193_v31 = vsel %vm1039_vm4, %v1191_v13, %v1192_v53  ;;  %v4541_v60 = vpack.i.bf16 %v5803_v51, %v5806_v16  ;;  %v4546_v13 = vpack.i.bf16 %v5814_v57, %v5817_v24  ;;  %v4270_v53 = vpop.f32.mrf.mxu0 }
 0x12e   :  { %v965_v38 = vrot.slane %v5553_v33, 5  ;;  %v5848_v7 = vmul.f32 %v5276_v49, %v1227_v29  ;;  %v5851_v16 = vmul.f32 %v5280_v54, %v1193_v31  ;;  %v583_v51 = vadd.f32 %v5856_v19, %v582_v26 }
 0x12f   :  { %v5842_v32 = vmax.f32 %v570_v28, 0.0  ;;  %v5863_v28 = vsel %vm7861_vm5, %v887_v9, %v888_v6  ;;  %v5866_v29 = vsel %vm7861_vm5, 0.0, %v887_v9  ;;  %v1194_v31 = vrot.slane %v5689_v59, 7  ;;  %v585_v6 = vpop.f32.mrf.mxu0 }
 0x130   :  { %4527 = vrot.lane.b32.xlu1 %v4526_v35, %s5062_s27  ;;  %v5868_v35 = vmax.f32 %v591_v30, 0.0  ;;  %v967_v9 = vsel %vm7864_vm9, %v965_v38, %v966_v18  ;;  %v1001_v30 = vsel %vm7864_vm9, 0.0, %v965_v38  ;;  %v4551_v1 = vpack.i.bf16 %v5851_v16, %v5848_v7 }
 0x131   :  { %4597 = vrot.lane.b32.xlu0 %v4596_v27, %s5061_s2  ;;  %v4616_v27 = vpack.i.bf16 %v5820_v61, %v5823_v8  ;;  %v5887_v26 = vmax.f32 %v583_v51, 0.0  ;;  %v1196_v38 = vsel %vm1039_vm4, %v1194_v31, %v1195_v63  ;;  %v1259_v7 = vrot.slane %v5728_v42, 1 }
 0x132   :  { %v5904_v16 = vmul.f32 %v5315_v21, %v1001_v30  ;;  %v5907_v50 = vmul.f32 %v5330_v34, %v967_v9  ;;  %v7893_v63 = vrot.slane %v5553_v33, 1  ;;  %v1291_v51 = vsel %vm7860_vm8, %v1256_v41, 0.0 }
 0x133   :  { %v970_v18 = vsel %vm7864_vm9, %v968_v47, %v969_v17  ;;  %v7894_v30 = vrot.slane %v5334_v40, 3  ;;  %v1260_v40 = vsel %vm7860_vm8, %v1258_v20, %v1259_v7  ;;  %v1392_v20 = vrot.slane %v5887_v26, 4 }
 0x134   :  { %4532 = vrot.lane.b32.xlu1 %v4531_v22, %s5064_s29  ;;  %v7895_v22 = vrot.slane %v5340_v46, 3  ;;  %v1292_v46 = vsel %vm7860_vm8, %v1259_v7, 0.0  ;;  %v4556_v15 = vpack.i.bf16 %v5907_v50, %v5904_v16  ;;  %v1430_v42 = vrot.slane %v5793_v12, 4 }
 0x135   :  { %4602 = vrot.lane.b32.xlu0 %v4601_v4, %s5062_s27  ;;  %v594_v4 = vadd.f32 %v5856_v19, %v4270_v53  ;;  %v1257_v53 = vsel %vm7860_vm8, %v7893_v63, %v1256_v41  ;;  %v5926_v63 = vmul.f32 %v5280_v54, %v1196_v38  ;;  %v586_v41 = vadd.f32 %v5856_v19, %v585_v6 }
 0x136   :  { %v799_v9 = vsel %vm7856_vm3, %v7895_v22, %v7894_v30  ;;  %v5942_v22 = vmul.f32 %v5315_v21, %v1257_v53  ;;  %v5964_v53 = vmul.f32 %v5330_v34, %v1292_v46  ;;  %v5995_v61 = vsel %vm7861_vm5, %v1430_v42, 0.0 }
 0x137   :  { %v5958_v7 = vmax.f32 %v586_v41, 0.0  ;;  %v5992_v41 = vsel %vm7861_vm5, %v1429_v62, %v1430_v42  ;;  %v1055_v8 = vrot.slane %v5868_v35, 7  ;;  %v6003_v46 = vmul.f32 %v5280_v54, %v799_v9 }
 0x138   :  { %4537 = vrot.lane.b32.xlu1 %v4536_v5, %s5066_s11  ;;  %v1228_v5 = vsel %vm1039_vm4, 0.0, %v1194_v31  ;;  %v1432_v31 = vrot.slane %v5868_v35, 4  ;;  %v7896_v9 = vpack.i.bf16 %v5863_v28, %v5866_v29  ;;  %v1134_v28 = vrot.slane %v5795_v14, 1 }
 0x139   :  { %4607 = vrot.lane.b32.xlu0 %v4606_v2, %s5064_s29  ;;  %v1002_v2 = vsel %vm7864_vm9, 0.0, %v968_v47  ;;  %v1239_v17 = vmul.f32 %v5276_v49, %v1228_v5  ;;  %v5931_v47 = vmax.f32 %v594_v4, 0.0  ;;  %v5951_v4 = vmul.f32 %v5330_v34, %v970_v18 }
 0x13a   :  { %v5948_v6 = vmul.f32 %v5315_v21, %v1002_v2  ;;  %v5961_v5 = vmul.f32 %v5315_v21, %v1260_v40  ;;  %v1052_v18 = vrot.slane %v5762_v43, 7  ;;  %v1085_v40 = vsel %vm1039_vm4, 0.0, %v1055_v8 }
 0x13b   :  { %v4626_v16 = vpack.i.bf16 %v5926_v63, %v1239_v17  ;;  %v1056_v50 = vrot.slane %v5931_v47, 7  ;;  %v1433_v2 = vrot.slane %v5931_v47, 4  ;;  %v1393_v38 = vrot.slane %v5958_v7, 4 }
 0x13c   :  { %4542 = vrot.lane.b32.xlu1 %v4541_v60, %s5068_s13  ;;  %v5945_v60 = vmul.f32 %v5330_v34, %v1291_v51  ;;  %v4631_v57 = vpack.i.bf16 %v5951_v4, %v5948_v6  ;;  %v1054_v62 = vsel %vm1039_vm4, %v1052_v18, %v1053_v44  ;;  %v1329_v4 = vrot.slane %v5931_v47, 3 }
 0x13d   :  { %4612 = vrot.lane.b32.xlu0 %v4611_v3, %s5066_s11  ;;  %v4273_v3 = vpop.f32.mrf.mxu0  ;;  %v6014_v6 = vsel %vm7861_vm5, %v1433_v2, 0.0  ;;  %v6036_v44 = vmul.f32 %v5280_v54, %v1054_v62  ;;  %v1165_v33 = vsel %vm7860_vm8, %v1134_v28, 0.0  ;;  %v1473_v51 = vrot.slane %v5958_v7, 5 }
 0x13e   :  { %v4561_v30 = vpack.i.bf16 %v5945_v60, %v5942_v22  ;;  %v1084_v22 = vsel %vm1039_vm4, 0.0, %v1052_v18  ;;  %v6011_v60 = vsel %vm7861_vm5, %v1432_v31, %v1433_v2  ;;  %v1390_v18 = vrot.slane %v5795_v14, 4 }
 0x13f   :  { %v1057_v2 = vsel %vm1039_vm4, %v1055_v8, %v1056_v50  ;;  %v607_v63 = vadd.f32 %v5856_v19, %v4273_v3  ;;  %v7898_v3 = vrot.slane %v5868_v35, 3 }
 0x140   :  { %4547 = vrot.lane.b32.xlu1 %v4546_v13, %s5063_s28  ;;  %v1326_v13 = vrot.slane %v5793_v12, 3  ;;  %v6075_v17 = vsel %vm7861_vm5, %v1390_v18, 0.0 }
 0x141   :  { %4617 = vrot.lane.b32.xlu0 %v4616_v27, %s5068_s13  ;;  %v598_v27 = vpop.f32.mrf.mxu0  ;;  %v1330_v8 = vsel %vm7856_vm3, %v7898_v3, %v1329_v4  ;;  %v7899_v3 = vrot.slane %v5765_v56, 4  ;;  %v6068_v24 = vmax.f32 %v607_v63, 0.0 }
 0x142   :  { %v1357_v31 = vsel %vm7856_vm3, %v1326_v13, 0.0 }
 0x143   :  { %v4274_v29 = vpop.f32.mrf.mxu0  ;;  %7900 = vst [vmem:[#allocation10_spill] sm:$0xff] %v6068_v24 }
 0x144   :  { %4552 = vrot.lane.b32.xlu1 %v4551_v1, %s5065_s30  ;;  %v7897_v1 = vrot.slane %v5762_v43, 3 }
 0x145   :  { %4622 = vrot.lane.b32.xlu0 %v7896_v9, %s5063_s28  ;;  %v6033_v9 = vmul.f32 %v5276_v49, %v1084_v22  ;;  %v1358_v22 = vsel %vm7856_vm3, %v1329_v4, 0.0  ;;  %v6066_v4 = vsel %vm7861_vm5, %v7899_v3, %v1390_v18  ;;  %v6093_v18 = vsel %vm7861_vm5, %v1392_v20, %v1393_v38 }
 0x146   :  { %v1327_v42 = vsel %vm7856_vm3, %v7897_v1, %v1326_v13  ;;  %v599_v1 = vadd.f32 %v5856_v19, %v598_v27  ;;  %v6054_v13 = vmul.f32 %v5280_v54, %v1357_v31  ;;  %v6060_v27 = vmul.f32 %v5280_v54, %v1057_v2 }
 0x147   :  { %v6043_v50 = vmul.f32 %v5276_v49, %v1327_v42  ;;  %v610_v42 = vadd.f32 %v5856_v19, %v4274_v29  ;;  %v6078_v2 = vmul.f32 %v5276_v49, %v1330_v8  ;;  %v6081_v29 = vmul.f32 %v5280_v54, %v1358_v22 }
 0x148   :  { %4557 = vrot.lane.b32.xlu1 %v4556_v15, %s5067_s12  ;;  %v6057_v15 = vmul.f32 %v5276_v49, %v1085_v40  ;;  %v601_v40 = vpop.f32.mrf.mxu0  ;;  %v6083_v3 = vmax.f32 %v599_v1, 0.0  ;;  %v1470_v8 = vrot.slane %v5795_v14, 5  ;;  %v6106_v22 = vmul.f32 %v5330_v34, %v1165_v33 }
 0x149   :  { %4627 = vrot.lane.b32.xlu0 %v4626_v16, %s5065_s30  ;;  %v7901_v16 = vrot.slane %v5765_v56, 1  ;;  %v602_v20 = vadd.f32 %v5856_v19, %v601_v40  ;;  %v1137_v40 = vrot.slane %v5958_v7, 1 }
 0x14b   :  { %v6051_v62 = vpop.permute.xlu0 %4342  ;;  %v1135_v31 = vsel %vm7860_vm8, %v7901_v16, %v1134_v28  ;;  %v6096_v28 = vsel %vm7861_vm5, %v1393_v38, 0.0  ;;  %v6108_v16 = vmax.f32 %v610_v42, 0.0  ;;  %v7905_v42 = vpack.i.bf16 %v5964_v53, %v5961_v5 }
 0x14c   :  { %4562 = vrot.lane.b32.xlu1 %v4561_v30, %s5069_s16  ;;  %v6103_v30 = vmul.f32 %v5315_v21, %v1135_v31  ;;  %v7904_v31 = vrot.slane %v5765_v56, 5  ;;  %v1166_v52 = vsel %vm7860_vm8, %v1137_v40, 0.0  ;;  %v7908_v53 = vrot.slane %v5887_v26, 5 }
 0x14d   :  { %4632 = vrot.lane.b32.xlu0 %v4631_v57, %s5067_s12  ;;  %7902 = vst [vmem:[#allocation11_spill] sm:$0xff] %v6108_v16  ;;  %v7903_v57 = vpack.i.bf16 %v5793_v12, %v5762_v43  ;;  %v6143_v43 = vmax.f32 %v602_v20, 0.0  ;;  %v1501_v12 = vsel %vm7864_vm9, %v1470_v8, 0.0  ;;  %v7906_v20 = vrot.slane %v5887_v26, 1 }
 0x14e   :  { %v6086_v63 = vpop.permute.xlu1 %4352  ;;  %v1471_v33 = vsel %vm7864_vm9, %v7904_v31, %v1470_v8  ;;  %v6168_v5 = vmul.f32 %v5330_v34, %v1501_v12  ;;  %v1502_v38 = vsel %vm7864_vm9, %v1473_v51, 0.0  ;;  %v933_v56 = vrot.slane %v6068_v24, 4 }
 0x14f   :  { %v6100_v1 = vpop.permute.xlu0 %4347  ;;  %v1138_v8 = vsel %vm7860_vm8, %v7906_v20, %v1137_v40  ;;  %v930_v20 = vrot.slane %v5797_v23, 4  ;;  %v6189_v40 = vmul.f32 %v5330_v34, %v1166_v52  ;;  %v7910_v52 = vpack.i.bf16 %v5995_v61, %v5992_v41 }
 0x150   :  { %4642 = vrot.lane.b32.xlu1 %v7903_v57, %s5055_s0  ;;  %v4277_v57 = vpop.f32.mrf.mxu0  ;;  %v7914_v41 = vpack.i.bf16 %v5958_v7, %v5887_v26  ;;  %v7917_v61 = vpack.i.bf16 %v6014_v6, %v6011_v60  ;;  %v7921_v60 = vrot.slane %v6108_v16, 4  ;;  %vm2605_vm8 = vcmask 916480  }
 0x151   :  { %4637 = vrot.lane.b32.xlu0 %v7905_v42, %s5069_s16  ;;  %v6155_v42 = vmul.f32 %v5315_v21, %v1471_v33  ;;  %v1474_v33 = vsel %vm7864_vm9, %v7908_v53, %v1473_v51  ;;  %v6186_v51 = vmul.f32 %v5315_v21, %v1138_v8  ;;  %v623_v59 = vadd.f32 %v5856_v19, %v4277_v57 }
 0x152   :  { %v6130_v36 = vpop.permute.xlu1 %4362  ;;  %v614_v12 = vpop.f32.mrf.mxu0  ;;  %v6200_v53 = vmul.f32 %v5330_v34, %v1502_v38  ;;  %v7911_v8 = vrot.slane %v5837_v37, 4  ;;  %v6214_v48 = vsel %vm7861_vm5, 0.0, %v930_v20  ;;  %v7916_v38 = vrot.slane %v5842_v32, 4 }
 0x153   :  { %v6147_v31 = vpop.permute.xlu0 %4357  ;;  %7913 = vst [vmem:[#allocation13_spill] sm:$0xff] %v6214_v48  ;;  %v6274_v6 = vsel %vm7861_vm5, %v933_v56, %v7921_v60  ;;  %v7924_v60 = vrot.slane %v5837_v37, 7 }
 0x154   :  { %4647 = vrot.lane.b32.xlu1 %v7907_v39, %s5057_s23  ;;  %v7909_v39 = vpack.i.bf16 %v5931_v47, %v5868_v35  ;;  %v6211_v14 = vsel %vm7861_vm5, %v930_v20, %v7911_v8  ;;  %v4278_v8 = vpop.f32.mrf.mxu0  ;;  %v6232_v35 = vmax.f32 %v623_v59, 0.0  ;;  %v7915_v59 = vpack.i.bf16 %v6036_v44, %v6033_v9 }
 0x155   :  { %7912 = vst [vmem:[#allocation12_spill] sm:$0xff] %v6211_v14  ;;  %v7919_v44 = vrot.slane %v5453_v25, 3  ;;  %v7920_v9 = vrot.slane %v5413_v58, 3 }
 0x156   :  { %v6165_v11 = vpop.permute.xlu1 %4367  ;;  %4717 = vrot.lane.b32.xlu0 %v7909_v39, %s5055_s0  ;;  %v6197_v39 = vmul.f32 %v5315_v21, %v1474_v33  ;;  %v890_v33 = vrot.slane %v5808_v10, 4 }
 0x157   :  { %v6194_v47 = vpop.permute.xlu0 %4372 }
 0x158   :  { %4652 = vrot.lane.b32.xlu1 %v7910_v52, %s5056_s22  ;;  %v615_v52 = vadd.f32 %v5856_v19, %v614_v12  ;;  %v6249_v26 = vsel %vm7861_vm5, %v890_v33, %v7916_v38  ;;  %v6252_v7 = vsel %vm7861_vm5, 0.0, %v890_v33  ;;  %v626_v12 = vadd.f32 %v5856_v19, %v4278_v8 }
 0x159   :  { %v802_v38 = vsel %vm7856_vm3, %v7920_v9, %v7919_v44  ;;  %v1197_v33 = vrot.slane %v5797_v23, 7  ;;  %v7922_v44 = vpack.i.bf16 %v6054_v13, %v6043_v50  ;;  %vm7863_vm3 = vcmask 785408  }
 0x15a   :  { %4722 = vrot.lane.b32.xlu0 %v7914_v41, %s5057_s23  ;;  %v6226_v57 = vpop.permute.xlu1 %4377  ;;  %v6260_v20 = vmax.f32 %v615_v52, 0.0  ;;  %v6289_v9 = vmax.f32 %v626_v12, 0.0  ;;  %v6318_v12 = vmul.f32 %v5280_v54, %v802_v38  ;;  %v893_v38 = vrot.slane %v6083_v3, 4 }
 0x15b   :  { %v4398_v41 = vpop.permute.xlu0 %4397  ;;  %v1199_v55 = vsel %vm1039_vm4, %v1197_v33, %v7924_v60  ;;  %v1200_v52 = vrot.slane %v6068_v24, 7 }
 0x15c   :  { %4657 = vrot.lane.b32.xlu1 %v7915_v59, %s5059_s25  ;;  %7918 = vst [vmem:[#allocation14_spill] sm:$0xff] %v6260_v20  ;;  %v617_v59 = vpop.f32.mrf.mxu0  ;;  %v4400_v48 = vunpack.i.h.bf16 %v4398_v41  ;;  %v4399_v8 = vunpack.i.l.bf16 %v4398_v41  ;;  %v6283_v41 = vsel %vm7861_vm5, 0.0, %v933_v56  ;;  %7923 = vst [vmem:[#allocation15_spill] sm:$0xff] %v6289_v9  ;;  %v7925_v56 = vpack.i.bf16 %v6060_v27, %v6057_v15 }
 0x15d   :  { %v618_v25 = vadd.f32 %v5856_v19, %v617_v59  ;;  %v6314_v27 = vmul.f32 %v5276_v49, %v5475_v45  ;;  %7927 = vst [vmem:[#allocation17_spill] sm:$0xff] %v6318_v12  ;;  %v7928_v45 = vpack.i.bf16 %v6075_v17, %v6066_v4  ;;  %v971_v4 = vrot.slane %v5808_v10, 5 }
 0x15e   :  { %4727 = vrot.lane.b32.xlu0 %v7917_v61, %s5056_s22  ;;  %v6268_v14 = vpop.permute.xlu1 %4382  ;;  %v1229_v61 = vsel %vm1039_vm4, 0.0, %v1197_v33  ;;  %v2387_v33 = vsel %vm7859_vm10, %v6003_v46, %v4400_v48  ;;  %v2386_v59 = vsel %vm7859_vm10, %v5496_v0, %v4399_v8  ;;  %v6324_v0 = vmul.f32 %v5280_v54, %v1199_v55 }
 0x15f   :  { %v6277_v58 = vpop.permute.xlu0 %4402  ;;  %7926 = vst [vmem:[#allocation16_spill] sm:$0xff] %v6314_v27  ;;  %v6321_v48 = vmul.f32 %v5276_v49, %v1229_v61  ;;  %v6332_v13 = vmax.f32 %v618_v25, 0.0  ;;  %v7929_v55 = vpack.i.bf16 %v6081_v29, %v6078_v2  ;;  %v7930_v20 = vpack.i.bf16 %v6106_v22, %v6103_v30 }
 0x160   :  { %4662 = vrot.lane.b32.xlu1 %v7922_v44, %s5058_s24  ;;  %v4281_v44 = vpop.f32.mrf.mxu0  ;;  %v4405_v61 = vunpack.i.h.bf16 %v6277_v58  ;;  %v4404_v15 = vunpack.i.l.bf16 %v6277_v58  ;;  %vm7862_vm10 = vcmask 850944   ;;  %v6369_v30 = vsel %vm7861_vm5, 0.0, %v893_v38 }
 0x161   :  { %v4701_v17 = vpack.i.bf16 %v6324_v0, %v6321_v48  ;;  %v1003_v22 = vsel %vm7864_vm9, 0.0, %v971_v4  ;;  %v7979_v0 = vrot.slane %v6232_v35, 3 }
 0x162   :  { %4732 = vrot.lane.b32.xlu0 %v7925_v56, %s5059_s25  ;;  %v6308_v60 = vpop.permute.xlu1 %4387  ;;  %v639_v56 = vadd.f32 %v5856_v19, %v4281_v44 }
 0x163   :  { %v4408_v50 = vpop.permute.xlu0 %4407  ;;  %v4390_v25 = vunpack.i.h.bf16 %v6308_v60  ;;  %v4389_v46 = vunpack.i.l.bf16 %v6308_v60  ;;  %v7931_v60 = vrot.slane %v6143_v43, 4 }
 0x164   :  { %4667 = vrot.lane.b32.xlu1 %v7928_v45, %s5060_s26  ;;  %v630_v45 = vpop.f32.mrf.mxu0  ;;  %v4410_v27 = vunpack.i.h.bf16 %v4408_v50  ;;  %v4409_v12 = vunpack.i.l.bf16 %v4408_v50  ;;  %v7932_v50 = vpack.i.bf16 %v6096_v28, %v6093_v18  ;;  %v7934_v18 = vunpack.i.l.bf16 %v6147_v31 }
 0x165   :  { %v631_v58 = vadd.f32 %v5856_v19, %v630_v45 }
 0x166   :  { %4737 = vrot.lane.b32.xlu0 %v7929_v55, %s5058_s24  ;;  %v4393_v8 = vpop.permute.xlu1 %4392 }
 0x167   :  { %v4395_v2 = vunpack.i.h.bf16 %v4393_v8  ;;  %v4394_v29 = vunpack.i.l.bf16 %v4393_v8  ;;  %v6348_v55 = vpop.permute.xlu0 %4427  ;;  %v6360_v8 = vsel %vm7861_vm5, %v893_v38, %v7931_v60  ;;  %v7935_v38 = vunpack.i.h.bf16 %v6147_v31 }
 0x168   :  { %4672 = vrot.lane.b32.xlu1 %v7930_v20, %s5061_s2  ;;  %vm2622_vm5 = vcmask 982016   ;;  %v7939_v31 = vpack.i.bf16 %v6168_v5, %v6155_v42 }
 0x169   :  { %v2403_v45 = vsel %vm2402_vm11, %v2386_v59, %v4394_v29  ;;  %v2404_v9 = vsel %vm2402_vm11, %v2387_v33, %v4395_v2  ;;  %v7933_v59 = vrot.slane %v5842_v32, 5  ;;  %v1230_v2 = vsel %vm1039_vm4, 0.0, %v1200_v52 }
 0x16a   :  { %4742 = vrot.lane.b32.xlu0 %v7932_v50, %s5060_s26  ;;  %v2420_v20 = vsel %vm2419_vm12, %v2403_v45, %v4409_v12  ;;  %v2421_v60 = vsel %vm2419_vm12, %v2404_v9, %v4410_v27  ;;  %v4413_v44 = vpop.permute.xlu1 %4412  ;;  %v7936_v12 = vrot.slane %v6108_v16, 7  ;;  %v6419_v42 = vmul.f32 %v5276_v49, %v1230_v2 }
 0x16b   :  { %v973_v33 = vsel %vm7864_vm9, %v971_v4, %v7933_v59  ;;  %v2437_v28 = vsel %vm2436_vm13, %v2420_v20, %v7934_v18  ;;  %v2438_v29 = vsel %vm2436_vm13, %v2421_v60, %v7935_v38  ;;  %v6384_v50 = vpop.permute.xlu0 %4437  ;;  %v7937_v4 = vunpack.i.l.bf16 %v6100_v1 }
 0x16c   :  { %v1202_v27 = vsel %vm1039_vm4, %v1200_v52, %v7936_v12  ;;  %v7938_v59 = vunpack.i.h.bf16 %v6100_v1  ;;  %4677 = vrot.lane.b32.xlu1 %v7939_v31, %s5062_s27  ;;  %v4771_v60 = vpack.i.bf16 %v6360_v8, %v6369_v30  ;;  %v6403_v18 = vmul.f32 %v5315_v21, %v1003_v22 }
 0x16d   :  { %v2454_v45 = vsel %vm2453_vm14, %v2437_v28, %v7937_v4  ;;  %v7940_v52 = vunpack.i.l.bf16 %v6051_v62  ;;  %v7941_v28 = vunpack.i.h.bf16 %v6051_v62  ;;  %v6416_v5 = vmul.f32 %v5330_v34, %v973_v33 }
 0x16e   :  { %v2455_v20 = vsel %vm2453_vm14, %v2438_v29, %v7938_v59  ;;  %v7942_v29 = vpack.i.bf16 %v6189_v40, %v6186_v51  ;;  %v7943_v12 = vunpack.i.l.bf16 %v6194_v47  ;;  %v7944_v62 = vunpack.i.h.bf16 %v6194_v47  ;;  %v6428_v59 = vpop.permute.xlu1 %4417 }
 0x16f   :  { %v2470_v38 = vsel %vm291_vm0, %v2454_v45, %v7940_v52  ;;  %v2471_v1 = vsel %vm291_vm0, %v2455_v20, %v7941_v28  ;;  %v6431_v40 = vmul.f32 %v5280_v54, %v1202_v27  ;;  %v6436_v20 = vpop.permute.xlu0 %4442  ;;  %v6438_v31 = vmax.f32 %v639_v56, 0.0 }
 0x170   :  { %4747 = vrot.lane.b32.xlu0 %v7942_v29, %s5061_s2  ;;  %v2487_v4 = vsel %vm2486_vm15, %v2470_v38, %v7943_v12  ;;  %v2488_v45 = vsel %vm2486_vm15, %v2471_v1, %v7944_v62  ;;  %v4415_v52 = vunpack.i.h.bf16 %v4413_v44  ;;  %v4414_v38 = vunpack.i.l.bf16 %v4413_v44 }
 0x171   :  { %v2504_v33 = vsel %vm2503_vm1, %v2487_v4, %v4404_v15  ;;  %v2505_v2 = vsel %vm2503_vm1, %v2488_v45, %v4405_v61  ;;  %7945 = vst [vmem:[#allocation18_spill] sm:$0xff] %v6438_v31  ;;  %v7946_v27 = vpack.i.bf16 %v5837_v37, %v5797_v23  ;;  %v7947_v1 = vunpack.i.l.bf16 %v6268_v14  ;;  %v4282_v45 = vpop.f32.mrf.mxu0 }
 0x172   :  { %v2521_v47 = vsel %vm2520_vm2, %v2504_v33, %v4389_v46  ;;  %v2522_v28 = vsel %vm2520_vm2, %v2505_v2, %v4390_v25  ;;  %v7948_v61 = vunpack.i.h.bf16 %v6268_v14  ;;  %v7949_v44 = vpack.i.bf16 %v6200_v53, %v6197_v39  ;;  %v6462_v4 = vpop.permute.xlu1 %4422 }
 0x173   :  { %4682 = vrot.lane.b32.xlu1 %v7946_v27, %s5064_s29  ;;  %v2538_v15 = vsel %vm2537_vm6, %v2521_v47, %v7947_v1  ;;  %v4706_v46 = vpack.i.bf16 %v6416_v5, %v6403_v18  ;;  %v6458_v25 = vmax.f32 %v631_v58, 0.0  ;;  %v4776_v14 = vpack.i.bf16 %v6431_v40, %v6419_v42  ;;  %v6467_v33 = vpop.permute.xlu0 %4452 }
 0x174   :  { %v2539_v56 = vsel %vm2537_vm6, %v2522_v28, %v7948_v61  ;;  %4752 = vrot.lane.b32.xlu0 %v7949_v44, %s5062_s27  ;;  %v2555_v29 = vsel %vm2554_vm7, %v2538_v15, %v4414_v38  ;;  %v1262_v62 = vrot.slane %v5842_v32, 1  ;;  %v7950_v53 = vunpack.i.l.bf16 %v6130_v36 }
 0x175   :  { %v2556_v12 = vsel %vm2554_vm7, %v2539_v56, %v4415_v52  ;;  %v7951_v58 = vunpack.i.h.bf16 %v6130_v36  ;;  %v7952_v28 = vpack.i.bf16 %v5842_v32, %v5808_v10  ;;  %v7953_v27 = vunpack.i.l.bf16 %v6165_v11 }
 0x176   :  { %v2572_v39 = vsel %vm7863_vm3, %v2555_v29, %v7950_v53  ;;  %v7954_v15 = vunpack.i.h.bf16 %v6165_v11  ;;  %v974_v61 = vrot.slane %v6083_v3, 5  ;;  %v7955_v44 = vpack.i.bf16 %v6108_v16, %v6068_v24 }
 0x177   :  { %v2573_v2 = vsel %vm7863_vm3, %v2556_v12, %v7951_v58  ;;  %4687 = vrot.lane.b32.xlu1 %v7952_v28, %s5066_s11  ;;  %v2589_v1 = vsel %vm7862_vm10, %v2572_v39, %v7953_v27  ;;  %v7956_v32 = vunpack.i.l.bf16 %v6086_v63  ;;  %v7957_v12 = vunpack.i.h.bf16 %v6086_v63  ;;  %v6501_v39 = vpop.permute.xlu1 %4432 }
 0x178   :  { %v2590_v36 = vsel %vm7862_vm10, %v2573_v2, %v7954_v15  ;;  %4757 = vrot.lane.b32.xlu0 %v7955_v44, %s5064_s29  ;;  %v7958_v58 = vunpack.i.l.bf16 %v6226_v57  ;;  %v7959_v28 = vunpack.i.h.bf16 %v6226_v57  ;;  %v7960_v15 = vrot.slane %v5808_v10, 1  ;;  %v633_v44 = vpop.f32.mrf.mxu0  ;;  %v7963_v10 = vld [vmem:[#allocation12_spill] sm:$0xff] }
 0x179   :  { %v2606_v29 = vsel %vm2605_vm8, %v2589_v1, %v7956_v32  ;;  %v2607_v53 = vsel %vm2605_vm8, %v2590_v36, %v7957_v12  ;;  %vm7961_vm10 = vcmask 1046528   ;;  %v6513_v36 = vpop.permute.xlu0 %4457  ;;  %v4420_v57 = vunpack.i.h.bf16 %v6428_v59 }
 0x17a   :  { %v2623_v2 = vsel %vm2622_vm5, %v2606_v29, %v7958_v58  ;;  %v2624_v27 = vsel %vm2622_vm5, %v2607_v53, %v7959_v28  ;;  %v1263_v1 = vsel %vm7961_vm10, %v7960_v15, %v1262_v62  ;;  %vm7962_vm3 = vmmov %vm7961_vm10  ;;  %v642_v29 = vadd.f32 %v5856_v19, %v4282_v45  ;;  %v7964_v58 = vld [vmem:[#allocation13_spill] sm:$0xff] }
 0x17b   :  { %v1293_v63 = vsel %vm7962_vm3, %v1262_v62, 0.0  ;;  %v2639_v32 = vpack.c.bf16 %v2624_v27, %v2623_v2  ;;  %v4419_v53 = vunpack.i.l.bf16 %v6428_v59  ;;  %v7965_v28 = vpack.i.bf16 %v7963_v10, %v7964_v58  ;;  %v6543_v12 = vpop.permute.xlu1 %4447  ;;  %vm7974_vm10 = vmmov %vm7962_vm3 }
 0x17c   :  { %v7966_v62 = vrot.slane %v6143_v43, 5  ;;  %v1004_v2 = vsel %vm7864_vm9, 0.0, %v974_v61  ;;  %v7967_v45 = vpack.i.bf16 %v6143_v43, %v6083_v3  ;;  %v6534_v9 = vmul.f32 %v5315_v21, %v1263_v1 }
 0x17d   :  { %4692 = vrot.lane.b32.xlu1 %v7965_v28, %s5068_s13  ;;  %4307 = vmatprep.mubr.bf16.mxu1 %v2639_v32  ;;  %v6537_v10 = vmul.f32 %v5330_v34, %v1293_v63  ;;  %v634_v58 = vadd.f32 %v5856_v19, %v633_v44  ;;  %v1265_v38 = vrot.slane %v6143_v43, 1  ;;  %v6550_v1 = vmul.f32 %v5315_v21, %v1004_v2 }
 0x17e   :  { %v976_v15 = vsel %vm7864_vm9, %v974_v61, %v7966_v62  ;;  %4762 = vrot.lane.b32.xlu0 %v7967_v45, %s5066_s11  ;;  %v4425_v61 = vunpack.i.h.bf16 %v6462_v4  ;;  %v4424_v62 = vunpack.i.l.bf16 %v6462_v4  ;;  %v6547_v45 = vpop.permute.xlu0 %4462  ;;  %v6555_v44 = vmax.f32 %v642_v29, 0.0 }
 0x17f   :  { %v6553_v63 = vmul.f32 %v5330_v34, %v976_v15  ;;  %v4435_v52 = vunpack.i.h.bf16 %v6501_v39  ;;  %v4434_v22 = vunpack.i.l.bf16 %v6501_v39  ;;  %v7969_v32 = vpack.i.bf16 %v6249_v26, %v6252_v7  ;;  %v7971_v39 = vld [vmem:[#allocation15_spill] sm:$0xff]  ;;  %v4468_v28 = vpop.permute.xlu1 %4467 }
 0x180   :  { %7968 = vst [vmem:[#allocation12_spill] sm:$0xff] %v6555_v44  ;;  %v4459_v2 = vunpack.i.l.bf16 %v6513_v36  ;;  %v7970_v29 = vpack.i.bf16 %v6274_v6, %v6283_v41  ;;  %v4711_v15 = vpack.i.bf16 %v6537_v10, %v6534_v9  ;;  %v6572_v11 = vmax.f32 %v634_v58, 0.0 }
 0x181   :  { %4697 = vrot.lane.b32.xlu1 %v7969_v32, %s5063_s28  ;;  %v4450_v27 = vunpack.i.h.bf16 %v6543_v12  ;;  %v7972_v26 = vrot.slane %v6083_v3, 1  ;;  %v7973_v32 = vld [vmem:[#allocation14_spill] sm:$0xff]  ;;  %v1332_v6 = vrot.slane %v7971_v39, 3  ;;  %v4449_v41 = vunpack.i.l.bf16 %v6543_v12 }
 0x182   :  { %4767 = vrot.lane.b32.xlu0 %v7970_v29, %s5068_s13  ;;  %v4473_v9 = vpop.permute.xlu0 %4472  ;;  %v4781_v10 = vpack.i.bf16 %v6553_v63, %v6550_v1  ;;  %v1294_v29 = vsel %vm7974_vm10, %v1265_v38, 0.0  ;;  %v4465_v56 = vunpack.i.h.bf16 %v6547_v45  ;;  %v4464_v3 = vunpack.i.l.bf16 %v6547_v45  ;;  %v7975_v63 = vld [vmem:[#allocation17_spill] sm:$0xff] }
 0x183   :  { %v1266_v7 = vsel %vm7962_vm3, %v7972_v26, %v1265_v38  ;;  %v4475_v26 = vunpack.i.h.bf16 %v4473_v9  ;;  %v4474_v51 = vunpack.i.l.bf16 %v4473_v9  ;;  %v4470_v12 = vunpack.i.h.bf16 %v4468_v28  ;;  %v7977_v9 = vld [vmem:[#allocation16_spill] sm:$0xff]  ;;  %v4483_v43 = vpop.permute.xlu1 %4482 }
 0x184   :  { %v4469_v47 = vunpack.i.l.bf16 %v4468_v28  ;;  %v937_v38 = vrot.slane %v6555_v44, 4  ;;  %v1307_v1 = vmul.f32 %v5315_v21, %v1266_v7  ;;  %vm7976_vm3 = vcmask 64512  }
 0x185   :  { %4702 = vrot.lane.b32.xlu1 %v4701_v17, %s5065_s30  ;;  %v2389_v45 = vsel %vm7976_vm3, %v7975_v63, %v4475_v26  ;;  %vm7978_vm10 = vmmov %vm7976_vm3  ;;  %v1308_v48 = vmul.f32 %v5330_v34, %v1294_v29  ;;  %vm7980_vm9 = vcmask 1044480   ;;  %v4485_v28 = vunpack.i.h.bf16 %v4483_v43 }
 0x186   :  { %4772 = vrot.lane.b32.xlu0 %v4771_v60, %s5063_s28  ;;  %v2388_v58 = vsel %vm7978_vm10, %v7977_v9, %v4474_v51  ;;  %v1333_v17 = vsel %vm7980_vm9, %v7979_v0, %v1332_v6  ;;  %v4484_v8 = vunpack.i.l.bf16 %v4483_v43  ;;  %v2406_v60 = vsel %vm2402_vm11, %v2389_v45, %v4470_v12  ;;  %v4478_v7 = vpop.permute.xlu0 %4477  ;;  %vm7981_vm3 = vmmov %vm7980_vm9  ;;  %v4285_v9 = vpop.f32.mrf.mxu0 }
 0x187   :  { %v2405_v30 = vsel %vm2402_vm11, %v2388_v58, %v4469_v47  ;;  %v1204_v51 = vrot.slane %v6555_v44, 7  ;;  %v897_v29 = vrot.slane %v6572_v11, 4  ;;  %v978_v26 = vrot.slane %v6572_v11, 5  ;;  %v6628_v12 = vpop.permute.xlu1 %4492 }
 0x188   :  { %v1359_v63 = vsel %vm7981_vm3, %v1332_v6, 0.0  ;;  %v2422_v43 = vsel %vm2419_vm12, %v2405_v30, %v4484_v8  ;;  %v2423_v47 = vsel %vm2419_vm12, %v2406_v60, %v4485_v28  ;;  %v1268_v18 = vrot.slane %v6572_v11, 1 }
 0x189   :  { %4707 = vrot.lane.b32.xlu1 %v4706_v46, %s5067_s12  ;;  %v655_v5 = vadd.f32 %v5856_v19, %v4285_v9  ;;  %v2439_v46 = vsel %vm2436_vm13, %v2422_v43, %v4434_v22  ;;  %v2440_v58 = vsel %vm2436_vm13, %v2423_v47, %v4435_v52  ;;  %v1373_v6 = vmul.f32 %v5276_v49, %v1333_v17 }
 0x18a   :  { %4777 = vrot.lane.b32.xlu0 %v4776_v14, %s5065_s30  ;;  %v1058_v45 = vrot.slane %v6232_v35, 7  ;;  %v2456_v0 = vsel %vm2453_vm14, %v2439_v46, %v4424_v62  ;;  %v2457_v42 = vsel %vm2453_vm14, %v2440_v58, %v4425_v61  ;;  %v4488_v40 = vpop.permute.xlu0 %4487  ;;  %v4786_v14 = vpack.i.bf16 %v1308_v48, %v1307_v1  ;;  %v646_v62 = vpop.f32.mrf.mxu0 }
 0x18b   :  { %v1374_v22 = vmul.f32 %v5280_v54, %v1359_v63  ;;  %v4480_v28 = vunpack.i.h.bf16 %v4478_v7  ;;  %v4479_v52 = vunpack.i.l.bf16 %v4478_v7  ;;  %v2472_v17 = vsel %vm291_vm0, %v2456_v0, %v4419_v53  ;;  %v6654_v59 = vpop.permute.xlu1 %4497 }
 0x18c   :  { %v2473_v8 = vsel %vm291_vm0, %v2457_v42, %v4420_v57  ;;  %v2489_v4 = vsel %vm2486_vm15, %v2472_v17, %v4449_v41  ;;  %v6649_v1 = vmax.f32 %v655_v5, 0.0  ;;  %v647_v48 = vadd.f32 %v5856_v19, %v646_v62  ;;  %v4286_v46 = vpop.f32.mrf.mxu0 }
 0x18d   :  { %4712 = vrot.lane.b32.xlu1 %v4711_v15, %s5069_s16  ;;  %v2490_v61 = vsel %vm2486_vm15, %v2473_v8, %v4450_v27  ;;  %v2506_v30 = vsel %vm2503_vm1, %v2489_v4, %v4479_v52  ;;  %v7982_v57 = vrot.slane %v7971_v39, 7  ;;  %v1086_v41 = vsel %vm1039_vm4, 0.0, %v1058_v45 }
 0x18e   :  { %4782 = vrot.lane.b32.xlu0 %v4781_v10, %s5067_s12  ;;  %v2507_v53 = vsel %vm2503_vm1, %v2490_v61, %v4480_v28  ;;  %v2523_v27 = vsel %vm2520_vm2, %v2506_v30, %v4464_v3  ;;  %v4490_v60 = vunpack.i.h.bf16 %v4488_v40  ;;  %v4489_v7 = vunpack.i.l.bf16 %v4488_v40  ;;  %v6662_v63 = vpop.permute.xlu0 %4567 }
 0x18f   :  { %v1060_v15 = vsel %vm1039_vm4, %v1058_v45, %v7982_v57  ;;  %v2524_v10 = vsel %vm2520_vm2, %v2507_v53, %v4465_v56  ;;  %v2540_v9 = vsel %vm2537_vm6, %v2523_v27, %v4459_v2  ;;  %v7983_v43 = vunpack.i.h.bf16 %v6513_v36  ;;  %v649_v27 = vpop.f32.mrf.mxu0 }
 0x190   :  { %v7984_v5 = vpack.i.bf16 %v7971_v39, %v6232_v35  ;;  %v4806_v3 = vpack.i.bf16 %v1374_v22, %v1373_v6  ;;  %v4816_v56 = vpack.i.bf16 %v6555_v44, %v6438_v31  ;;  %v2557_v58 = vsel %vm2554_vm7, %v2540_v9, %v4489_v7  ;;  %v6688_v22 = vpop.permute.xlu1 %4502 }
 0x191   :  { %v2541_v47 = vsel %vm2537_vm6, %v2524_v10, %v7983_v43  ;;  %v6679_v2 = vmax.f32 %v647_v48, 0.0  ;;  %v1100_v36 = vmul.f32 %v5276_v49, %v1086_v41  ;;  %v7985_v0 = vunpack.i.l.bf16 %v6384_v50 }
 0x192   :  { %4792 = vrot.lane.b32.xlu1 %v7984_v5, %s5055_s0  ;;  %v2558_v45 = vsel %vm2554_vm7, %v2541_v47, %v4490_v60  ;;  %4787 = vrot.lane.b32.xlu0 %v4786_v14, %s5069_s16  ;;  %vm7986_vm9 = vcmask 785408   ;;  %v7987_v6 = vunpack.i.h.bf16 %v6384_v50  ;;  %v1101_v28 = vmul.f32 %v5280_v54, %v1060_v15  ;;  %v6692_v17 = vpop.permute.xlu0 %4572  ;;  %v8027_v5 = vld [vmem:[#allocation4_spill] sm:$0xff] }
 0x193   :  { %v2574_v42 = vsel %vm7986_vm9, %v2557_v58, %v7985_v0  ;;  %vm7988_vm10 = vmmov %vm7986_vm9  ;;  %v1140_v52 = vrot.slane %v6332_v13, 1  ;;  %v1061_v14 = vrot.slane %v6649_v1, 7  ;;  %v1334_v8 = vrot.slane %v6649_v1, 3 }
 0x194   :  { %v2575_v40 = vsel %vm7988_vm10, %v2558_v45, %v7987_v6  ;;  %v7989_v4 = vunpack.i.l.bf16 %v6436_v20  ;;  %vm7990_vm3 = vcmask 850944   ;;  %v7991_v30 = vpack.i.bf16 %v6332_v13, %v7973_v32  ;;  %v6721_v47 = vpop.permute.xlu1 %4507 }
 0x195   :  { %v7992_v53 = vunpack.i.h.bf16 %v6436_v20  ;;  %vm7993_vm9 = vmmov %vm7990_vm3  ;;  %v7994_v15 = vunpack.i.l.bf16 %v6348_v55  ;;  %v1142_v10 = vrot.slane %v6679_v2, 1  ;;  %v7995_v60 = vunpack.i.h.bf16 %v6348_v55 }
 0x196   :  { %v2591_v50 = vsel %vm7990_vm3, %v2574_v42, %v7989_v4  ;;  %4797 = vrot.lane.b32.xlu1 %v7991_v30, %s5057_s23  ;;  %4807 = vrot.lane.b32.xlu0 %v4806_v3, %s5058_s24  ;;  %v7996_v9 = vunpack.i.l.bf16 %v6467_v33  ;;  %v658_v20 = vadd.f32 %v5856_v19, %v4286_v46  ;;  %v4801_v58 = vpack.i.bf16 %v1101_v28, %v1100_v36  ;;  %v4289_v42 = vpop.f32.mrf.mxu0  ;;  %v6730_v6 = vpop.permute.xlu0 %4577 }
 0x197   :  { %v2592_v57 = vsel %vm7993_vm9, %v2575_v40, %v7992_v53  ;;  %v2608_v41 = vsel %vm2605_vm8, %v2591_v50, %v7994_v15  ;;  %v7997_v45 = vunpack.i.h.bf16 %v6467_v33  ;;  %v7998_v0 = vrot.slane %v7973_v32, 1  ;;  %8000 = vst [vmem:[#allocation13_spill] sm:$0xff] %v6730_v6 }
 0x198   :  { %v2609_v7 = vsel %vm2605_vm8, %v2592_v57, %v7995_v60  ;;  %v2625_v43 = vsel %vm2622_vm5, %v2608_v41, %v7996_v9  ;;  %vm7999_vm10 = vcmask 1046528   ;;  %v650_v46 = vadd.f32 %v5856_v19, %v649_v27  ;;  %v6746_v15 = vpop.permute.xlu1 %4512  ;;  %v662_v9 = vpop.f32.mrf.mxu0 }
 0x199   :  { %v2626_v3 = vsel %vm2622_vm5, %v2609_v7, %v7997_v45  ;;  %v1141_v55 = vsel %vm7999_vm10, %v7998_v0, %v1140_v52  ;;  %vm8001_vm3 = vmmov %vm7999_vm10  ;;  %v6743_v19 = vmax.f32 %v658_v20, 0.0  ;;  %v936_v27 = vrot.slane %v6438_v31, 4 }
 0x19a   :  { %v2640_v4 = vpack.c.bf16 %v2626_v3, %v2625_v43  ;;  %v1167_v50 = vsel %vm8001_vm3, %v1140_v52, 0.0  ;;  %4802 = vrot.lane.b32.xlu1 %v4801_v58, %s5059_s25  ;;  %4817 = vrot.lane.b32.xlu0 %v4816_v56, %s5064_s29  ;;  %v1181_v52 = vmul.f32 %v5315_v21, %v1141_v55  ;;  %v8002_v60 = vrot.slane %v6458_v25, 1  ;;  %vm8003_vm9 = vmmov %vm8001_vm3  ;;  %v6758_v43 = vpop.permute.xlu0 %4582  ;;  %v4290_v28 = vpop.f32.mrf.mxu0 }
 0x19b   :  { %v1182_v41 = vmul.f32 %v5330_v34, %v1167_v50  ;;  %vm8004_vm10 = vmmov %vm8001_vm3  ;;  %v6760_v20 = vmax.f32 %v650_v46, 0.0  ;;  %v4821_v58 = vpack.i.bf16 %v6572_v11, %v6458_v25  ;;  %vm8005_vm3 = vcmask 1043456  }
 0x19c   :  { %4308 = vmatmul.mubr.bf16.vlgmr.msra.gmra.mxu1 %v2640_v4  ;;  %v1269_v7 = vsel %vm8003_vm9, %v8002_v60, %v1268_v18  ;;  %v1295_v56 = vsel %vm8004_vm10, %v1268_v18, 0.0  ;;  %v938_v46 = vsel %vm8005_vm3, %v936_v27, %v937_v38  ;;  %vm8006_vm9 = vmmov %vm8005_vm3  ;;  %v1335_v38 = vrot.slane %v6743_v19, 3 }
 0x19d   :  { %v1309_v45 = vmul.f32 %v5315_v21, %v1269_v7  ;;  %v1310_v3 = vmul.f32 %v5330_v34, %v1295_v56  ;;  %v4811_v50 = vpack.i.bf16 %v1182_v41, %v1181_v52  ;;  %v956_v60 = vsel %vm8006_vm9, 0.0, %v936_v27  ;;  %v5053_v7 = vld [vmem:[%s7832_s3] ss:$0 sm:$0xff]  ;;  %v6782_v41 = vpop.permute.xlu1 %4517  ;;  %vm8009_vm10 = vmmov %vm8005_vm3 }
 0x19e   :  { %4822 = vrot.lane.b32.xlu0 %v4821_v58, %s5066_s11  ;;  %v671_v56 = vadd.f32 %v5053_v7, %v4289_v42  ;;  %v1062_v52 = vrot.slane %v6743_v19, 7  ;;  %v663_v58 = vadd.f32 %v5053_v7, %v662_v9  ;;  %v1143_v30 = vrot.slane %v6760_v20, 1  ;;  %v6787_v0 = vpop.permute.xlu0 %4587 }
 0x19f   :  { %4812 = vrot.lane.b32.xlu1 %v4811_v50, %s5061_s2  ;;  %v4846_v42 = vpack.i.bf16 %v1310_v3, %v1309_v45  ;;  %v4826_v50 = vpack.i.bf16 %v938_v46, %v956_v60  ;;  %v8008_v48 = vrot.slane %v6458_v25, 4  ;;  %v4851_v53 = vpack.i.bf16 %v6743_v19, %v6649_v1 }
 0x1a0   :  { %v6794_v9 = vmax.f32 %v671_v56, 0.0  ;;  %v6809_v56 = vmax.f32 %v663_v58, 0.0  ;;  %v674_v46 = vadd.f32 %v5053_v7, %v4290_v28  ;;  %vm8015_vm9 = vcmask 1042432  }
 0x1a1   :  { %v898_v36 = vsel %vm8009_vm10, %v8008_v48, %v897_v29  ;;  %v8010_v45 = vmov %v8008_v48  ;;  %v6807_v60 = vpop.permute.xlu1 %4522  ;;  %v665_v48 = vpop.f32.mrf.mxu0  ;;  %vm8017_vm10 = vmmov %vm8015_vm9  ;;  %v1063_v11 = vsel %vm1039_vm4, %v1061_v14, %v1062_v52  ;;  %v1087_v62 = vsel %vm1039_vm4, 0.0, %v1061_v14 }
 0x1a2   :  { %4847 = vrot.lane.b32.xlu0 %v4846_v42, %s5069_s16  ;;  %8007 = vst [vmem:[#allocation15_spill] sm:$0xff] %v6794_v9  ;;  %v916_v3 = vsel %vm8005_vm3, 0.0, %v8010_v45  ;;  %v8011_v42 = vrot.slane %v6438_v31, 7  ;;  %v6817_v45 = vpop.permute.xlu0 %4592  ;;  %v666_v28 = vadd.f32 %v5053_v7, %v665_v48  ;;  %vm8019_vm3 = vcmask 1044480  }
 0x1a3   :  { %4827 = vrot.lane.b32.xlu1 %v4826_v50, %s5068_s13  ;;  %8012 = vst [vmem:[#allocation14_spill] sm:$0xff] %v6817_v45  ;;  %v8035_v57 = vrot.slane %v6794_v9, 7  ;;  %v8049_v44 = vrot.slane %v7973_v32, 4 }
 0x1a4   :  { %v1205_v29 = vsel %vm1039_vm4, %v8011_v42, %v1204_v51  ;;  %v8013_v50 = vmov %v8011_v42  ;;  %v4831_v51 = vpack.i.bf16 %v898_v36, %v916_v3  ;;  %v939_v42 = vrot.slane %v6794_v9, 4 }
 0x1a5   :  { %v1231_v58 = vsel %vm1039_vm4, 0.0, %v8013_v50  ;;  %v1246_v4 = vmul.f32 %v5280_v54, %v1205_v29  ;;  %v899_v50 = vrot.slane %v6809_v56, 4  ;;  %v6834_v33 = vpop.permute.xlu1 %4527  ;;  %v8014_v36 = vrot.slane %v6458_v25, 5 }
 0x1a6   :  { %4852 = vrot.lane.b32.xlu0 %v4851_v53, %s5055_s0  ;;  %v1245_v61 = vmul.f32 %v5276_v49, %v1231_v58  ;;  %v6845_v29 = vmax.f32 %v674_v46, 0.0  ;;  %v6847_v48 = vpop.permute.xlu0 %4597  ;;  %v6859_v55 = vmax.f32 %v666_v28, 0.0  ;;  %v1336_v28 = vsel %vm8019_vm3, %v1334_v8, %v1335_v38 }
 0x1a7   :  { %4832 = vrot.lane.b32.xlu1 %v4831_v51, %s5063_s28  ;;  %v979_v3 = vsel %vm8015_vm9, %v8014_v36, %v978_v26  ;;  %v8016_v53 = vmov %v8014_v36  ;;  %v4856_v51 = vpack.i.bf16 %v6760_v20, %v6679_v2  ;;  %vm8020_vm9 = vmmov %vm8019_vm3 }
 0x1a8   :  { %v1005_v58 = vsel %vm8017_vm10, 0.0, %v8016_v53  ;;  %8018 = vst [vmem:[#allocation17_spill] sm:$0xff] %v6845_v29  ;;  %v4836_v26 = vpack.i.bf16 %v1246_v4, %v1245_v61  ;;  %v1020_v36 = vmul.f32 %v5330_v34, %v979_v3  ;;  %v1102_v4 = vmul.f32 %v5276_v49, %v1087_v62 }
 0x1a9   :  { %v1019_v25 = vmul.f32 %v5315_v21, %v1005_v58  ;;  %v6867_v61 = vpop.permute.xlu1 %4532  ;;  %v1103_v3 = vmul.f32 %v5280_v54, %v1063_v11  ;;  %v940_v14 = vrot.slane %v6845_v29, 4  ;;  %v1360_v62 = vsel %vm8020_vm9, %v1335_v38, 0.0 }
 0x1aa   :  { %4857 = vrot.lane.b32.xlu0 %v4856_v51, %s5057_s23  ;;  %v1207_v51 = vrot.slane %v6845_v29, 7  ;;  %v6879_v52 = vpop.permute.xlu0 %4602  ;;  %v1375_v53 = vmul.f32 %v5276_v49, %v1336_v28  ;;  %v1376_v46 = vmul.f32 %v5280_v54, %v1360_v62  ;;  %v900_v58 = vrot.slane %v6859_v55, 4 }
 0x1ab   :  { %4837 = vrot.lane.b32.xlu1 %v4836_v26, %s5065_s30  ;;  %v4841_v26 = vpack.i.bf16 %v1020_v36, %v1019_v25  ;;  %v4861_v11 = vpack.i.bf16 %v1103_v3, %v1102_v4  ;;  %vm8021_vm10 = vcmask 1046528   ;;  %v981_v36 = vrot.slane %v6859_v55, 5  ;;  %v8025_v25 = vld [vmem:[#allocation5_spill] sm:$0xff] }
 0x1ac   :  { %v1144_v40 = vsel %vm8021_vm10, %v1142_v10, %v1143_v30  ;;  %vm8022_vm3 = vmmov %vm8021_vm10  ;;  %vm8023_vm9 = vcmask 1043456   ;;  %v8026_v27 = vrot.slane %v8025_v25, 3  ;;  %v4866_v7 = vpack.i.bf16 %v1376_v46, %v1375_v53  ;;  %v8033_v46 = vld [vmem:[#allocation7_spill] sm:$0xff]  ;;  %v8036_v10 = vld [vmem:[#allocation6_spill] sm:$0xff] }
 0x1ad   :  { %v1168_v38 = vsel %vm8022_vm3, %v1143_v30, 0.0  ;;  %v6900_v4 = vpop.permute.xlu1 %4537  ;;  %v1183_v3 = vmul.f32 %v5315_v21, %v1144_v40  ;;  %v941_v30 = vsel %vm8023_vm9, %v939_v42, %v940_v14  ;;  %vm8024_vm10 = vmmov %vm8023_vm9  ;;  %vm8029_vm3 = vcmask 1044480  }
 0x1ae   :  { %4862 = vrot.lane.b32.xlu0 %v4861_v11, %s5059_s25  ;;  %v1184_v28 = vmul.f32 %v5330_v34, %v1168_v38  ;;  %v6905_v62 = vpop.permute.xlu0 %4607  ;;  %v957_v8 = vsel %vm8024_vm10, 0.0, %v939_v42  ;;  %v4876_v18 = vpack.i.bf16 %v6845_v29, %v6794_v9  ;;  %v901_v14 = vsel %vm8023_vm9, %v899_v50, %v900_v58  ;;  %vm8030_vm10 = vmmov %vm8023_vm9 }
 0x1af   :  { %4842 = vrot.lane.b32.xlu1 %v4841_v26, %s5067_s12  ;;  %v8028_v26 = vrot.slane %v8027_v5, 3  ;;  %v917_v42 = vsel %vm8030_vm10, 0.0, %v899_v50  ;;  %v1232_v58 = vsel %vm1039_vm4, 0.0, %v8035_v57  ;;  %v8038_v50 = vld [vmem:[#allocation9_spill] sm:$0xff]  ;;  %vm8040_vm9 = vcmask 1042432  }
 0x1b0   :  { %v4871_v38 = vpack.i.bf16 %v1184_v28, %v1183_v3  ;;  %v8034_v3 = vrot.slane %v8033_v46, 3  ;;  %v1247_v46 = vmul.f32 %v5276_v49, %v1232_v58  ;;  %v851_v25 = vmul.f32 %v5276_v49, %v8038_v50  ;;  %vm8042_vm10 = vmmov %vm8040_vm9 }
 0x1b1   :  { %v805_v11 = vsel %vm8029_vm3, %v8028_v26, %v8026_v27  ;;  %v4543_v5 = vpop.permute.xlu1 %4542  ;;  %v4886_v27 = vpack.i.bf16 %v941_v30, %v957_v8  ;;  %v8031_v26 = vld [vmem:[#allocation8_spill] sm:$0xff]  ;;  %v8037_v8 = vmov %v8035_v57  ;;  %v8044_v50 = vrot.slane %v6679_v2, 4 }
 0x1b2   :  { %4872 = vrot.lane.b32.xlu0 %v4871_v38, %s5061_s2  ;;  %v8032_v53 = vrot.slane %v8031_v26, 3  ;;  %v6933_v40 = vpop.permute.xlu0 %4612  ;;  %v850_v38 = vmul.f32 %v5280_v54, %v805_v11  ;;  %v1208_v30 = vsel %vm1039_vm4, %v8037_v8, %v1207_v51  ;;  %v4881_v26 = vpack.i.bf16 %v6859_v55, %v6809_v56 }
 0x1b3   :  { %4867 = vrot.lane.b32.xlu1 %v4866_v7, %s5058_s24  ;;  %v849_v7 = vmul.f32 %v5276_v49, %v8036_v10  ;;  %v1248_v57 = vmul.f32 %v5280_v54, %v1208_v30  ;;  %v8039_v10 = vrot.slane %v6809_v56, 5  ;;  %v8043_v8 = vrot.slane %v6760_v20, 4 }
 0x1b4   :  { %v808_v28 = vsel %vm8029_vm3, %v8034_v3, %v8032_v53  ;;  %v4891_v53 = vpack.i.bf16 %v901_v14, %v917_v42  ;;  %v4545_v3 = vunpack.i.h.bf16 %v4543_v5  ;;  %vm8045_vm4 = vcmask 1043456  }
 0x1b5   :  { %v982_v11 = vsel %vm8040_vm9, %v8039_v10, %v981_v36  ;;  %v8041_v31 = vmov %v8039_v10  ;;  %v4548_v14 = vpop.permute.xlu1 %4547  ;;  %v1400_v30 = vsel %vm8045_vm4, %v8044_v50, %v8043_v8  ;;  %v8046_v36 = vmov %v8043_v8  ;;  %vm8047_vm3 = vmmov %vm8045_vm4 }
 0x1b6   :  { %v1006_v51 = vsel %vm8042_vm10, 0.0, %v8041_v31  ;;  %4887 = vrot.lane.b32.xlu0 %v4886_v27, %s5068_s13  ;;  %v1022_v58 = vmul.f32 %v5330_v34, %v982_v11  ;;  %v1416_v10 = vsel %vm8047_vm3, %v8046_v36, 0.0  ;;  %v4550_v31 = vunpack.i.h.bf16 %v4548_v14  ;;  %vm8050_vm9 = vmmov %vm8047_vm3 }
 0x1b7   :  { %4877 = vrot.lane.b32.xlu1 %v4876_v18, %s5064_s29  ;;  %v1021_v42 = vmul.f32 %v5315_v21, %v1006_v51  ;;  %v4549_v49 = vunpack.i.l.bf16 %v4548_v14  ;;  %v4618_v18 = vpop.permute.xlu0 %4617  ;;  %v8048_v27 = vrot.slane %v6332_v13, 4  ;;  %vm8052_vm10 = vmmov %vm8047_vm3  ;;  %v4544_v16 = vunpack.i.l.bf16 %v4543_v5 }
 0x1b8   :  { %v4615_v8 = vunpack.i.h.bf16 %v6933_v40  ;;  %v852_v50 = vmul.f32 %v5280_v54, %v808_v28  ;;  %v4896_v29 = vpack.i.bf16 %v1248_v57, %v1247_v46  ;;  %vm8053_vm4 = vcmask 64512  }
 0x1b9   :  { %v1397_v51 = vsel %vm8050_vm9, %v8049_v44, %v8048_v27  ;;  %v8051_v11 = vmov %v8048_v27  ;;  %v2391_v36 = vsel %vm8053_vm4, %v850_v38, %v4550_v31  ;;  %vm8054_vm3 = vmmov %vm8053_vm4  ;;  %v4620_v9 = vunpack.i.h.bf16 %v4618_v18  ;;  %v4553_v44 = vpop.permute.xlu1 %4552 }
 0x1ba   :  { %v1415_v24 = vsel %vm8052_vm10, %v8051_v11, 0.0  ;;  %v2390_v14 = vsel %vm8054_vm3, %v849_v7, %v4549_v49  ;;  %v4911_v6 = vpack.i.bf16 %v1416_v10, %v1400_v30  ;;  %4892 = vrot.lane.b32.xlu0 %v4891_v53, %s5063_s28  ;;  %v4901_v27 = vpack.i.bf16 %v1022_v58, %v1021_v42  ;;  %vm8058_vm10 = vmmov %vm8050_vm9 }
 0x1bb   :  { %4882 = vrot.lane.b32.xlu1 %v4881_v26, %s5066_s11  ;;  %v4906_v45 = vpack.i.bf16 %v1415_v24, %v1397_v51  ;;  %v8055_v5 = vrot.slane %v6743_v19, 4  ;;  %v8056_v11 = vrot.slane %v6649_v1, 4  ;;  %v4623_v49 = vpop.permute.xlu0 %4622  ;;  %v2407_v7 = vsel %vm2402_vm11, %v2390_v14, %v4544_v16  ;;  %vm8060_vm4 = vmmov %vm8050_vm9 }
 0x1bc   :  { %v2408_v26 = vsel %vm2402_vm11, %v2391_v36, %v4545_v3  ;;  %v8059_v53 = vrot.slane %v7971_v39, 4  ;;  %v8061_v24 = vrot.slane %v6859_v55, 1  ;;  %v8062_v42 = vrot.slane %v6809_v56, 1 }
 0x1bd   :  { %v1440_v28 = vsel %vm8050_vm9, %v8056_v11, %v8055_v5  ;;  %v8057_v46 = vmov %v8055_v5  ;;  %vm8063_vm3 = vcmask 1046528   ;;  %v4625_v58 = vunpack.i.h.bf16 %v4623_v49  ;;  %vm8066_vm9 = vmmov %vm8060_vm4 }
 0x1be   :  { %v1456_v38 = vsel %vm8058_vm10, %v8057_v46, 0.0  ;;  %v1455_v57 = vsel %vm8060_vm4, %v8059_v53, 0.0  ;;  %v1272_v1 = vsel %vm8063_vm3, %v8062_v42, %v8061_v24  ;;  %v4624_v30 = vunpack.i.l.bf16 %v4623_v49  ;;  %vm8068_vm10 = vmmov %vm8063_vm3  ;;  %4902 = vrot.lane.b32.xlu0 %v4901_v27, %s5067_s12  ;;  %v4558_v49 = vpop.permute.xlu1 %4557 }
 0x1bf   :  { %v8064_v19 = vmov %v8059_v53  ;;  %v8065_v10 = vrot.slane %v6232_v35, 4  ;;  %v8067_v3 = vmov %v8061_v24  ;;  %v7006_v51 = vmul.f32 %v5315_v21, %v1272_v1  ;;  %4897 = vrot.lane.b32.xlu1 %v4896_v29, %s5065_s30  ;;  %v7023_v1 = vpop.permute.xlu0 %4627 }
 0x1c0   :  { %v1296_v31 = vsel %vm8068_vm10, %v8067_v3, 0.0  ;;  %v8069_v56 = vrot.slane %v6332_v13, 5  ;;  %v8070_v14 = vrot.slane %v7973_v32, 5  ;;  %vm8071_vm4 = vcmask 1042432  }
 0x1c1   :  { %v1437_v16 = vsel %vm8066_vm9, %v8065_v10, %v8064_v19  ;;  %v7009_v36 = vmul.f32 %v5330_v34, %v1296_v31  ;;  %vm8073_vm3 = vmmov %vm8071_vm4  ;;  %v4619_v11 = vunpack.i.l.bf16 %v4618_v18  ;;  %vm8074_vm9 = vcmask 64512  }
 0x1c2   :  { %v1477_v39 = vsel %vm8071_vm4, %v8070_v14, %v8069_v56  ;;  %v8072_v35 = vmov %v8069_v56  ;;  %v2393_v55 = vsel %vm8074_vm9, %v852_v50, %v4625_v58  ;;  %vm8075_vm10 = vmmov %vm8074_vm9  ;;  %v4921_v53 = vpack.i.bf16 %v1456_v38, %v1440_v28  ;;  %4907 = vrot.lane.b32.xlu0 %v4906_v45, %s5060_s26 }
 0x1c3   :  { %v1503_v5 = vsel %vm8073_vm3, %v8072_v35, 0.0  ;;  %v2392_v46 = vsel %vm8075_vm10, %v851_v25, %v4624_v30  ;;  %v4555_v24 = vunpack.i.h.bf16 %v4553_v44  ;;  %v4560_v42 = vunpack.i.h.bf16 %v4558_v49  ;;  %4912 = vrot.lane.b32.xlu1 %v4911_v6, %s5060_s26  ;;  %vm8080_vm4 = vmmov %vm8073_vm3 }
 0x1c4   :  { %v4559_v32 = vunpack.i.l.bf16 %v4558_v49  ;;  %v1517_v13 = vmul.f32 %v5315_v21, %v1477_v39  ;;  %v4554_v19 = vunpack.i.l.bf16 %v4553_v44  ;;  %v2409_v18 = vsel %vm2402_vm11, %v2392_v46, %v4619_v11 }
 0x1c5   :  { %v4916_v10 = vpack.i.bf16 %v1455_v57, %v1437_v16  ;;  %v1518_v50 = vmul.f32 %v5330_v34, %v1503_v5  ;;  %v2425_v29 = vsel %vm2419_vm12, %v2408_v26, %v4560_v42  ;;  %v2410_v27 = vsel %vm2402_vm11, %v2393_v55, %v4620_v9 }
 0x1c6   :  { %v2424_v25 = vsel %vm2419_vm12, %v2407_v7, %v4559_v32  ;;  %v4931_v28 = vpack.i.bf16 %v7009_v36, %v7006_v51  ;;  %v8076_v38 = vunpack.i.l.bf16 %v6721_v47  ;;  %v8077_v44 = vunpack.i.h.bf16 %v6721_v47  ;;  %v4563_v7 = vpop.permute.xlu1 %4562  ;;  %v4633_v36 = vpop.permute.xlu0 %4632 }
 0x1c7   :  { %v8078_v26 = vrot.slane %v6760_v20, 5  ;;  %v8079_v9 = vrot.slane %v6679_v2, 5  ;;  %v8082_v31 = vunpack.i.l.bf16 %v6654_v59  ;;  %v8083_v51 = vunpack.i.h.bf16 %v6654_v59  ;;  %4922 = vrot.lane.b32.xlu1 %v4921_v53, %s5056_s22  ;;  %4917 = vrot.lane.b32.xlu0 %v4916_v10, %s5056_s22 }
 0x1c8   :  { %v2441_v58 = vsel %vm2436_vm13, %v2424_v25, %v8076_v38  ;;  %v2442_v30 = vsel %vm2436_vm13, %v2425_v29, %v8077_v44  ;;  %v4565_v45 = vunpack.i.h.bf16 %v4563_v7  ;;  %v4926_v56 = vpack.i.bf16 %v1518_v50, %v1517_v13 }
 0x1c9   :  { %v1480_v57 = vsel %vm8080_vm4, %v8079_v9, %v8078_v26  ;;  %v8081_v16 = vmov %v8078_v26  ;;  %v2458_v47 = vsel %vm2453_vm14, %v2441_v58, %v8082_v31  ;;  %v2459_v6 = vsel %vm2453_vm14, %v2442_v30, %v8083_v51 }
 0x1ca   :  { %v1504_v3 = vsel %vm8073_vm3, %v8081_v16, 0.0  ;;  %v8084_v14 = vunpack.i.l.bf16 %v6628_v12  ;;  %v8085_v39 = vunpack.i.h.bf16 %v6628_v12  ;;  %v4635_v35 = vunpack.i.h.bf16 %v4633_v36  ;;  %v4638_v53 = vpop.permute.xlu0 %4637 }
 0x1cb   :  { %v4634_v5 = vunpack.i.l.bf16 %v4633_v36  ;;  %v4564_v11 = vunpack.i.l.bf16 %v4563_v7  ;;  %v8086_v55 = vunpack.i.l.bf16 %v6807_v60  ;;  %v8087_v46 = vunpack.i.h.bf16 %v6807_v60  ;;  %v7079_v60 = vpop.permute.xlu1 %4642  ;;  %4932 = vrot.lane.b32.xlu1 %v4931_v28, %s5069_s16  ;;  %4927 = vrot.lane.b32.xlu0 %v4926_v56, %s5062_s27 }
 0x1cc   :  { %v2474_v2 = vsel %vm291_vm0, %v2458_v47, %v8084_v14  ;;  %v2475_v20 = vsel %vm291_vm0, %v2459_v6, %v8085_v39  ;;  %v8088_v42 = vrot.slane %v5837_v37, 3  ;;  %v8089_v32 = vrot.slane %v5797_v23, 3 }
 0x1cd   :  { %v2491_v59 = vsel %vm2486_vm15, %v2474_v2, %v8086_v55  ;;  %v2492_v49 = vsel %vm2486_vm15, %v2475_v20, %v8087_v46  ;;  %vm8090_vm9 = vcmask 1044480   ;;  %v2426_v25 = vsel %vm2419_vm12, %v2409_v18, %v4634_v5 }
 0x1ce   :  { %v7072_v13 = vsel %vm8090_vm9, %v8089_v32, %v8088_v42  ;;  %v2508_v12 = vsel %vm2503_vm1, %v2491_v59, %v4554_v19  ;;  %v2509_v50 = vsel %vm2503_vm1, %v2492_v49, %v4555_v24  ;;  %v2427_v29 = vsel %vm2419_vm12, %v2410_v27, %v4635_v35  ;;  %v7132_v55 = vpop.permute.xlu0 %4717 }
 0x1cf   :  { %v8091_v38 = vunpack.i.l.bf16 %v6900_v4  ;;  %v8092_v58 = vunpack.i.h.bf16 %v6900_v4  ;;  %v8093_v19 = vunpack.i.l.bf16 %v6758_v43  ;;  %v8094_v18 = vunpack.i.h.bf16 %v6758_v43 }
 0x1d0   :  { %v8095_v30 = vunpack.i.l.bf16 %v6867_v61  ;;  %v8096_v26 = vunpack.i.h.bf16 %v6867_v61  ;;  %v8097_v9 = vunpack.i.l.bf16 %v6692_v17  ;;  %v8098_v31 = vunpack.i.h.bf16 %v6692_v17  ;;  %v7117_v17 = vpop.permute.xlu1 %4647 }
 0x1d1   :  { %v2525_v37 = vsel %vm2520_vm2, %v2508_v12, %v8091_v38  ;;  %v2526_v44 = vsel %vm2520_vm2, %v2509_v50, %v8092_v58  ;;  %v2443_v24 = vsel %vm2436_vm13, %v2426_v25, %v8093_v19  ;;  %v2444_v27 = vsel %vm2436_vm13, %v2427_v29, %v8094_v18 }
 0x1d2   :  { %v2542_v7 = vsel %vm2537_vm6, %v2525_v37, %v8095_v30  ;;  %v2543_v4 = vsel %vm2537_vm6, %v2526_v44, %v8096_v26  ;;  %v2460_v16 = vsel %vm2453_vm14, %v2443_v24, %v8097_v9  ;;  %v2461_v43 = vsel %vm2453_vm14, %v2444_v27, %v8098_v31  ;;  %v7157_v58 = vpop.permute.xlu0 %4722  ;;  %v8117_v26 = vld [vmem:[#allocation14_spill] sm:$0xff] }
 0x1d3   :  { %v2559_v47 = vsel %vm2554_vm7, %v2542_v7, %v4564_v11  ;;  %v2560_v10 = vsel %vm2554_vm7, %v2543_v4, %v4565_v45  ;;  %v8099_v51 = vunpack.i.l.bf16 %v6662_v63  ;;  %v8100_v61 = vunpack.i.h.bf16 %v6662_v63 }
 0x1d4   :  { %v4630_v14 = vunpack.i.h.bf16 %v7023_v1  ;;  %v4629_v2 = vunpack.i.l.bf16 %v7023_v1  ;;  %v1519_v39 = vmul.f32 %v5315_v21, %v1480_v57  ;;  %v1520_v45 = vmul.f32 %v5330_v34, %v1504_v3  ;;  %v7148_v50 = vpop.permute.xlu1 %4652 }
 0x1d5   :  { %v2476_v6 = vsel %vm291_vm0, %v2460_v16, %v8099_v51  ;;  %v2477_v36 = vsel %vm291_vm0, %v2461_v43, %v8100_v61  ;;  %v4614_v20 = vunpack.i.l.bf16 %v6933_v40  ;;  %v8101_v35 = vunpack.i.l.bf16 %v6746_v15 }
 0x1d6   :  { %vm8102_vm10 = vcmask 785408   ;;  %v8103_v5 = vunpack.i.l.bf16 %v6847_v48  ;;  %v8104_v1 = vunpack.i.h.bf16 %v6847_v48  ;;  %v4609_v21 = vunpack.i.l.bf16 %v6905_v62 }
 0x1d7   :  { %v2576_v63 = vsel %vm8102_vm10, %v2559_v47, %v8101_v35  ;;  %v8105_v34 = vunpack.i.h.bf16 %v6746_v15  ;;  %vm8106_vm4 = vmmov %vm8102_vm10  ;;  %v4640_v46 = vunpack.i.h.bf16 %v4638_v53  ;;  %v4639_v49 = vunpack.i.l.bf16 %v4638_v53  ;;  %v8122_v47 = vld [vmem:[#allocation13_spill] sm:$0xff] }
 0x1d8   :  { %v2493_v11 = vsel %vm2486_vm15, %v2476_v6, %v8103_v5  ;;  %v2494_v28 = vsel %vm2486_vm15, %v2477_v36, %v8104_v1  ;;  %v8107_v32 = vunpack.i.h.bf16 %v6905_v62  ;;  %v4936_v12 = vpack.i.bf16 %v1520_v45, %v1519_v39  ;;  %vm8111_vm9 = vmmov %vm8106_vm4  ;;  %v7184_v43 = vpop.permute.xlu1 %4657  ;;  %v8125_v36 = vld [vmem:[#allocation15_spill] sm:$0xff]  ;;  %v7195_v45 = vpop.permute.xlu0 %4727 }
 0x1d9   :  { %v2577_v57 = vsel %vm8106_vm4, %v2560_v10, %v8105_v34  ;;  %v2510_v3 = vsel %vm2503_vm1, %v2493_v11, %v4629_v2  ;;  %v2511_v59 = vsel %vm2503_vm1, %v2494_v28, %v4630_v14  ;;  %v8108_v25 = vunpack.i.l.bf16 %v6782_v41  ;;  %vm8113_vm10 = vmmov %vm8106_vm4  ;;  %v8126_v2 = vld [vmem:[#allocation17_spill] sm:$0xff]  ;;  %v8127_v11 = vld [vmem:[#allocation11_spill] sm:$0xff] }
 0x1da   :  { %v2527_v48 = vsel %vm2520_vm2, %v2510_v3, %v4614_v20  ;;  %v2528_v56 = vsel %vm2520_vm2, %v2511_v59, %v4615_v8  ;;  %vm8109_vm3 = vcmask 850944   ;;  %v4530_v38 = vunpack.i.h.bf16 %v6834_v33  ;;  %4937 = vrot.lane.b32.xlu1 %v4936_v12, %s5062_s27  ;;  %v8129_v28 = vld [vmem:[#allocation10_spill] sm:$0xff]  ;;  %v8132_v3 = vld [vmem:[#allocation12_spill] sm:$0xff] }
 0x1db   :  { %v2544_v42 = vsel %vm2537_vm6, %v2527_v48, %v4609_v21  ;;  %v2545_v15 = vsel %vm2537_vm6, %v2528_v56, %v8107_v32  ;;  %v2593_v29 = vsel %vm8109_vm3, %v2576_v63, %v8108_v25  ;;  %v4529_v37 = vunpack.i.l.bf16 %v6834_v33  ;;  %vm8115_vm4 = vmmov %vm8109_vm3 }
 0x1dc   :  { %v2561_v40 = vsel %vm2554_vm7, %v2544_v42, %v4639_v49  ;;  %v2562_v8 = vsel %vm2554_vm7, %v2545_v15, %v4640_v46  ;;  %v4605_v62 = vunpack.i.h.bf16 %v6879_v52  ;;  %v4604_v44 = vunpack.i.l.bf16 %v6879_v52  ;;  %v8134_v46 = vld [vmem:[#allocation18_spill] sm:$0xff]  ;;  %v7213_v56 = vpop.permute.xlu0 %4732 }
 0x1dd   :  { %v8110_v19 = vunpack.i.l.bf16 %v6787_v0  ;;  %v8112_v18 = vunpack.i.h.bf16 %v6787_v0  ;;  %v8114_v33 = vunpack.i.h.bf16 %v6782_v41  ;;  %v8116_v30 = vunpack.i.l.bf16 %v6688_v22 }
 0x1de   :  { %v8118_v52 = vunpack.i.l.bf16 %v8117_v26  ;;  %v8119_v9 = vunpack.i.h.bf16 %v8117_v26  ;;  %v8121_v16 = vunpack.i.h.bf16 %v6688_v22  ;;  %v8123_v10 = vunpack.i.l.bf16 %v8122_v47 }
 0x1df   :  { %v2578_v24 = vsel %vm8111_vm9, %v2561_v40, %v8110_v19  ;;  %v2579_v27 = vsel %vm8113_vm10, %v2562_v8, %v8112_v18  ;;  %v2594_v53 = vsel %vm8115_vm4, %v2577_v57, %v8114_v33  ;;  %v2610_v7 = vsel %vm2605_vm8, %v2593_v29, %v8116_v30  ;;  %vm8120_vm9 = vmmov %vm8109_vm3  ;;  %v7204_v57 = vpop.permute.xlu1 %4662 }
 0x1e0   :  { %v2595_v4 = vsel %vm8109_vm3, %v2578_v24, %v8118_v52  ;;  %v2596_v0 = vsel %vm8120_vm9, %v2579_v27, %v8119_v9  ;;  %v2611_v31 = vsel %vm2605_vm8, %v2594_v53, %v8121_v16  ;;  %v2627_v41 = vsel %vm2622_vm5, %v2610_v7, %v4529_v37  ;;  %v7222_v15 = vpop.permute.xlu0 %4737 }
 0x1e1   :  { %v2612_v51 = vsel %vm2605_vm8, %v2595_v4, %v8123_v10  ;;  %v8124_v6 = vunpack.i.h.bf16 %v8122_v47  ;;  %v7880_v14 = vrot.slane %v8125_v36, 3  ;;  %v819_v39 = vrot.slane %v8126_v2, 3 }
 0x1e2   :  { %v2628_v22 = vsel %vm2622_vm5, %v2611_v31, %v4530_v38  ;;  %v2629_v20 = vsel %vm2622_vm5, %v2612_v51, %v4604_v44  ;;  %v8128_v1 = vrot.slane %v8127_v11, 3  ;;  %v8130_v21 = vrot.slane %v8129_v28, 3 }
 0x1e3   :  { %v2613_v61 = vsel %vm2605_vm8, %v2596_v0, %v8124_v6  ;;  %v2641_v35 = vpack.c.bf16 %v2628_v22, %v2627_v41  ;;  %vm8131_vm10 = vcmask 1044480   ;;  %v8133_v59 = vrot.slane %v8132_v3, 3  ;;  %v7220_v32 = vpop.permute.xlu1 %4667 }
 0x1e4   :  { %v2630_v63 = vsel %vm2622_vm5, %v2613_v61, %v4605_v62  ;;  %v814_v34 = vsel %vm8131_vm10, %v8130_v21, %v8128_v1  ;;  %v8135_v49 = vrot.slane %v8134_v46, 3  ;;  %vm8136_vm4 = vmmov %vm8131_vm10  ;;  %v7226_v25 = vpop.permute.xlu0 %4742  ;;  %v8138_v24 = vrot.slane %v5797_v23, 3  ;;  %v8142_v61 = vld [vmem:[#allocation3_spill] sm:$0xff] }
 0x1e5   :  { %v2642_v5 = vpack.c.bf16 %v2630_v63, %v2629_v20  ;;  %4311 = vmatprep.mubr.bf16.mxu1 %v2641_v35  ;;  %vm8137_vm3 = vmmov %vm8136_vm4  ;;  %v8140_v27 = vmov %v8130_v21  ;;  %v4645_v53 = vunpack.i.h.bf16 %v7079_v60  ;;  %v4644_v30 = vunpack.i.l.bf16 %v7079_v60 }
 0x1e6   :  { %v7211_v48 = vsel %vm8136_vm4, %v8135_v49, %v8133_v59  ;;  %v7218_v42 = vsel %vm8137_vm3, %v7880_v14, %v819_v39  ;;  %vm8139_vm9 = vmmov %vm8137_vm3  ;;  %v4650_v7 = vunpack.i.h.bf16 %v7117_v17  ;;  %v4649_v26 = vunpack.i.l.bf16 %v7117_v17 }
 0x1e7   :  { %4312 = vmatmul.mubr.bf16.gmra.mxu1 %v2642_v5  ;;  %v7224_v12 = vpop.permute.xlu1 %4672  ;;  %v841_v18 = vsel %vm8139_vm9, 0.0, %v8138_v24  ;;  %vm8141_vm10 = vmmov %vm8137_vm3  ;;  %v4725_v0 = vunpack.i.h.bf16 %v7157_v58  ;;  %v4724_v16 = vunpack.i.l.bf16 %v7157_v58  ;;  %v4660_v41 = vunpack.i.h.bf16 %v7184_v43 }
 0x1e8   :  { %v7230_v38 = vpop.permute.xlu0 %4747  ;;  %v842_v33 = vsel %vm8141_vm10, 0.0, %v8140_v27  ;;  %v4659_v47 = vunpack.i.l.bf16 %v7184_v43  ;;  %v853_v2 = vmul.f32 %v8142_v61, %v841_v18  ;;  %v854_v39 = vmul.f32 %v5280_v54, %v7072_v13 }
 0x1e9   :  { %v855_v22 = vmul.f32 %v8142_v61, %v842_v33  ;;  %v856_v20 = vmul.f32 %v5280_v54, %v814_v34  ;;  %v4735_v11 = vunpack.i.h.bf16 %v7213_v56  ;;  %v4734_v1 = vunpack.i.l.bf16 %v7213_v56 }
 0x1ea   :  { %v4675_v34 = vunpack.i.h.bf16 %v7224_v12  ;;  %v4674_v49 = vunpack.i.l.bf16 %v7224_v12  ;;  %vm8143_vm4 = vcmask 64512   ;;  %v8147_v56 = vunpack.i.l.bf16 %v7132_v55 }
 0x1eb   :  { %v7228_v29 = vpop.permute.xlu1 %4677  ;;  %vm8144_vm3 = vmmov %vm8143_vm4 }
 0x1ec   :  { %v7234_v40 = vpop.permute.xlu0 %4752  ;;  %vm8145_vm9 = vmmov %vm8144_vm3 }
 0x1ed   :  { %vm8146_vm10 = vmmov %vm8144_vm3 }
 0x1ef   :  { %v7232_v37 = vpop.permute.xlu1 %4682 }
 0x1f0   :  { %v7238_v62 = vpop.permute.xlu0 %4757  ;;  %v4685_v9 = vunpack.i.h.bf16 %v7232_v37  ;;  %v4684_v13 = vunpack.i.l.bf16 %v7232_v37 }
 0x1f3   :  { %v7236_v8 = vpop.permute.xlu1 %4687 }
 0x1f4   :  { %v7240_v19 = vpop.permute.xlu0 %4762  ;;  %v4690_v18 = vunpack.i.h.bf16 %v7236_v8  ;;  %v4689_v27 = vunpack.i.l.bf16 %v7236_v8 }
 0x1f7   :  { %v4693_v44 = vpop.permute.xlu1 %4692 }
 0x1f8   :  { %v4768_v6 = vpop.permute.xlu0 %4767  ;;  %v4695_v12 = vunpack.i.h.bf16 %v4693_v44  ;;  %v4694_v59 = vunpack.i.l.bf16 %v4693_v44 }
 0x1f9   :  { %v4769_v37 = vunpack.i.l.bf16 %v4768_v6 }
 0x1fb   :  { %v4698_v31 = vpop.permute.xlu1 %4697 }
 0x1fc   :  { %v4700_v5 = vunpack.i.h.bf16 %v4698_v31  ;;  %v4699_v43 = vunpack.i.l.bf16 %v4698_v31  ;;  %v4773_v24 = vpop.permute.xlu0 %4772 }
 0x1fd   :  { %v4775_v33 = vunpack.i.h.bf16 %v4773_v24  ;;  %v4774_v31 = vunpack.i.l.bf16 %v4773_v24 }
 0x1fe   :  { %v2395_v51 = vsel %vm8143_vm4, %v854_v39, %v4700_v5  ;;  %v2394_v23 = vsel %vm8144_vm3, %v853_v2, %v4699_v43  ;;  %v4770_v43 = vunpack.i.h.bf16 %v4768_v6  ;;  %vm8150_vm4 = vcmask 785408  }
 0x1ff   :  { %v4703_v3 = vpop.permute.xlu1 %4702  ;;  %v2397_v10 = vsel %vm8145_vm9, %v856_v20, %v4775_v33  ;;  %v2396_v39 = vsel %vm8146_vm10, %v855_v22, %v4774_v31  ;;  %v2411_v2 = vsel %vm2402_vm11, %v2394_v23, %v4694_v59  ;;  %v2412_v5 = vsel %vm2402_vm11, %v2395_v51, %v4695_v12  ;;  %vm8152_vm3 = vmmov %vm8150_vm4 }
 0x200   :  { %v4778_v14 = vpop.permute.xlu0 %4777  ;;  %v4705_v63 = vunpack.i.h.bf16 %v4703_v3  ;;  %v4704_v52 = vunpack.i.l.bf16 %v4703_v3  ;;  %v2413_v6 = vsel %vm2402_vm11, %v2396_v39, %v4769_v37  ;;  %v2414_v20 = vsel %vm2402_vm11, %v2397_v10, %v4770_v43 }
 0x201   :  { %v4780_v39 = vunpack.i.h.bf16 %v4778_v14  ;;  %v4779_v58 = vunpack.i.l.bf16 %v4778_v14  ;;  %v8151_v43 = vunpack.i.h.bf16 %v7204_v57  ;;  %v4760_v14 = vunpack.i.h.bf16 %v7238_v62 }
 0x202   :  { %vm8156_vm9 = vcmask 850944  }
 0x203   :  { %v4708_v28 = vpop.permute.xlu1 %4707  ;;  %vm8158_vm10 = vmmov %vm8156_vm9 }
 0x204   :  { %v4710_v24 = vunpack.i.h.bf16 %v4708_v28  ;;  %v4709_v21 = vunpack.i.l.bf16 %v4708_v28  ;;  %v4783_v51 = vpop.permute.xlu0 %4782 }
 0x206   :  { %v2428_v44 = vsel %vm2419_vm12, %v2411_v2, %v4709_v21  ;;  %v2429_v35 = vsel %vm2419_vm12, %v2412_v5, %v4710_v24  ;;  %v4784_v21 = vunpack.i.l.bf16 %v4783_v51  ;;  %v4765_v24 = vunpack.i.h.bf16 %v7240_v19 }
 0x207   :  { %v2445_v8 = vsel %vm2436_vm13, %v2428_v44, %v4659_v47  ;;  %v2446_v28 = vsel %vm2436_vm13, %v2429_v35, %v4660_v41  ;;  %v4713_v4 = vpop.permute.xlu1 %4712  ;;  %v4785_v35 = vunpack.i.h.bf16 %v4783_v51 }
 0x208   :  { %v2462_v22 = vsel %vm2453_vm14, %v2445_v8, %v4649_v26  ;;  %v2463_v23 = vsel %vm2453_vm14, %v2446_v28, %v4650_v7  ;;  %v4715_v26 = vunpack.i.h.bf16 %v4713_v4  ;;  %v4714_v3 = vunpack.i.l.bf16 %v4713_v4 }
 0x209   :  { %v2478_v47 = vsel %vm291_vm0, %v2462_v22, %v4644_v30  ;;  %v2479_v41 = vsel %vm291_vm0, %v2463_v23, %v4645_v53  ;;  %v2430_v33 = vsel %vm2419_vm12, %v2413_v6, %v4784_v21  ;;  %v2431_v30 = vsel %vm2419_vm12, %v2414_v20, %v4785_v35 }
 0x20a   :  { %v2495_v17 = vsel %vm2486_vm15, %v2478_v47, %v4674_v49  ;;  %v2496_v7 = vsel %vm2486_vm15, %v2479_v41, %v4675_v34  ;;  %v2447_v4 = vsel %vm2436_vm13, %v2430_v33, %v4734_v1  ;;  %v2448_v34 = vsel %vm2436_vm13, %v2431_v30, %v4735_v11  ;;  %v4788_v49 = vpop.permute.xlu0 %4787 }
 0x20b   :  { %v2512_v59 = vsel %vm2503_vm1, %v2495_v17, %v4704_v52  ;;  %v2513_v10 = vsel %vm2503_vm1, %v2496_v7, %v4705_v63  ;;  %v7315_v31 = vpop.permute.xlu1 %4792  ;;  %v2464_v12 = vsel %vm2453_vm14, %v2447_v4, %v4724_v16  ;;  %v4764_v16 = vunpack.i.l.bf16 %v7240_v19 }
 0x20c   :  { %v2529_v60 = vsel %vm2520_vm2, %v2512_v59, %v4689_v27  ;;  %v2530_v53 = vsel %vm2520_vm2, %v2513_v10, %v4690_v18  ;;  %v2465_v27 = vsel %vm2453_vm14, %v2448_v34, %v4725_v0  ;;  %v2480_v11 = vsel %vm291_vm0, %v2464_v12, %v8147_v56 }
 0x20d   :  { %v2546_v52 = vsel %vm2537_vm6, %v2529_v60, %v4684_v13  ;;  %v2547_v63 = vsel %vm2537_vm6, %v2530_v53, %v4685_v9  ;;  %v8148_v13 = vunpack.i.h.bf16 %v7132_v55  ;;  %v8149_v0 = vunpack.i.l.bf16 %v7204_v57 }
 0x20e   :  { %v2563_v18 = vsel %vm2554_vm7, %v2546_v52, %v4714_v3  ;;  %v2564_v1 = vsel %vm2554_vm7, %v2547_v63, %v4715_v26  ;;  %v8153_v55 = vunpack.i.l.bf16 %v7230_v38  ;;  %v8154_v8 = vunpack.i.h.bf16 %v7230_v38  ;;  %v7355_v28 = vpop.permute.xlu0 %4807 }
 0x20f   :  { %v2481_v9 = vsel %vm291_vm0, %v2465_v27, %v8148_v13  ;;  %v7341_v2 = vpop.permute.xlu1 %4797  ;;  %v2580_v5 = vsel %vm8150_vm4, %v2563_v18, %v8149_v0  ;;  %v2581_v37 = vsel %vm8152_vm3, %v2564_v1, %v8151_v43  ;;  %v4759_v22 = vunpack.i.l.bf16 %v7238_v62  ;;  %vm8160_vm4 = vmmov %vm8152_vm3 }
 0x210   :  { %v2497_v44 = vsel %vm2486_vm15, %v2480_v11, %v8153_v55  ;;  %v2498_v19 = vsel %vm2486_vm15, %v2481_v9, %v8154_v8  ;;  %v4790_v51 = vunpack.i.h.bf16 %v4788_v49  ;;  %v4789_v6 = vunpack.i.l.bf16 %v4788_v49 }
 0x211   :  { %v2514_v23 = vsel %vm2503_vm1, %v2497_v44, %v4779_v58  ;;  %v2515_v57 = vsel %vm2503_vm1, %v2498_v19, %v4780_v39  ;;  %v8155_v21 = vunpack.i.l.bf16 %v7220_v32  ;;  %v8157_v62 = vunpack.i.h.bf16 %v7220_v32 }
 0x212   :  { %v2531_v20 = vsel %vm2520_vm2, %v2514_v23, %v4764_v16  ;;  %v2532_v47 = vsel %vm2520_vm2, %v2515_v57, %v4765_v24  ;;  %v4680_v17 = vunpack.i.h.bf16 %v7228_v29  ;;  %v4679_v7 = vunpack.i.l.bf16 %v7228_v29  ;;  %v7375_v33 = vpop.permute.xlu0 %4817 }
 0x213   :  { %v2548_v38 = vsel %vm2537_vm6, %v2531_v20, %v4759_v22  ;;  %v2549_v41 = vsel %vm2537_vm6, %v2532_v47, %v4760_v14  ;;  %v4803_v35 = vpop.permute.xlu1 %4802  ;;  %v2597_v26 = vsel %vm8156_vm9, %v2580_v5, %v8155_v21  ;;  %v2598_v3 = vsel %vm8158_vm10, %v2581_v37, %v8157_v62  ;;  %vm8166_vm10 = vmmov %vm8156_vm9 }
 0x214   :  { %v2565_v59 = vsel %vm2554_vm7, %v2548_v38, %v4789_v6  ;;  %v2566_v10 = vsel %vm2554_vm7, %v2549_v41, %v4790_v51  ;;  %v4755_v30 = vunpack.i.h.bf16 %v7234_v40  ;;  %v4754_v60 = vunpack.i.l.bf16 %v7234_v40 }
 0x215   :  { %v8159_v53 = vunpack.i.l.bf16 %v7222_v15  ;;  %v8161_v4 = vunpack.i.h.bf16 %v7222_v15  ;;  %v8162_v29 = vunpack.i.l.bf16 %v7148_v50  ;;  %v8163_v52 = vunpack.i.h.bf16 %v7148_v50 }
 0x216   :  { %v8164_v12 = vunpack.i.l.bf16 %v7226_v25  ;;  %v8165_v27 = vunpack.i.h.bf16 %v7226_v25  ;;  %v8167_v56 = vunpack.i.l.bf16 %v7195_v45  ;;  %v8168_v50 = vunpack.i.h.bf16 %v7195_v45  ;;  %v7405_v24 = vpop.permute.xlu0 %4822 }
 0x217   :  { %v2582_v32 = vsel %vm8160_vm4, %v2565_v59, %v8159_v53  ;;  %v2583_v34 = vsel %vm8152_vm3, %v2566_v10, %v8161_v4  ;;  %v2614_v49 = vsel %vm2605_vm8, %v2597_v26, %v8162_v29  ;;  %v2615_v63 = vsel %vm2605_vm8, %v2598_v3, %v8163_v52  ;;  %v4813_v39 = vpop.permute.xlu1 %4812 }
 0x218   :  { %v2599_v40 = vsel %vm8156_vm9, %v2582_v32, %v8164_v12  ;;  %v2600_v18 = vsel %vm8166_vm10, %v2583_v34, %v8165_v27  ;;  %v2631_v15 = vsel %vm2622_vm5, %v2614_v49, %v4679_v7  ;;  %v2632_v1 = vsel %vm2622_vm5, %v2615_v63, %v4680_v17 }
 0x219   :  { %v2616_v11 = vsel %vm2605_vm8, %v2599_v40, %v8167_v56  ;;  %v2617_v13 = vsel %vm2605_vm8, %v2600_v18, %v8168_v50  ;;  %v2643_v9 = vpack.c.bf16 %v2632_v1, %v2631_v15  ;;  %v8169_v45 = vrot.slane %v8134_v46, 3 }
 0x21a   :  { %v2633_v16 = vsel %vm2622_vm5, %v2616_v11, %v4754_v60  ;;  %v2634_v25 = vsel %vm2622_vm5, %v2617_v13, %v4755_v30  ;;  %v7409_v0 = vpop.permute.xlu0 %4847  ;;  %vm8170_vm4 = vcmask 1044480   ;;  %v858_v23 = vmul.f32 %v5280_v54, %v7211_v48 }
 0x21b   :  { %v2644_v58 = vpack.c.bf16 %v2634_v25, %v2633_v16  ;;  %4315 = vmatprep.mubr.bf16.mxu1 %v2643_v9  ;;  %v4828_v5 = vpop.permute.xlu1 %4827  ;;  %v843_v55 = vsel %vm8170_vm4, 0.0, %v8169_v45  ;;  %vm8171_vm3 = vcmask 64512   ;;  %v4805_v21 = vunpack.i.h.bf16 %v4803_v35  ;;  %vm8174_vm10 = vmmov %vm8170_vm4 }
 0x21c   :  { %v857_v22 = vmul.f32 %v8142_v61, %v843_v55  ;;  %vm8172_vm9 = vmmov %vm8171_vm3  ;;  %v4830_v6 = vunpack.i.h.bf16 %v4828_v5  ;;  %v4829_v20 = vunpack.i.l.bf16 %v4828_v5  ;;  %v4804_v26 = vunpack.i.l.bf16 %v4803_v35 }
 0x21d   :  { %4316 = vmatmul.mubr.bf16.gmra.mxu1 %v2644_v58  ;;  %v4800_v17 = vunpack.i.h.bf16 %v7341_v2  ;;  %v4799_v48 = vunpack.i.l.bf16 %v7341_v2  ;;  %v4795_v4 = vunpack.i.h.bf16 %v7315_v31  ;;  %v4794_v2 = vunpack.i.l.bf16 %v7315_v31  ;;  %vm8175_vm4 = vmmov %vm8171_vm3 }
 0x21e   :  { %v7411_v43 = vpop.permute.xlu0 %4852  ;;  %v8173_v34 = vrot.slane %v8125_v36, 3  ;;  %v4815_v40 = vunpack.i.h.bf16 %v4813_v39  ;;  %v4814_v27 = vunpack.i.l.bf16 %v4813_v39  ;;  %v860_v36 = vmul.f32 %v5280_v54, %v7218_v42 }
 0x21f   :  { %v4833_v37 = vpop.permute.xlu1 %4832  ;;  %v4810_v31 = vunpack.i.h.bf16 %v7355_v28  ;;  %v4809_v56 = vunpack.i.l.bf16 %v7355_v28  ;;  %v4820_v16 = vunpack.i.h.bf16 %v7375_v33  ;;  %v4819_v25 = vunpack.i.l.bf16 %v7375_v33 }
 0x220   :  { %v4835_v44 = vunpack.i.h.bf16 %v4833_v37  ;;  %v4834_v8 = vunpack.i.l.bf16 %v4833_v37  ;;  %v844_v29 = vsel %vm8174_vm10, 0.0, %v8173_v34  ;;  %v4824_v5 = vunpack.i.l.bf16 %v7405_v24 }
 0x221   :  { %v859_v1 = vmul.f32 %v8142_v61, %v844_v29  ;;  %v4825_v61 = vunpack.i.h.bf16 %v7405_v24  ;;  %v4850_v37 = vunpack.i.h.bf16 %v7409_v0  ;;  %v4849_v45 = vunpack.i.l.bf16 %v7409_v0 }
 0x222   :  { %v7416_v19 = vpop.permute.xlu0 %4857  ;;  %v2399_v57 = vsel %vm8171_vm3, %v858_v23, %v4835_v44  ;;  %v2398_v51 = vsel %vm8172_vm9, %v857_v22, %v4834_v8  ;;  %v4855_v33 = vunpack.i.h.bf16 %v7411_v43  ;;  %v4854_v8 = vunpack.i.l.bf16 %v7411_v43 }
 0x223   :  { %v4838_v14 = vpop.permute.xlu1 %4837  ;;  %v2415_v62 = vsel %vm2402_vm11, %v2398_v51, %v4829_v20  ;;  %v2416_v3 = vsel %vm2402_vm11, %v2399_v57, %v4830_v6  ;;  %v4860_v43 = vunpack.i.h.bf16 %v7416_v19  ;;  %vm2992_vm9 = vcmask 1044484  }
 0x224   :  { %v4840_v11 = vunpack.i.h.bf16 %v4838_v14  ;;  %v4839_v50 = vunpack.i.l.bf16 %v4838_v14  ;;  %vm2994_vm10 = vcmask 1045509  }
 0x226   :  { %v7423_v46 = vpop.permute.xlu0 %4862 }
 0x227   :  { %v4843_v47 = vpop.permute.xlu1 %4842  ;;  %v4865_v0 = vunpack.i.h.bf16 %v7423_v46 }
 0x228   :  { %v4845_v38 = vunpack.i.h.bf16 %v4843_v47  ;;  %v4844_v41 = vunpack.i.l.bf16 %v4843_v47  ;;  %v4864_v47 = vunpack.i.l.bf16 %v7423_v46 }
 0x22a   :  { %v2432_v7 = vsel %vm2419_vm12, %v2415_v62, %v4844_v41  ;;  %v2433_v59 = vsel %vm2419_vm12, %v2416_v3, %v4845_v38  ;;  %v7435_v53 = vpop.permute.xlu0 %4872 }
 0x22b   :  { %v2449_v10 = vsel %vm2436_vm13, %v2432_v7, %v4804_v26  ;;  %v2450_v30 = vsel %vm2436_vm13, %v2433_v59, %v4805_v21  ;;  %v7433_v60 = vpop.permute.xlu1 %4867  ;;  %v4859_v21 = vunpack.i.l.bf16 %v7416_v19 }
 0x22c   :  { %v2466_v35 = vsel %vm2453_vm14, %v2449_v10, %v4799_v48  ;;  %v2467_v32 = vsel %vm2453_vm14, %v2450_v30, %v4800_v17  ;;  %v4875_v10 = vunpack.i.h.bf16 %v7435_v53  ;;  %v4874_v30 = vunpack.i.l.bf16 %v7435_v53 }
 0x22d   :  { %v2482_v49 = vsel %vm291_vm0, %v2466_v35, %v4794_v2  ;;  %v2483_v52 = vsel %vm291_vm0, %v2467_v32, %v4795_v4 }
 0x22e   :  { %v4888_v12 = vpop.permute.xlu0 %4887  ;;  %v2499_v18 = vsel %vm2486_vm15, %v2482_v49, %v4814_v27  ;;  %v2500_v15 = vsel %vm2486_vm15, %v2483_v52, %v4815_v40 }
 0x22f   :  { %v7446_v63 = vpop.permute.xlu1 %4877  ;;  %v2516_v54 = vsel %vm2503_vm1, %v2499_v18, %v4839_v50  ;;  %v2517_v42 = vsel %vm2503_vm1, %v2500_v15, %v4840_v11  ;;  %v4890_v14 = vunpack.i.h.bf16 %v4888_v12  ;;  %v4889_v22 = vunpack.i.l.bf16 %v4888_v12 }
 0x230   :  { %v2533_v6 = vsel %vm2520_vm2, %v2516_v54, %v4824_v5  ;;  %v2534_v20 = vsel %vm2520_vm2, %v2517_v42, %v4825_v61 }
 0x231   :  { %v2550_v46 = vsel %vm2537_vm6, %v2533_v6, %v4819_v25  ;;  %v2551_v59 = vsel %vm2537_vm6, %v2534_v20, %v4820_v16  ;;  %v4880_v16 = vunpack.i.h.bf16 %v7446_v63  ;;  %v4879_v25 = vunpack.i.l.bf16 %v7446_v63 }
 0x232   :  { %v4893_v9 = vpop.permute.xlu0 %4892  ;;  %v2567_v29 = vsel %vm2554_vm7, %v2550_v46, %v4849_v45  ;;  %v2568_v49 = vsel %vm2554_vm7, %v2551_v59, %v4850_v37  ;;  %v2920_v59 = vld [vmem:[%s7834_s6] sm:$0xff] }
 0x233   :  { %v7455_v13 = vpop.permute.xlu1 %4882  ;;  %v4895_v39 = vunpack.i.h.bf16 %v4893_v9  ;;  %v4894_v58 = vunpack.i.l.bf16 %v4893_v9 }
 0x234   :  { %v4885_v11 = vunpack.i.h.bf16 %v7455_v13  ;;  %v4884_v50 = vunpack.i.l.bf16 %v7455_v13 }
 0x235   :  { %v2401_v55 = vsel %vm8175_vm4, %v860_v36, %v4895_v39  ;;  %v2400_v44 = vsel %vm8171_vm3, %v859_v1, %v4894_v58  ;;  %v4870_v1 = vunpack.i.h.bf16 %v7433_v60  ;;  %v4869_v36 = vunpack.i.l.bf16 %v7433_v60 }
 0x236   :  { %v4903_v24 = vpop.permute.xlu0 %4902  ;;  %v2417_v38 = vsel %vm2402_vm11, %v2400_v44, %v4889_v22  ;;  %v2418_v41 = vsel %vm2402_vm11, %v2401_v55, %v4890_v14  ;;  %vm2996_vm4 = vcmask 1046534   ;;  %vm2998_vm3 = vcmask 1047559  }
 0x237   :  { %v4898_v23 = vpop.permute.xlu1 %4897  ;;  %v4905_v57 = vunpack.i.h.bf16 %v4903_v24  ;;  %v4904_v51 = vunpack.i.l.bf16 %v4903_v24 }
 0x238   :  { %v4900_v32 = vunpack.i.h.bf16 %v4898_v23  ;;  %v4899_v4 = vunpack.i.l.bf16 %v4898_v23 }
 0x239   :  { %v2434_v26 = vsel %vm2419_vm12, %v2417_v38, %v4904_v51  ;;  %v2435_v62 = vsel %vm2419_vm12, %v2418_v41, %v4905_v57 }
 0x23a   :  { %v2451_v3 = vsel %vm2436_vm13, %v2434_v26, %v4864_v47  ;;  %v2452_v17 = vsel %vm2436_vm13, %v2435_v62, %v4865_v0  ;;  %v4908_v7 = vpop.permute.xlu0 %4907  ;;  %vm8178_vm13 = vcmask 850944  }
 0x23b   :  { %v4913_v48 = vpop.permute.xlu1 %4912  ;;  %v2468_v19 = vsel %vm2453_vm14, %v2451_v3, %v4859_v21  ;;  %v2469_v35 = vsel %vm2453_vm14, %v2452_v17, %v4860_v43  ;;  %v4910_v40 = vunpack.i.h.bf16 %v4908_v7  ;;  %v4909_v53 = vunpack.i.l.bf16 %v4908_v7  ;;  %vm8179_vm14 = vmmov %vm8178_vm13 }
 0x23c   :  { %v2484_v2 = vsel %vm291_vm0, %v2468_v19, %v4854_v8  ;;  %v2485_v34 = vsel %vm291_vm0, %v2469_v35, %v4855_v33  ;;  %vm8176_vm0 = vcmask 785408   ;;  %v4915_v13 = vunpack.i.h.bf16 %v4913_v48  ;;  %v7536_v35 = vld [vmem:[%s7834_s6 + $0x8] sm:$0xff] }
 0x23d   :  { %v2501_v52 = vsel %vm2486_vm15, %v2484_v2, %v4874_v30  ;;  %v2502_v12 = vsel %vm2486_vm15, %v2485_v34, %v4875_v10  ;;  %v2584_v39 = vsel %vm8176_vm0, %v2567_v29, %v4809_v56  ;;  %vm8177_vm12 = vmmov %vm8176_vm0  ;;  %v4914_v42 = vunpack.i.l.bf16 %v4913_v48  ;;  %v2924_v10 = vld [vmem:[%s7834_s6 + $0x20] sm:$0xff] }
 0x23e   :  { %v2518_v18 = vsel %vm2503_vm1, %v2501_v52, %v4899_v4  ;;  %v2519_v15 = vsel %vm2503_vm1, %v2502_v12, %v4900_v32  ;;  %v4918_v9 = vpop.permute.xlu0 %4917  ;;  %v2585_v58 = vsel %vm8177_vm12, %v2568_v49, %v4810_v31  ;;  %v2601_v37 = vsel %vm8178_vm13, %v2584_v39, %v4909_v53  ;;  %vm8180_vm15 = vmmov %vm8176_vm0  ;;  %v7541_v32 = vld [vmem:[%s7834_s6 + $0x28] sm:$0xff]  ;;  %v4985_v53 = vld [vmem:[%s7835_s8 + $0xb8] sm:$0xff]  }
 0x23f   :  { %v4923_v27 = vpop.permute.xlu1 %4922  ;;  %v4920_v61 = vunpack.i.h.bf16 %v4918_v9  ;;  %v4919_v5 = vunpack.i.l.bf16 %v4918_v9  ;;  %v2535_v60 = vsel %vm2520_vm2, %v2518_v18, %v4884_v50  ;;  %v2536_v54 = vsel %vm2520_vm2, %v2519_v15, %v4885_v11  ;;  %vm8181_vm1 = vmmov %vm8176_vm0  ;;  %v4986_v18 = vld [vmem:[%s7835_s8 + $0xf0] sm:$0xff]   ;;  %v4989_v11 = vld [vmem:[%s7835_s8 + $0xa8] sm:$0xff]  }
 0x240   :  { %v2602_v63 = vsel %vm8179_vm14, %v2585_v58, %v4910_v40  ;;  %v4925_v55 = vunpack.i.h.bf16 %v4923_v27  ;;  %v4924_v44 = vunpack.i.l.bf16 %v4923_v27  ;;  %v2552_v31 = vsel %vm2537_vm6, %v2535_v60, %v4879_v25  ;;  %vm8182_vm2 = vmmov %vm8178_vm13  ;;  %v4984_v40 = vld [vmem:[%s7835_s8 + $0xf8] sm:$0xff]   ;;  %v4987_v15 = vld [vmem:[%s7835_s8 + $0xb0] sm:$0xff]  }
 0x241   :  { %v2553_v8 = vsel %vm2537_vm6, %v2536_v54, %v4880_v16  ;;  %v2618_v23 = vsel %vm2605_vm8, %v2601_v37, %v4919_v5  ;;  %v2619_v24 = vsel %vm2605_vm8, %v2602_v63, %v4920_v61  ;;  %vm8183_vm6 = vmmov %vm8182_vm2  ;;  %v4005_v30 = vcombine.low %v2920_v59, %v2924_v10  ;;  %4155 = vmatprep.subr.bf16.mxu0 %v4984_v40  ;;  %v4990_v50 = vld [vmem:[%s7835_s8 + $0xe0] sm:$0xff]   ;;  %v4992_v58 = vld [vmem:[%s7835_s8 + $0xd8] sm:$0xff]  }
 0x242   :  { %v4928_v28 = vpop.permute.xlu0 %4927  ;;  %v4006_v19 = vcombine.high %v2920_v59, %v2924_v10  ;;  %v5070_v4 = vmov 0   ;;  %v4007_v2 = vcombine.low %v7536_v35, %v7541_v32  ;;  %v4008_v34 = vcombine.high %v7536_v35, %v7541_v32  ;;  %4156 = vmatpush3.bf16.msra.mxu0 %v4985_v53  ;;  %v7572_v9 = vld [vmem:[%s7836_s5] ss:$0 sm:$0xff]  ;;  %v4993_v54 = vld [vmem:[%s7835_s8 + $0x98] sm:$0xff]   ;;  %v4994_v63 = vld [vmem:[%s7835_s8 + $0xd0] sm:$0xff]  }
 0x243   :  { %v4933_v45 = vpop.permute.xlu1 %4932  ;;  %v4930_v14 = vunpack.i.h.bf16 %v4928_v28  ;;  %v4929_v22 = vunpack.i.l.bf16 %v4928_v28  ;;  %4157 = vmatprep.subr.bf16.mxu0 %v4986_v18  ;;  %v4991_v25 = vld [vmem:[%s7835_s8 + $0xa0] sm:$0xff]   ;;  %v4996_v32 = vld [vmem:[%s7835_s8 + $0x78] sm:$0xff]  }
 0x244   :  { %v4935_v56 = vunpack.i.h.bf16 %v4933_v45  ;;  %v4934_v33 = vunpack.i.l.bf16 %v4933_v45  ;;  %3058 = vmatprep.subr.bf16.mxu1 %v4006_v19 }
 0x245   :  { %v2635_v0 = vsel %vm2622_vm5, %v2618_v23, %v4929_v22  ;;  %v2636_v47 = vsel %vm2622_vm5, %v2619_v24, %v4930_v14  ;;  %3059 = vmatpush1.bf16.msra.mxu1 %v4005_v30  ;;  %v5003_v22 = vld [vmem:[%s7835_s8 + $0x88] sm:$0xff]  }
 0x246   :  { %v2569_v57 = vsel %vm2554_vm7, %v2552_v31, %v4934_v33  ;;  %v2570_v51 = vsel %vm2554_vm7, %v2553_v8, %v4935_v56  ;;  %v2645_v38 = vpack.c.bf16 %v2636_v47, %v2635_v0  ;;  %3099 = vmatprep.subr.bf16.mxu1 %v4008_v34  ;;  %4158 = vmatpush3.bf16.msra.mxu0 %v4987_v15  ;;  %v5001_v31 = vld [vmem:[%s7835_s8 + $0xc8] sm:$0xff]   ;;  %vm2990_vm7 = vcmask 1043459  }
 0x247   :  { %v2586_v6 = vsel %vm8180_vm15, %v2569_v57, %v4869_v36  ;;  %v2587_v20 = vsel %vm8181_vm1, %v2570_v51, %v4870_v1  ;;  %v4988_v1 = vld [vmem:[%s7835_s8 + $0xe8] sm:$0xff]  }
 0x248   :  { %v2603_v41 = vsel %vm8182_vm2, %v2586_v6, %v4914_v42  ;;  %v2604_v43 = vsel %vm8183_vm6, %v2587_v20, %v4915_v13  ;;  %4319 = vmatprep.mubr.bf16.mxu1 %v2645_v38  ;;  %4159 = vmatprep.subr.bf16.mxu0 %v4988_v1 }
 0x249   :  { %v2620_v26 = vsel %vm2605_vm8, %v2603_v41, %v4924_v44  ;;  %v2621_v62 = vsel %vm2605_vm8, %v2604_v43, %v4925_v55  ;;  %v4995_v44 = vld [vmem:[%s7835_s8 + $0x90] sm:$0xff]   ;;  %v5011_v41 = vld [vmem:[%s7835_s8 + $0xc0] sm:$0xff]   ;;  %vm2988_vm8 = vcmask 1042434  }
 0x24a   :  { %4160 = vmatpush3.bf16.msra.mxu0 %v4989_v11 }
 0x24b   :  { %4161 = vmatprep.subr.bf16.mxu0 %v4990_v50 }
 0x24c   :  { %v4938_v21 = vpop.permute.xlu1 %4937 }
 0x24d   :  { %v4940_v3 = vunpack.i.h.bf16 %v4938_v21  ;;  %v4939_v17 = vunpack.i.l.bf16 %v4938_v21 }
 0x24e   :  { %4162 = vmatpush3.bf16.msra.mxu0 %v4991_v25 }
 0x24f   :  { %v2637_v48 = vsel %vm2622_vm5, %v2620_v26, %v4939_v17  ;;  %v2638_v7 = vsel %vm2622_vm5, %v2621_v62, %v4940_v3  ;;  %4163 = vmatprep.subr.bf16.mxu0 %v4992_v58  ;;  %vm2986_vm5 = vcmask 1041409  }
 0x250   :  { %v2646_v46 = vpack.c.bf16 %v2638_v7, %v2637_v48 }
 0x252   :  { %4320 = vmatmul.mubr.bf16.gmra.mxu1 %v2646_v46  ;;  %4164 = vmatpush3.bf16.msra.mxu0 %v4993_v54 }
 0x253   :  { %3076 = vmatprep.mubr.bf16.mxu1 %v5070_v4  ;;  %4165 = vmatprep.subr.bf16.mxu0 %v4994_v63 }
 0x256   :  { %4166 = vmatpush3.bf16.msra.mxu0 %v4995_v44 }
 0x257   :  { %4167 = vmatprep.subr.bf16.mxu0 %v5001_v31 }
 0x25a   :  { %4168 = vmatpush3.bf16.msra.mxu0 %v5003_v22 }
 0x25b   :  { %4169 = vmatprep.subr.bf16.mxu0 %v5011_v41 }
 0x25c   :  { %v4309_v29 = vpop.f32.mrf.mxu1 }
 0x25d   :  { %v2761_v61 = vadd.f32 %v4309_v29, %v7572_v9 }
 0x25e   :  { %v2752_v49 = vpop.f32.mrf.mxu1 }
 0x25f   :  { %v2753_v13 = vadd.f32 %v7572_v9, %v2752_v49  ;;  %v2817_v45 = vmax.f32 %v2761_v61, 0.0 }
 0x260   :  { %v4310_v52 = vpop.f32.mrf.mxu1 }
 0x261   :  { %v2764_v39 = vadd.f32 %v4310_v52, %v7572_v9  ;;  %v2815_v56 = vmax.f32 %v2753_v13, 0.0  ;;  %v2840_v8 = vsel %vm2402_vm11, %v2817_v45, 0.0 }
 0x262   :  { %v2755_v12 = vpop.f32.mrf.mxu1 }
 0x263   :  { %v2756_v5 = vadd.f32 %v7572_v9, %v2755_v12  ;;  %v2818_v42 = vmax.f32 %v2764_v39, 0.0  ;;  %v2831_v23 = vsel %vm2402_vm11, %v2815_v56, 0.0 }
 0x265   :  { %v2816_v55 = vmax.f32 %v2756_v5, 0.0  ;;  %v2841_v33 = vsel %vm2402_vm11, %v2818_v42, 0.0 }
 0x266   :  { %v2842_v24 = vadd.f32 %v2841_v33, %v2840_v8 }
 0x267   :  { %v2832_v14 = vsel %vm2402_vm11, %v2816_v55, 0.0 }
 0x268   :  { %v2833_v51 = vadd.f32 %v2832_v14, %v2831_v23  ;;  %v2843_v47 = vrot.slane %v2842_v24, 4 }
 0x26a   :  { %v2834_v43 = vrot.slane %v2833_v51, 4  ;;  %v2844_v11 = vadd.f32 %v2843_v47, %v2842_v24 }
 0x26c   :  { %v2835_v50 = vadd.f32 %v2834_v43, %v2833_v51 }
 0x26e   :  { %v2836_v5 = vrot.slane %v2835_v50, 2 }
 0x270   :  { %v2837_v63 = vadd.f32 %v2836_v5, %v2835_v50 }
 0x272   :  { %v2838_v14 = vrot.slane %v2837_v63, 1 }
 0x274   :  { %v2839_v41 = vadd.f32 %v2838_v14, %v2837_v63 }
 0x2a7   :  { %v4313_v27 = vpop.f32.mrf.mxu1 }
 0x2a8   :  { %v2777_v20 = vadd.f32 %v4313_v27, %v7572_v9 }
 0x2a9   :  { %v2768_v36 = vpop.f32.mrf.mxu1 }
 0x2aa   :  { %v2769_v6 = vadd.f32 %v7572_v9, %v2768_v36  ;;  %v2821_v62 = vmax.f32 %v2777_v20, 0.0 }
 0x2ab   :  { %v4314_v16 = vpop.f32.mrf.mxu1 }
 0x2ac   :  { %v2780_v0 = vadd.f32 %v4314_v16, %v7572_v9  ;;  %v2819_v21 = vmax.f32 %v2769_v6, 0.0  ;;  %v2858_v40 = vsel %vm2402_vm11, %v2821_v62, 0.0 }
 0x2ad   :  { %v2771_v60 = vpop.f32.mrf.mxu1 }
 0x2ae   :  { %v2772_v26 = vadd.f32 %v7572_v9, %v2771_v60  ;;  %v2822_v3 = vmax.f32 %v2780_v0, 0.0  ;;  %v2849_v48 = vsel %vm2402_vm11, %v2819_v21, 0.0  ;;  %v2845_v60 = vrot.slane %v2844_v11, 2 }
 0x2b0   :  { %v2820_v7 = vmax.f32 %v2772_v26, 0.0  ;;  %v2859_v59 = vsel %vm2402_vm11, %v2822_v3, 0.0  ;;  %v2846_v45 = vadd.f32 %v2845_v60, %v2844_v11 }
 0x2b1   :  { %v2860_v27 = vadd.f32 %v2859_v59, %v2858_v40 }
 0x2b2   :  { %v2850_v19 = vsel %vm2402_vm11, %v2820_v7, 0.0  ;;  %v2847_v23 = vrot.slane %v2846_v45, 1 }
 0x2b3   :  { %v2851_v52 = vadd.f32 %v2850_v19, %v2849_v48  ;;  %v2861_v16 = vrot.slane %v2860_v27, 4  ;;  %v2904_v19 = vmul.f32 0.0625, %v2839_v41 }
 0x2b4   :  { %v2848_v62 = vadd.f32 %v2847_v23, %v2846_v45 }
 0x2b5   :  { %v2852_v18 = vrot.slane %v2851_v52, 4  ;;  %v2862_v54 = vadd.f32 %v2861_v16, %v2860_v27 }
 0x2b6   :  { %v2905_v40 = vmul.f32 0.0625, %v2848_v62 }
 0x2b7   :  { %v2853_v25 = vadd.f32 %v2852_v18, %v2851_v52  ;;  %v2863_v55 = vrot.slane %v2862_v54, 2 }
 0x2b9   :  { %v2854_v13 = vrot.slane %v2853_v25, 2  ;;  %v2864_v24 = vadd.f32 %v2863_v55, %v2862_v54 }
 0x2bb   :  { %v2855_v44 = vadd.f32 %v2854_v13, %v2853_v25  ;;  %v2865_v3 = vrot.slane %v2864_v24, 1  ;;  %v2913_v25 = vpack.c.bf16 %v2905_v40, %v2905_v40  ;;  %v5010_v40 = vld [vmem:[%s7835_s8 + $0x48] sm:$0xff]  }
 0x2bd   :  { %v2979_v63 = vunpack.c.l.b16 %v2913_v25 }
 0x2dd   :  { %v4317_v37 = vpop.f32.mrf.mxu1 }
 0x2de   :  { %v2793_v12 = vadd.f32 %v4317_v37, %v7572_v9 }
 0x2df   :  { %v2784_v28 = vpop.f32.mrf.mxu1 }
 0x2e0   :  { %v2785_v46 = vadd.f32 %v7572_v9, %v2784_v28  ;;  %v2825_v15 = vmax.f32 %v2793_v12, 0.0 }
 0x2e1   :  { %v4318_v57 = vpop.f32.mrf.mxu1 }
 0x2e2   :  { %v2796_v10 = vadd.f32 %v4318_v57, %v7572_v9  ;;  %v2823_v34 = vmax.f32 %v2785_v46, 0.0  ;;  %v2876_v39 = vsel %vm2402_vm11, %v2825_v15, 0.0  ;;  %v2856_v57 = vrot.slane %v2855_v44, 1 }
 0x2e3   :  { %v2787_v38 = vpop.f32.mrf.mxu1 }
 0x2e4   :  { %v2788_v17 = vadd.f32 %v7572_v9, %v2787_v38  ;;  %v2826_v29 = vmax.f32 %v2796_v10, 0.0  ;;  %v2867_v53 = vsel %vm2402_vm11, %v2823_v34, 0.0 }
 0x2e6   :  { %v2824_v30 = vmax.f32 %v2788_v17, 0.0  ;;  %v2877_v36 = vsel %vm2402_vm11, %v2826_v29, 0.0  ;;  %v2857_v17 = vadd.f32 %v2856_v57, %v2855_v44 }
 0x2e7   :  { %v2878_v61 = vadd.f32 %v2877_v36, %v2876_v39 }
 0x2e8   :  { %v2868_v49 = vsel %vm2402_vm11, %v2824_v30, 0.0 }
 0x2e9   :  { %v2869_v1 = vadd.f32 %v2868_v49, %v2867_v53  ;;  %v2879_v37 = vrot.slane %v2878_v61, 4  ;;  %v2906_v49 = vmul.f32 0.0625, %v2857_v17  ;;  %v2866_v53 = vadd.f32 %v2865_v3, %v2864_v24 }
 0x2eb   :  { %v2870_v58 = vrot.slane %v2869_v1, 4  ;;  %v2880_v28 = vadd.f32 %v2879_v37, %v2878_v61  ;;  %v2914_v36 = vpack.c.bf16 %v2906_v49, %v2906_v49  ;;  %v2907_v39 = vmul.f32 0.0625, %v2866_v53  ;;  %v5006_v49 = vld [vmem:[%s7835_s8 + $0x58] sm:$0xff]   ;;  %v5012_v53 = vld [vmem:[%s7835_s8 + $0x8] sm:$0xff]  }
 0x2ed   :  { %v2871_v42 = vadd.f32 %v2870_v58, %v2869_v1  ;;  %v2881_v20 = vrot.slane %v2880_v28, 2  ;;  %v2912_v1 = vpack.c.bf16 %v2904_v19, %v2904_v19  ;;  %v2980_v54 = vunpack.c.l.b16 %v2914_v36  ;;  %v5002_v19 = vld [vmem:[%s7835_s8 + $0x28] sm:$0xff]   ;;  %v5021_v36 = vld [vmem:[%s7835_s8 + $0x1f8] sm:$0xff]  }
 0x2ee   :  { %v2915_v45 = vpack.c.bf16 %v2907_v39, %v2907_v39 }
 0x2ef   :  { %v2872_v56 = vrot.slane %v2871_v42, 2  ;;  %v2882_v7 = vadd.f32 %v2881_v20, %v2880_v28  ;;  %v2978_v60 = vunpack.c.l.b16 %v2912_v1  ;;  %v5016_v1 = vld [vmem:[%s7835_s8 + $0x178] sm:$0xff]  }
 0x2f1   :  { %v2873_v51 = vadd.f32 %v2872_v56, %v2871_v42  ;;  %v2883_v27 = vrot.slane %v2882_v7, 1 }
 0x2f3   :  { %v2874_v48 = vrot.slane %v2873_v51, 1  ;;  %v2884_v58 = vadd.f32 %v2883_v27, %v2882_v7  ;;  %v2927_v7 = vld [vmem:[%s7834_s6 + $0x38] sm:$0xff]  ;;  %v5013_v27 = vld [vmem:[%s7835_s8 + $0x80] sm:$0xff]  }
 0x2f4   :  { %4170 = vmatpush3.bf16.msra.mxu0 %v5013_v27 }
 0x2f5   :  { %v2875_v52 = vadd.f32 %v2874_v48, %v2873_v51  ;;  %v2909_v55 = vmul.f32 0.0625, %v2884_v58  ;;  %v2923_v48 = vld [vmem:[%s7834_s6 + $0x18] sm:$0xff]  ;;  %4199 = vmatprep.subr.bf16.mxu0 %v5021_v36 }
 0x2f6   :  { %v4011_v35 = vcombine.low %v2923_v48, %v2927_v7  ;;  %v5039_v36 = vld [vmem:[%s7835_s8 + $0x198] sm:$0xff]  }
 0x2f7   :  { %v2908_v11 = vmul.f32 0.0625, %v2875_v52  ;;  %v2917_v23 = vpack.c.bf16 %v2909_v55, %v2909_v55  ;;  %v5007_v52 = vld [vmem:[%s7835_s8 + $0x18] sm:$0xff]  }
 0x2f9   :  { %v2916_v13 = vpack.c.bf16 %v2908_v11, %v2908_v11  ;;  %v8184_v11 = vld [vmem:[#allocation2_spill] sm:$0xff] }
 0x2fa   :  { %v2936_v25 = vsub.s32 1, %v8184_v11 }
 0x312   :  { %v4321_v33 = vpop.f32.mrf.mxu1 }
 0x313   :  { %v2809_v31 = vadd.f32 %v4321_v33, %v7572_v9  ;;  %v2987_v33 = vsel %vm2986_vm5, %v2979_v63, %v2978_v60 }
 0x314   :  { %v2800_v8 = vpop.f32.mrf.mxu1  ;;  %v2989_v28 = vsel %vm2988_vm8, %v2980_v54, %v2987_v33  ;;  %v2940_v54 = vsub.s32 2, %v8184_v11  ;;  %v5018_v33 = vld [vmem:[%s7835_s8 + $0x170] sm:$0xff]  }
 0x315   :  { %v2801_v22 = vadd.f32 %v7572_v9, %v2800_v8  ;;  %v2829_v0 = vmax.f32 %v2809_v31, 0.0  ;;  %v2982_v31 = vunpack.c.l.b16 %v2916_v13 }
 0x316   :  { %v4322_v6 = vpop.f32.mrf.mxu1 }
 0x317   :  { %v2812_v47 = vadd.f32 %v4322_v6, %v7572_v9  ;;  %v2827_v43 = vmax.f32 %v2801_v22, 0.0  ;;  %v2894_v46 = vsel %vm2402_vm11, %v2829_v0, 0.0  ;;  %v2981_v22 = vunpack.c.l.b16 %v2915_v45  ;;  %v5017_v45 = vld [vmem:[%s7835_s8 + $0x138] sm:$0xff]  }
 0x318   :  { %v2803_v38 = vpop.f32.mrf.mxu1  ;;  %v2983_v0 = vunpack.c.l.b16 %v2917_v23  ;;  %v5020_v23 = vld [vmem:[%s7835_s8 + $0x168] sm:$0xff]  }
 0x319   :  { %v2830_v21 = vmax.f32 %v2812_v47, 0.0  ;;  %v2804_v26 = vadd.f32 %v7572_v9, %v2803_v38  ;;  %v2885_v34 = vsel %vm2402_vm11, %v2827_v43, 0.0  ;;  %v2991_v57 = vsel %vm2990_vm7, %v2981_v22, %v2989_v28  ;;  %v2922_v43 = vld [vmem:[%s7834_s6 + $0x10] sm:$0xff] }
 0x31a   :  { %v2993_v6 = vsel %vm2992_vm9, %v2982_v31, %v2991_v57  ;;  %v2952_v57 = vsub.s32 5, %v8184_v11 }
 0x31b   :  { %v2895_v59 = vsel %vm2402_vm11, %v2830_v21, 0.0  ;;  %v2828_v10 = vmax.f32 %v2804_v26, 0.0  ;;  %v2995_v41 = vsel %vm2994_vm10, %v2983_v0, %v2993_v6  ;;  %v2926_v21 = vld [vmem:[%s7834_s6 + $0x30] sm:$0xff]  ;;  %v5023_v0 = vld [vmem:[%s7835_s8 + $0x1b8] sm:$0xff]  }
 0x31c   :  { %v2896_v30 = vadd.f32 %v2895_v59, %v2894_v46  ;;  %v4010_v17 = vcombine.high %v2922_v43, %v2926_v21  ;;  %v4009_v46 = vcombine.low %v2922_v43, %v2926_v21  ;;  %v4012_v59 = vcombine.high %v2923_v48, %v2927_v7  ;;  %v5025_v43 = vld [vmem:[%s7835_s8 + $0x1f0] sm:$0xff]   ;;  %v5028_v48 = vld [vmem:[%s7835_s8 + $0x158] sm:$0xff]   ;;  %v5029_v7 = vld [vmem:[%s7835_s8 + $0x1e8] sm:$0xff]  }
 0x31d   :  { %v2886_v29 = vsel %vm2402_vm11, %v2828_v10, 0.0  ;;  %v4998_v10 = vld [vmem:[%s7835_s8 + $0x70] sm:$0xff]  }
 0x31e   :  { %v2897_v12 = vrot.slane %v2896_v30, 4  ;;  %v2887_v9 = vadd.f32 %v2886_v29, %v2885_v34  ;;  %v5004_v34 = vld [vmem:[%s7835_s8 + $0x60] sm:$0xff]  }
 0x31f   :  { %v5005_v29 = vld [vmem:[%s7835_s8 + $0x20] sm:$0xff]  }
 0x320   :  { %v2898_v18 = vadd.f32 %v2897_v12, %v2896_v30  ;;  %v2888_v15 = vrot.slane %v2887_v9, 4  ;;  %v4999_v30 = vld [vmem:[%s7835_s8 + $0x30] sm:$0xff]  }
 0x321   :  { %v5008_v12 = vld [vmem:[%s7835_s8 + $0x50] sm:$0xff]  }
 0x322   :  { %v2899_v50 = vrot.slane %v2898_v18, 2  ;;  %v2889_v16 = vadd.f32 %v2888_v15, %v2887_v9  ;;  %v5009_v9 = vld [vmem:[%s7835_s8 + $0x10] sm:$0xff]   ;;  %v5015_v15 = vld [vmem:[%s7835_s8] sm:$0xff]  }
 0x324   :  { %v2900_v61 = vadd.f32 %v2899_v50, %v2898_v18  ;;  %v2890_v5 = vrot.slane %v2889_v16, 2  ;;  %v5014_v18 = vld [vmem:[%s7835_s8 + $0x40] sm:$0xff]   ;;  %v2932_v50 = vsub.s32 0, %v8184_v11 }
 0x326   :  { %v2901_v42 = vrot.slane %v2900_v61, 1  ;;  %v2891_v37 = vadd.f32 %v2890_v5, %v2889_v16  ;;  %v7713_v16 = vld [vmem:[%s7837_s7] sm:$0xff] }
 0x327   :  { %v2933_v39 = vrot.slane %v7713_v16, %v2932_v50  ;;  %v2937_v58 = vrot.slane %v7713_v16, %v2936_v25  ;;  %v2953_v21 = vrot.slane %v7713_v16, %v2952_v57 }
 0x328   :  { %v2902_v44 = vadd.f32 %v2901_v42, %v2900_v61  ;;  %v2892_v56 = vrot.slane %v2891_v37, 1  ;;  %v2944_v42 = vsub.s32 3, %v8184_v11 }
 0x32a   :  { %v2911_v8 = vmul.f32 0.0625, %v2902_v44  ;;  %v2893_v14 = vadd.f32 %v2892_v56, %v2891_v37  ;;  %v2941_v56 = vrot.slane %v7713_v16, %v2940_v54  ;;  %v2945_v28 = vrot.slane %v7713_v16, %v2944_v42  ;;  %v5045_v42 = vld [vmem:[%s7835_s8 + $0x188] sm:$0xff]  }
 0x32b   :  { %v2956_v54 = vsub.s32 6, %v8184_v11 }
 0x32c   :  { %v2910_v24 = vmul.f32 0.0625, %v2893_v14  ;;  %v2919_v51 = vpack.c.bf16 %v2911_v8, %v2911_v8  ;;  %v5019_v8 = vld [vmem:[%s7835_s8 + $0x130] sm:$0xff]  }
 0x32e   :  { %v2918_v20 = vpack.c.bf16 %v2910_v24, %v2910_v24  ;;  %v2985_v38 = vunpack.c.l.b16 %v2919_v51 }
 0x330   :  { %v2984_v47 = vunpack.c.l.b16 %v2918_v20  ;;  %v5022_v20 = vld [vmem:[%s7835_s8 + $0x128] sm:$0xff]  }
 0x332   :  { %v2997_v26 = vsel %vm2996_vm4, %v2984_v47, %v2995_v41  ;;  %v5024_v41 = vld [vmem:[%s7835_s8 + $0x160] sm:$0xff]  }
 0x333   :  { %v2999_v62 = vsel %vm2998_vm3, %v2985_v38, %v2997_v26 }
 0x334   :  { %v3000_v3 = vpack.c.b16 %v2999_v62, %v2999_v62  ;;  %v5026_v62 = vld [vmem:[%s7835_s8 + $0x120] sm:$0xff]  }
 0x336   :  { %4013 = vmatmul.mubr.msk.bf16.vlgmr.msra.gmra.mxu1 %vm2402_vm11, %v3000_v3 }
 0x337   :  { %3100 = vmatpush1.bf16.msra.mxu1 %v4007_v2  ;;  %3117 = vmatprep.mubr.bf16.mxu1 %v5070_v4  ;;  %v4997_v2 = vld [vmem:[%s7835_s8 + $0x38] sm:$0xff]  }
 0x338   :  { %3140 = vmatprep.subr.bf16.mxu1 %v4010_v17 }
 0x33e   :  { %4014 = vmatmul.mubr.msk.bf16.vlgmr.msra.gmra.mxu1 %vm2402_vm11, %v3000_v3 }
 0x33f   :  { %3141 = vmatpush1.bf16.msra.mxu1 %v4009_v46  ;;  %3158 = vmatprep.mubr.bf16.mxu1 %v5070_v4 }
 0x340   :  { %3181 = vmatprep.subr.bf16.mxu1 %v4012_v59  ;;  %v2960_v59 = vsub.s32 7, %v8184_v11 }
 0x346   :  { %4015 = vmatmul.mubr.msk.bf16.vlgmr.msra.gmra.mxu1 %vm2402_vm11, %v3000_v3 }
 0x347   :  { %3182 = vmatpush1.bf16.msra.mxu1 %v4011_v35  ;;  %3199 = vmatprep.mubr.bf16.mxu1 %v5070_v4  ;;  %v5000_v4 = vld [vmem:[%s7835_s8 + $0x68] sm:$0xff]  }
 0x348   :  { %4133 = vmatprep.subr.bf16.mxu1 %v4996_v32 }
 0x34e   :  { %4016 = vmatmul.mubr.msk.bf16.vlgmr.msra.gmra.mxu1 %vm2402_vm11, %v3000_v3  ;;  %v5027_v3 = vld [vmem:[%s7835_s8 + $0x1b0] sm:$0xff]  }
 0x34f   :  { %4134 = vmatpush3.bf16.msra.mxu1 %v4997_v2  ;;  %v5030_v2 = vld [vmem:[%s7835_s8 + $0x118] sm:$0xff]  }
 0x350   :  { %4135 = vmatprep.subr.bf16.mxu1 %v4998_v10  ;;  %v5031_v10 = vld [vmem:[%s7835_s8 + $0x1a8] sm:$0xff]  }
 0x353   :  { %4136 = vmatpush3.bf16.msra.mxu1 %v4999_v30 }
 0x354   :  { %4137 = vmatprep.subr.bf16.mxu1 %v5000_v4  ;;  %v5032_v4 = vld [vmem:[%s7835_s8 + $0x150] sm:$0xff]  }
 0x357   :  { %4138 = vmatpush3.bf16.msra.mxu1 %v5002_v19  ;;  %v5033_v19 = vld [vmem:[%s7835_s8 + $0x1e0] sm:$0xff]  }
 0x358   :  { %4139 = vmatprep.subr.bf16.mxu1 %v5004_v34  ;;  %v2961_v34 = vrot.slane %v7713_v16, %v2960_v59 }
 0x35b   :  { %4140 = vmatpush3.bf16.msra.mxu1 %v5005_v29 }
 0x35c   :  { %4141 = vmatprep.subr.bf16.mxu1 %v5006_v49  ;;  %v5034_v49 = vld [vmem:[%s7835_s8 + $0x110] sm:$0xff]  }
 0x35f   :  { %4142 = vmatpush3.bf16.msra.mxu1 %v5007_v52  ;;  %v5035_v52 = vld [vmem:[%s7835_s8 + $0x1a0] sm:$0xff]  }
 0x360   :  { %4143 = vmatprep.subr.bf16.mxu1 %v5008_v12  ;;  %v2948_v12 = vsub.s32 4, %v8184_v11  ;;  %v5046_v11 = vld [vmem:[%s7835_s8 + $0x1c0] sm:$0xff]  }
 0x362   :  { %v2949_v50 = vrot.slane %v7713_v16, %v2948_v12 }
 0x363   :  { %4144 = vmatpush3.bf16.msra.mxu1 %v5009_v9 }
 0x364   :  { %4145 = vmatprep.subr.bf16.mxu1 %v5010_v40  ;;  %v5036_v40 = vld [vmem:[%s7835_s8 + $0x148] sm:$0xff]  }
 0x367   :  { %4146 = vmatpush3.bf16.msra.mxu1 %v5012_v53  ;;  %v5037_v53 = vld [vmem:[%s7835_s8 + $0x1d8] sm:$0xff]  }
 0x368   :  { %4147 = vmatprep.subr.bf16.mxu1 %v5014_v18 }
 0x36b   :  { %4148 = vmatpush3.bf16.msra.mxu1 %v5015_v15 }
 0x36c   :  { %4177 = vmatprep.subr.bf16.mxu1 %v5016_v1  ;;  %v5038_v1 = vld [vmem:[%s7835_s8 + $0x108] sm:$0xff]  }
 0x3f6   :  { %v3078_v61 = vpop.f32.mrf.mxu1 }
 0x3f7   :  { %v3079_v5 = vadd.f32 %v3078_v61, %v2933_v39  ;;  %v5040_v39 = vld [vmem:[%s7835_s8 + $0x140] sm:$0xff]  }
 0x3f8   :  { %v3080_v60 = vpop.f32.mrf.mxu1  ;;  %v5042_v61 = vld [vmem:[%s7835_s8 + $0x100] sm:$0xff]  }
 0x3f9   :  { %v3081_v13 = vadd.f32 %v3080_v60, %v2937_v58  ;;  %v3208_v55 = vpack.c.bf16 %v3079_v5, %v3079_v5  ;;  %v5041_v58 = vld [vmem:[%s7835_s8 + $0x1d0] sm:$0xff]  }
 0x3fa   :  { %v3082_v37 = vpop.f32.mrf.mxu1  ;;  %v5043_v5 = vld [vmem:[%s7835_s8 + $0x190] sm:$0xff]  }
 0x3fb   :  { %v3209_v63 = vpack.c.bf16 %v3081_v13, %v3081_v13  ;;  %v5044_v13 = vld [vmem:[%s7835_s8 + $0x1c8] sm:$0xff]  }
 0x3fc   :  { %v3083_v44 = vpop.f32.mrf.mxu1 }
 0x3fd   :  { %3767 = vmatprep.mubr.bf16.mxu1 %v3209_v63  ;;  %v2957_v63 = vrot.slane %v7713_v16, %v2956_v54 }
 0x3fe   :  { %v3119_v31 = vpop.f32.mrf.mxu1  ;;  %3768 = vmatmul.mubr.bf16.vlgmr.msra.gmra.mxu1 %v3208_v55 }
 0x3ff   :  { %4178 = vmatpush3.bf16.msra.mxu1 %v5017_v45  ;;  %v3120_v14 = vadd.f32 %v3119_v31, %v2941_v56  ;;  %v5047_v45 = vld [vmem:[%s7835_s8 + $0x180] sm:$0xff]  }
 0x400   :  { %v3121_v22 = vpop.f32.mrf.mxu1  ;;  %4179 = vmatprep.subr.bf16.mxu1 %v5018_v33 }
 0x401   :  { %v3122_v24 = vadd.f32 %v3121_v22, %v2945_v28  ;;  %v3210_v47 = vpack.c.bf16 %v3120_v14, %v3120_v14 }
 0x402   :  { %v3123_v51 = vpop.f32.mrf.mxu1 }
 0x403   :  { %v3211_v6 = vpack.c.bf16 %v3122_v24, %v3122_v24  ;;  %4180 = vmatpush3.bf16.msra.mxu1 %v5019_v8  ;;  %v4017_v51 = vld [vmem:[%s7838_s9] ss:$0 sm:$0xff] }
 0x404   :  { %v3124_v38 = vpop.f32.mrf.mxu1  ;;  %4181 = vmatprep.subr.bf16.mxu1 %v5020_v23 }
 0x405   :  { %3807 = vmatprep.mubr.bf16.mxu0 %v3211_v6 }
 0x406   :  { %v3160_v26 = vpop.f32.mrf.mxu1  ;;  %3808 = vmatmul.mubr.bf16.vlgmr.msra.gmra.mxu0 %v3210_v47 }
 0x407   :  { %4182 = vmatpush3.bf16.msra.mxu1 %v5022_v20  ;;  %4200 = vmatpush3.bf16.msra.mxu0 %v5023_v0  ;;  %v3161_v60 = vadd.f32 %v3160_v26, %v2949_v50  ;;  %v8185_v0 = vlaneseq }
 0x408   :  { %v3162_v17 = vpop.f32.mrf.mxu1  ;;  %4183 = vmatprep.subr.bf16.mxu1 %v5024_v41  ;;  %4201 = vmatprep.subr.bf16.mxu0 %v5025_v43 }
 0x409   :  { %v3163_v46 = vadd.f32 %v3162_v17, %v2953_v21  ;;  %v3212_v37 = vpack.c.bf16 %v3161_v60, %v3161_v60  ;;  %v3896_v47 = vand.u32 127, %v8185_v0 }
 0x40a   :  { %v3164_v35 = vpop.f32.mrf.mxu1 }
 0x40b   :  { %v3213_v32 = vpack.c.bf16 %v3163_v46, %v3163_v46  ;;  %4184 = vmatpush3.bf16.msra.mxu1 %v5026_v62  ;;  %4202 = vmatpush3.bf16.msra.mxu0 %v5027_v3  ;;  %vm3897_vm11 = vcmp.lt.s32.totalorder %v3896_v47, 10  ;;  %vm3915_vm0 = vcmp.eq.s32.totalorder %v3896_v47, 127 }
 0x40c   :  { %v3165_v30 = vpop.f32.mrf.mxu1  ;;  %4185 = vmatprep.subr.bf16.mxu1 %v5028_v48  ;;  %4203 = vmatprep.subr.bf16.mxu0 %v5029_v7  ;;  %v5071_v7 = vmov -1e+09  }
 0x40d   :  { %3847 = vmatprep.mubr.bf16.mxu1 %v3213_v32  ;;  %v3898_v46 = vsel %vm3897_vm11, 0.0, %v5071_v7 }
 0x40e   :  { %v3201_v29 = vpop.f32.mrf.mxu1 }
 0x40f   :  { %4186 = vmatpush3.bf16.msra.mxu1 %v5030_v2  ;;  %4204 = vmatpush3.bf16.msra.mxu0 %v5031_v10  ;;  %v3202_v55 = vadd.f32 %v3201_v29, %v2957_v63  ;;  %v3910_v2 = vld [vmem:[%s7839_s1] sm:$0xff] }
 0x410   :  { %v3203_v9 = vpop.f32.mrf.mxu1  ;;  %4187 = vmatprep.subr.bf16.mxu1 %v5032_v4  ;;  %4205 = vmatprep.subr.bf16.mxu0 %v5033_v19 }
 0x411   :  { %v3204_v27 = vadd.f32 %v3203_v9, %v2961_v34  ;;  %v3214_v44 = vpack.c.bf16 %v3202_v55, %v3202_v55 }
 0x412   :  { %v3205_v18 = vpop.f32.mrf.mxu1 }
 0x413   :  { %v3215_v15 = vpack.c.bf16 %v3204_v27, %v3204_v27  ;;  %4188 = vmatpush3.bf16.msra.mxu1 %v5034_v49  ;;  %4206 = vmatpush3.bf16.msra.mxu0 %v5035_v52 }
 0x414   :  { %v3206_v25 = vpop.f32.mrf.mxu1  ;;  %4189 = vmatprep.subr.bf16.mxu1 %v5036_v40  ;;  %4207 = vmatprep.subr.bf16.mxu0 %v5037_v53 }
 0x415   :  { %3887 = vmatprep.mubr.bf16.mxu0 %v3215_v15 }
 0x417   :  { %4190 = vmatpush3.bf16.msra.mxu1 %v5038_v1  ;;  %4208 = vmatpush3.bf16.msra.mxu0 %v5039_v36 }
 0x418   :  { %4191 = vmatprep.subr.bf16.mxu1 %v5040_v39  ;;  %4209 = vmatprep.subr.bf16.mxu0 %v5041_v58 }
 0x41b   :  { %4192 = vmatpush3.bf16.msra.mxu1 %v5042_v61  ;;  %4210 = vmatpush3.bf16.msra.mxu0 %v5043_v5 }
 0x41c   :  { %4211 = vmatprep.subr.bf16.mxu0 %v5044_v13 }
 0x41e   :  { %3848 = vmatmul.mubr.bf16.vlgmr.msra.gmra.mxu1 %v3212_v37 }
 0x41f   :  { %4212 = vmatpush3.bf16.msra.mxu0 %v5045_v42 }
 0x420   :  { %4213 = vmatprep.subr.bf16.mxu0 %v5046_v11 }
 0x423   :  { %4214 = vmatpush3.bf16.msra.mxu0 %v5047_v45 }
 0x426   :  { %3888 = vmatmul.mubr.bf16.vlgmr.msra.gmra.mxu0 %v3214_v44 }
 0x4be   :  { %v4149_v56 = vpop.f32.mrf.mxu1 }
 0x4c0   :  { %v4150_v33 = vpop.f32.mrf.mxu1 }
 0x4c1   :  { %v4151_v57 = vadd.f32 %v4150_v33, %v4149_v56 }
 0x4c2   :  { %v4152_v28 = vpop.f32.mrf.mxu1 }
 0x4c3   :  { %v3770_v41 = vadd.f32 %v4151_v57, %v4017_v51 }
 0x4c4   :  { %v4153_v16 = vpop.f32.mrf.mxu1 }
 0x4c6   :  { %v4171_v31 = vpop.f32.mrf.mxu0 }
 0x4c8   :  { %v4172_v8 = vpop.f32.mrf.mxu0 }
 0x4c9   :  { %v4173_v20 = vadd.f32 %v4172_v8, %v4171_v31 }
 0x4ca   :  { %v4174_v14 = vpop.f32.mrf.mxu0 }
 0x4cb   :  { %v3810_v26 = vadd.f32 %v4173_v20, %v3770_v41 }
 0x4cc   :  { %v4175_v22 = vpop.f32.mrf.mxu0 }
 0x4de   :  { %v4193_v23 = vpop.f32.mrf.mxu1 }
 0x4e0   :  { %v4194_v24 = vpop.f32.mrf.mxu1 }
 0x4e1   :  { %v4195_v43 = vadd.f32 %v4194_v24, %v4193_v23 }
 0x4e2   :  { %v4196_v6 = vpop.f32.mrf.mxu1 }
 0x4e3   :  { %v3850_v3 = vadd.f32 %v4195_v43, %v3810_v26 }
 0x4e4   :  { %v4197_v38 = vpop.f32.mrf.mxu1 }
 0x4e6   :  { %v4215_v21 = vpop.f32.mrf.mxu0 }
 0x4e8   :  { %v4216_v62 = vpop.f32.mrf.mxu0 }
 0x4e9   :  { %v4217_v17 = vadd.f32 %v4216_v62, %v4215_v21 }
 0x4ea   :  { %v4218_v48 = vpop.f32.mrf.mxu0 }
 0x4eb   :  { %v3890_v59 = vadd.f32 %v4217_v17, %v3850_v3 }
 0x4ec   :  { %v4219_v35 = vpop.f32.mrf.mxu0 }
 0x4ed   :  { %v3899_v32 = vadd.f32 %v3898_v46, %v3890_v59  ;;  %v3911_v10 = vmul.f32 %v3910_v2, %v3890_v59 }
 0x4ef   :  { %3900 = vmax.xlane.f32.xlu0 %v3899_v32 }
 0x4f3   :  { %3912 = vadd.xlane.f32.xlu0 %v3911_v10 }
 0x578   :  { %v3901_v30 = vpop.xlane.xlu0 %3900 }
 0x579   :  { %v3902_v4 = vsub.f32 %v3899_v32, %v3901_v30 }
 0x57b   :  { %v3903_v19 = vmul.f32 1.442695, %v3902_v4 }
 0x57c   :  { %v3913_v9 = vpop.xlane.xlu0 %3912 }
 0x57d   :  { %5048 = vpow2.f32 %v3903_v19 }
 0x58a   :  { %v5049_v34 = vpop.eup %5048 }
 0x58b   :  { %3905 = vadd.xlane.f32.xlu1 %v5049_v34 }
 0x614   :  { %v3906_v29 = vpop.xlane.xlu1 %3905 }
 0x615   :  { %5050 = vlog2.f32 %v3906_v29 }
 0x622   :  { %v5051_v49 = vpop.eup %5050 }
 0x623   :  { %v3908_v52 = vmul.f32 0.6931472, %v5051_v49 }
 0x625   :  { %v3909_v12 = vadd.f32 %v3908_v52, %v3901_v30 }
 0x627   :  { %v3914_v40 = vsub.f32 %v3909_v12, %v3913_v9 }
 0x629   :  { %v3918_v53 = vsel %vm3915_vm0, %v3914_v40, %v3890_v59 }
 0x62a   :  { %3919 = vst [vmem:[%s7840_s10] sm:$0xff] %v3918_v53 }

</bundles_post_ra>
